<compile_context>
chip_gen: v7x
topology: tpu7x:2x2x1
jax: 0.10.0
libtpu: 0.0.40
codegen_flags: <defaults>
</compile_context>

<pallas_src>
import numpy as np
import jax
import jax.numpy as jnp
from jax.experimental import pallas as pl
from jax.experimental.pallas import tpu as pltpu


# ---------------------------------------------------------------------------
# Small (module-consistent) dimensions for the runnable example.
# Real module uses input_dim=2560, hidden_dim=1280, z_dim=100; same structure.
# ---------------------------------------------------------------------------
BATCH = 16
INPUT_DIM = 640       # real: 2560
HIDDEN_DIM = 512      # real: 1280
Z_DIM = 100           # real: 100
LEAKY_SLOPE = 0.01    # F.leaky_relu default
BN_EPS = 1e-5
N_W = 8               # fc1, rb1, rb2, [mu|logvar], fc3, rb3, rb4, fc4


def _rup(n, m=128):
    return ((n + m - 1) // m) * m


# Lane-padded (128-multiple) feature widths used everywhere inside the kernel.
IN_P = _rup(INPUT_DIM)
HID_P = _rup(HIDDEN_DIM)
H2_P = _rup(HIDDEN_DIM // 2)
H4_P = _rup(HIDDEN_DIM // 4)
Z_P = _rup(Z_DIM)


def _leaky_relu(x):
    return jnp.where(x > 0, x, LEAKY_SLOPE * x)


# ---------------------------------------------------------------------------
# Pallas kernel: encode -> reparameterize -> decode for one batch tile.
# Weights live in HBM and are streamed into per-weight VMEM scratch; each layer
# waits only for its own weight, so compute overlaps the remaining weight DMAs.
# ---------------------------------------------------------------------------
def vae_kernel(
    x_ref, eps_ref,
    # weights (HBM refs, memory_space=pl.ANY)
    w0h, w1h, w2h, w3h, w4h, w5h, w6h, w7h,
    # biases (resident VMEM blocks, f32 (1, N))
    b0, b1, b2, b3, b4, b5, b6, b7,
    # outputs
    recon_ref, muvar_ref,
    # scratch: one VMEM buffer per weight + DMA semaphores
    v0, v1, v2, v3, v4, v5, v6, v7, dma_sems,
):
    w_hbm = (w0h, w1h, w2h, w3h, w4h, w5h, w6h, w7h)
    w_vmem = (v0, v1, v2, v3, v4, v5, v6, v7)
    first_step = pl.program_id(0) == 0

    # Issue all weight DMAs up front (first grid step only; VMEM scratch persists
    # across grid steps, so weights are fetched from HBM exactly once per call).
    @pl.when(first_step)
    def _():
        for i in range(N_W):
            pltpu.make_async_copy(w_hbm[i], w_vmem[i], dma_sems.at[i]).start()

    def mm(a_bf16, i, b_ref):
        # Wait only for the weight this layer needs -> earlier layers compute
        # while later layers' weights are still in flight.
        @pl.when(first_step)
        def _():
            pltpu.make_async_copy(w_hbm[i], w_vmem[i], dma_sems.at[i]).wait()
        return jnp.dot(a_bf16, w_vmem[i][...],
                       preferred_element_type=jnp.float32) + b_ref[...]

    def resblock(h_bf16, i, b_ref, out_pad):
        # Fused [fc(+bn) | downsample] matmul; split at a 128-lane boundary.
        # Module: out = leaky_relu(bn(fc(x))) + downsample(x)   (dropout = id).
        y = mm(h_bf16, i, b_ref)
        out = _leaky_relu(y[:, :out_pad]) + y[:, out_pad:]
        return out.astype(jnp.bfloat16)

    x = x_ref[...]                                        # bf16 (bt, IN_P)

    # ---- encode ----
    h = _leaky_relu(mm(x, 0, b0)).astype(jnp.bfloat16)    # fc1 -> bn1 -> lrelu
    h = resblock(h, 1, b1, H2_P)                          # hidden    -> hidden//2
    h = resblock(h, 2, b2, H4_P)                          # hidden//2 -> hidden//4

    mv = mm(h, 3, b3)                                     # (bt, 2*Z_P) = [mu | logvar]
    mu = mv[:, :Z_P]
    logvar = mv[:, Z_P:]

    # ---- reparameterize ----
    z = (mu + eps_ref[...] * jnp.exp(0.5 * logvar)).astype(jnp.bfloat16)

    # ---- decode ----
    h = _leaky_relu(mm(z, 4, b4)).astype(jnp.bfloat16)    # fc3 -> bn3 -> lrelu
    h = resblock(h, 5, b5, H2_P)                          # hidden//4 -> hidden//2
    h = resblock(h, 6, b6, HID_P)                         # hidden//2 -> hidden

    recon_ref[...] = mm(h, 7, b7)                         # fc4 (f32 store)
    muvar_ref[...] = mv                                   # lane-dense fused store


# ---------------------------------------------------------------------------
# Parameter construction + BN folding + branch fusion + 128-lane padding.
# ---------------------------------------------------------------------------
def _init_linear(key, in_dim, out_dim):
    kw, kb = jax.random.split(key)
    bound = 1.0 / np.sqrt(in_dim)                    # PyTorch default init scale
    w = jax.random.uniform(kw, (in_dim, out_dim), jnp.float32, -bound, bound)
    b = jax.random.uniform(kb, (out_dim,), jnp.float32, -bound, bound)
    return w, b


def _init_bn(key, dim):
    k1, k2, k3, k4 = jax.random.split(key, 4)
    gamma = 1.0 + 0.1 * jax.random.normal(k1, (dim,), jnp.float32)
    beta = 0.1 * jax.random.normal(k2, (dim,), jnp.float32)
    mean = 0.1 * jax.random.normal(k3, (dim,), jnp.float32)
    var = 1.0 + 0.5 * jax.random.uniform(k4, (dim,), jnp.float32)
    return gamma, beta, mean, var


def _fold_bn(w, b, bn):
    """Fold eval-mode BatchNorm1d into the preceding Linear: y = (xW+b)*s + t."""
    gamma, beta, mean, var = bn
    scale = gamma / jnp.sqrt(var + BN_EPS)
    return w * scale[None, :], (b - mean) * scale + beta


def _pad_wb(w, b, k_pad, n_pad):
    """Zero-pad a Linear to lane-aligned (k_pad, n_pad); numerics unchanged."""
    K, N = w.shape
    return (jnp.pad(w, ((0, k_pad - K), (0, n_pad - N))),
            jnp.pad(b, (0, n_pad - N)))


def _fuse(wa, ba, wb, bb):
    """Fuse two same-input linears along the output (N) axis -> one MXU push."""
    return jnp.concatenate([wa, wb], axis=1), jnp.concatenate([ba, bb], axis=0)


def build_params(key):
    H2, H4 = HIDDEN_DIM // 2, HIDDEN_DIM // 4
    ks = jax.random.split(key, 20)
    i = iter(range(20))

    # encoder
    w1, b1 = _init_linear(ks[next(i)], INPUT_DIM, HIDDEN_DIM)
    bn1 = _init_bn(ks[next(i)], HIDDEN_DIM)
    wr1, br1 = _init_linear(ks[next(i)], HIDDEN_DIM, H2)
    bnr1 = _init_bn(ks[next(i)], H2)
    wd1, bd1 = _init_linear(ks[next(i)], HIDDEN_DIM, H2)
    wr2, br2 = _init_linear(ks[next(i)], H2, H4)
    bnr2 = _init_bn(ks[next(i)], H4)
    wd2, bd2 = _init_linear(ks[next(i)], H2, H4)
    w21, b21 = _init_linear(ks[next(i)], H4, Z_DIM)
    w22, b22 = _init_linear(ks[next(i)], H4, Z_DIM)

    # decoder
    w3, b3 = _init_linear(ks[next(i)], Z_DIM, H4)
    bn3 = _init_bn(ks[next(i)], H4)
    wr3, br3 = _init_linear(ks[next(i)], H4, H2)
    bnr3 = _init_bn(ks[next(i)], H2)
    wd3, bd3 = _init_linear(ks[next(i)], H4, H2)
    wr4, br4 = _init_linear(ks[next(i)], H2, HIDDEN_DIM)
    bnr4 = _init_bn(ks[next(i)], HIDDEN_DIM)
    wd4, bd4 = _init_linear(ks[next(i)], H2, HIDDEN_DIM)
    w4, b4 = _init_linear(ks[next(i)], HIDDEN_DIM, INPUT_DIM)

    # fold eval-mode BN into its preceding Linear (f32 math)
    w1f, b1f = _fold_bn(w1, b1, bn1)
    wr1f, br1f = _fold_bn(wr1, br1, bnr1)
    wr2f, br2f = _fold_bn(wr2, br2, bnr2)
    w3f, b3f = _fold_bn(w3, b3, bn3)
    wr3f, br3f = _fold_bn(wr3, br3, bnr3)
    wr4f, br4f = _fold_bn(wr4, br4, bnr4)

    # pad every branch to 128-lane widths, then fuse same-input branch pairs
    fc1 = _pad_wb(w1f, b1f, IN_P, HID_P)
    rb1 = _fuse(*_pad_wb(wr1f, br1f, HID_P, H2_P), *_pad_wb(wd1, bd1, HID_P, H2_P))
    rb2 = _fuse(*_pad_wb(wr2f, br2f, H2_P, H4_P), *_pad_wb(wd2, bd2, H2_P, H4_P))
    mvp = _fuse(*_pad_wb(w21, b21, H4_P, Z_P), *_pad_wb(w22, b22, H4_P, Z_P))
    fc3 = _pad_wb(w3f, b3f, Z_P, H4_P)
    rb3 = _fuse(*_pad_wb(wr3f, br3f, H4_P, H2_P), *_pad_wb(wd3, bd3, H4_P, H2_P))
    rb4 = _fuse(*_pad_wb(wr4f, br4f, H2_P, HID_P), *_pad_wb(wd4, bd4, H2_P, HID_P))
    fc4 = _pad_wb(w4, b4, HID_P, IN_P)

    layers = [fc1, rb1, rb2, mvp, fc3, rb3, rb4, fc4]
    weights = [w.astype(jnp.bfloat16) for w, _ in layers]         # bf16: halves HBM DMA
    biases = [b.reshape(1, -1).astype(jnp.float32) for _, b in layers]
    return weights, biases


# ---------------------------------------------------------------------------
# Wrapper around pallas_call.
# ---------------------------------------------------------------------------
def _pick_batch_tile(B):
    # Fill the MXU M dimension: prefer big tiles; fall back to the whole batch.
    for bt in (256, 128, 64, 32, 16):
        if B % bt == 0:
            return bt
    return B


def vae_forward(x, eps, params):
    weights, biases = params
    B = x.shape[0]
    bt = _pick_batch_tile(B)
    grid = (B // bt,)

    # pad inputs to lane-aligned widths; ship x as bf16 (halves its HBM traffic)
    x_p = jnp.pad(x.astype(jnp.bfloat16), ((0, 0), (0, IN_P - INPUT_DIM)))
    eps_p = jnp.pad(eps.astype(jnp.float32), ((0, 0), (0, Z_P - Z_DIM)))

    in_specs = (
        [pl.BlockSpec((bt, IN_P), lambda i: (i, 0)),            # x: batch-tiled
         pl.BlockSpec((bt, Z_P), lambda i: (i, 0))]             # eps: batch-tiled
        + [pl.BlockSpec(memory_space=pl.ANY) for _ in weights]  # weights stay in HBM
        + [pl.BlockSpec(b.shape, lambda i: (0, 0)) for b in biases]  # tiny, resident
    )
    out_specs = (
        pl.BlockSpec((bt, IN_P), lambda i: (i, 0)),             # recon (padded)
        pl.BlockSpec((bt, 2 * Z_P), lambda i: (i, 0)),          # [mu | logvar] fused
    )
    out_shape = (
        jax.ShapeDtypeStruct((B, IN_P), jnp.float32),
        jax.ShapeDtypeStruct((B, 2 * Z_P), jnp.float32),
    )
    scratch_shapes = (
        [pltpu.VMEM(w.shape, jnp.bfloat16) for w in weights]    # single weight copy
        + [pltpu.SemaphoreType.DMA((len(weights),))]
    )

    # VMEM budget: single-buffered weight scratch + double-buffered I/O tiles +
    # biases + live activations, clamped below physical VMEM (64 MiB/TC on v7x).
    w_bytes = sum(int(w.nbytes) for w in weights)
    b_bytes = 2 * sum(int(b.nbytes) for b in biases)
    io_bytes = 2 * bt * (IN_P * 2 + Z_P * 4 + IN_P * 4 + 2 * Z_P * 4)
    act_bytes = 4 * bt * (IN_P + 2 * HID_P + 2 * H2_P)
    needed = w_bytes + b_bytes + io_bytes + act_bytes + (4 << 20)
    phys = 64 << 20
    try:
        phys = int(getattr(pltpu.get_tpu_info(), "vmem_capacity_bytes", phys))
    except Exception:
        pass
    vmem_limit = int(min(max(needed, 32 << 20), (phys * 7) // 8))

    recon_p, muvar = pl.pallas_call(
        vae_kernel,
        out_shape=out_shape,
        grid=grid,
        in_specs=in_specs,
        out_specs=out_specs,
        scratch_shapes=scratch_shapes,
        compiler_params=pltpu.CompilerParams(
            # "arbitrary": weight-DMA-bound at serving batch; sharding a small
            # batch across v7x's 2 TensorCores would duplicate the full weight
            # DMA per core (and the step-0 weight load assumes a sequential grid).
            dimension_semantics=("arbitrary",),
            vmem_limit_bytes=vmem_limit,
        ),
    )(x_p, eps_p, *weights, *biases)

    recon = recon_p[:, :INPUT_DIM]
    mu = muvar[:, :Z_DIM]
    logvar = muvar[:, Z_P:Z_P + Z_DIM]
    return recon, mu, logvar


# ---------------------------------------------------------------------------
# Pure-JAX reference with identical numerics (bf16 weights/activations, f32 acc).
# ---------------------------------------------------------------------------
def vae_forward_ref(x, eps, params):
    weights, biases = params
    xb = jnp.pad(x.astype(jnp.bfloat16), ((0, 0), (0, IN_P - INPUT_DIM)))
    ep = jnp.pad(eps.astype(jnp.float32), ((0, 0), (0, Z_P - Z_DIM)))
    lr = lambda t: jnp.where(t > 0, t, LEAKY_SLOPE * t)
    mm = lambda a, w, b: jnp.dot(a, w, preferred_element_type=jnp.float32) + b

    def rb(h, w, b, out_pad):
        y = mm(h, w, b)
        return (lr(y[:, :out_pad]) + y[:, out_pad:]).astype(jnp.bfloat16)

    h = lr(mm(xb, weights[0], biases[0])).astype(jnp.bfloat16)
    h = rb(h, weights[1], biases[1], H2_P)
    h = rb(h, weights[2], biases[2], H4_P)
    mv = mm(h, weights[3], biases[3])
    mu, logvar = mv[:, :Z_P], mv[:, Z_P:]
    z = (mu + ep * jnp.exp(0.5 * logvar)).astype(jnp.bfloat16)
    h = lr(mm(z, weights[4], biases[4])).astype(jnp.bfloat16)
    h = rb(h, weights[5], biases[5], H2_P)
    h = rb(h, weights[6], biases[6], HID_P)
    recon = mm(h, weights[7], biases[7])
    return recon[:, :INPUT_DIM], mu[:, :Z_DIM], logvar[:, :Z_DIM]


if __name__ == "__main__":
    root = jax.random.PRNGKey(0)
    k_param, k_x, k_eps = jax.random.split(root, 3)

    params = build_params(k_param)
    x = jax.random.normal(k_x, (BATCH, INPUT_DIM), jnp.float32)
    eps = jax.random.normal(k_eps, (BATCH, Z_DIM), jnp.float32)

    recon, mu, logvar = jax.block_until_ready(vae_forward(x, eps, params))

    # sanity checks against a numerically-matched pure-JAX reference
    r_ref, mu_ref, lv_ref = vae_forward_ref(x, eps, params)
    assert recon.shape == (BATCH, INPUT_DIM)
    assert mu.shape == (BATCH, Z_DIM) and logvar.shape == (BATCH, Z_DIM)
    assert bool(jnp.all(jnp.isfinite(recon)))
    np.testing.assert_allclose(np.asarray(mu), np.asarray(mu_ref), rtol=2e-2, atol=2e-2)
    np.testing.assert_allclose(np.asarray(logvar), np.asarray(lv_ref), rtol=2e-2, atol=2e-2)
    np.testing.assert_allclose(np.asarray(recon), np.asarray(r_ref), rtol=2e-2, atol=2e-2)

    print("KERNEL_OK")
</pallas_src>

<mosaic_0001>
module attributes {stable_mosaic.version = 11 : i64} {
  func.func @vae_kernel(%arg0: i32, %arg1: memref<16x640xbf16, #tpu.memory_space<vmem>>, %arg2: memref<16x128xf32, #tpu.memory_space<vmem>>, %arg3: memref<640x512xbf16, #tpu.memory_space<any>>, %arg4: memref<512x512xbf16, #tpu.memory_space<any>>, %arg5: memref<256x256xbf16, #tpu.memory_space<any>>, %arg6: memref<128x256xbf16, #tpu.memory_space<any>>, %arg7: memref<128x128xbf16, #tpu.memory_space<any>>, %arg8: memref<128x512xbf16, #tpu.memory_space<any>>, %arg9: memref<256x1024xbf16, #tpu.memory_space<any>>, %arg10: memref<512x640xbf16, #tpu.memory_space<any>>, %arg11: memref<1x512xf32, #tpu.memory_space<vmem>>, %arg12: memref<1x512xf32, #tpu.memory_space<vmem>>, %arg13: memref<1x256xf32, #tpu.memory_space<vmem>>, %arg14: memref<1x256xf32, #tpu.memory_space<vmem>>, %arg15: memref<1x128xf32, #tpu.memory_space<vmem>>, %arg16: memref<1x512xf32, #tpu.memory_space<vmem>>, %arg17: memref<1x1024xf32, #tpu.memory_space<vmem>>, %arg18: memref<1x640xf32, #tpu.memory_space<vmem>>, %arg19: memref<16x640xf32, #tpu.memory_space<vmem>>, %arg20: memref<16x256xf32, #tpu.memory_space<vmem>>, %arg21: memref<640x512xbf16, #tpu.memory_space<vmem>>, %arg22: memref<512x512xbf16, #tpu.memory_space<vmem>>, %arg23: memref<256x256xbf16, #tpu.memory_space<vmem>>, %arg24: memref<128x256xbf16, #tpu.memory_space<vmem>>, %arg25: memref<128x128xbf16, #tpu.memory_space<vmem>>, %arg26: memref<128x512xbf16, #tpu.memory_space<vmem>>, %arg27: memref<256x1024xbf16, #tpu.memory_space<vmem>>, %arg28: memref<512x640xbf16, #tpu.memory_space<vmem>>, %arg29: memref<8x!tpu.dma_semaphore, #tpu.memory_space<semaphore_mem>>) attributes {dimension_semantics = [#tpu.dimension_semantics<arbitrary>], iteration_bounds = array<i64: 1>, scalar_prefetch = 0 : i64, scratch_operands = 9 : i64, tpu.core_type = #tpu.core_type<tc>, window_params = [{transform_indices = @transform_0, window_bounds = array<i64: 16, 640>}, {transform_indices = @transform_1, window_bounds = array<i64: 16, 128>}, {}, {}, {}, {}, {}, {}, {}, {}, {pipeline_mode = #tpu.pipeline_mode<synchronous>, transform_indices = @transform_10, window_bounds = array<i64: 1, 512>}, {pipeline_mode = #tpu.pipeline_mode<synchronous>, transform_indices = @transform_11, window_bounds = array<i64: 1, 512>}, {pipeline_mode = #tpu.pipeline_mode<synchronous>, transform_indices = @transform_12, window_bounds = array<i64: 1, 256>}, {pipeline_mode = #tpu.pipeline_mode<synchronous>, transform_indices = @transform_13, window_bounds = array<i64: 1, 256>}, {pipeline_mode = #tpu.pipeline_mode<synchronous>, transform_indices = @transform_14, window_bounds = array<i64: 1, 128>}, {pipeline_mode = #tpu.pipeline_mode<synchronous>, transform_indices = @transform_15, window_bounds = array<i64: 1, 512>}, {pipeline_mode = #tpu.pipeline_mode<synchronous>, transform_indices = @transform_16, window_bounds = array<i64: 1, 1024>}, {pipeline_mode = #tpu.pipeline_mode<synchronous>, transform_indices = @transform_17, window_bounds = array<i64: 1, 640>}, {transform_indices = @transform_18, window_bounds = array<i64: 16, 640>}, {transform_indices = @transform_19, window_bounds = array<i64: 16, 256>}]} {
    %c0_i32 = arith.constant 0 : i32
    %0 = arith.cmpi eq, %arg0, %c0_i32 : i32
    %1 = arith.extui %0 : i1 to i32
    %c0_i32_0 = arith.constant 0 : i32
    %2 = arith.cmpi ne, %1, %c0_i32_0 : i32
    scf.if %2 {
      %c0_i32_68 = arith.constant 0 : i32
      %119 = tpu.memref_slice %arg29[%c0_i32_68] : memref<8x!tpu.dma_semaphore, #tpu.memory_space<semaphore_mem>> -> memref<1x!tpu.dma_semaphore, #tpu.memory_space<semaphore_mem>>
      %120 = tpu.memref_squeeze %119 : memref<1x!tpu.dma_semaphore, #tpu.memory_space<semaphore_mem>> -> memref<!tpu.dma_semaphore, #tpu.memory_space<semaphore_mem>>
      tpu.enqueue_dma source(%arg3 : memref<640x512xbf16, #tpu.memory_space<any>>) target(%arg21 : memref<640x512xbf16, #tpu.memory_space<vmem>>) target_semaphore(%120 : memref<!tpu.dma_semaphore, #tpu.memory_space<semaphore_mem>>)
      %c1_i32 = arith.constant 1 : i32
      %121 = tpu.memref_slice %arg29[%c1_i32] : memref<8x!tpu.dma_semaphore, #tpu.memory_space<semaphore_mem>> -> memref<1x!tpu.dma_semaphore, #tpu.memory_space<semaphore_mem>>
      %122 = tpu.memref_squeeze %121 : memref<1x!tpu.dma_semaphore, #tpu.memory_space<semaphore_mem>> -> memref<!tpu.dma_semaphore, #tpu.memory_space<semaphore_mem>>
      tpu.enqueue_dma source(%arg4 : memref<512x512xbf16, #tpu.memory_space<any>>) target(%arg22 : memref<512x512xbf16, #tpu.memory_space<vmem>>) target_semaphore(%122 : memref<!tpu.dma_semaphore, #tpu.memory_space<semaphore_mem>>)
      %c2_i32 = arith.constant 2 : i32
      %123 = tpu.memref_slice %arg29[%c2_i32] : memref<8x!tpu.dma_semaphore, #tpu.memory_space<semaphore_mem>> -> memref<1x!tpu.dma_semaphore, #tpu.memory_space<semaphore_mem>>
      %124 = tpu.memref_squeeze %123 : memref<1x!tpu.dma_semaphore, #tpu.memory_space<semaphore_mem>> -> memref<!tpu.dma_semaphore, #tpu.memory_space<semaphore_mem>>
      tpu.enqueue_dma source(%arg5 : memref<256x256xbf16, #tpu.memory_space<any>>) target(%arg23 : memref<256x256xbf16, #tpu.memory_space<vmem>>) target_semaphore(%124 : memref<!tpu.dma_semaphore, #tpu.memory_space<semaphore_mem>>)
      %c3_i32 = arith.constant 3 : i32
      %125 = tpu.memref_slice %arg29[%c3_i32] : memref<8x!tpu.dma_semaphore, #tpu.memory_space<semaphore_mem>> -> memref<1x!tpu.dma_semaphore, #tpu.memory_space<semaphore_mem>>
      %126 = tpu.memref_squeeze %125 : memref<1x!tpu.dma_semaphore, #tpu.memory_space<semaphore_mem>> -> memref<!tpu.dma_semaphore, #tpu.memory_space<semaphore_mem>>
      tpu.enqueue_dma source(%arg6 : memref<128x256xbf16, #tpu.memory_space<any>>) target(%arg24 : memref<128x256xbf16, #tpu.memory_space<vmem>>) target_semaphore(%126 : memref<!tpu.dma_semaphore, #tpu.memory_space<semaphore_mem>>)
      %c4_i32 = arith.constant 4 : i32
      %127 = tpu.memref_slice %arg29[%c4_i32] : memref<8x!tpu.dma_semaphore, #tpu.memory_space<semaphore_mem>> -> memref<1x!tpu.dma_semaphore, #tpu.memory_space<semaphore_mem>>
      %128 = tpu.memref_squeeze %127 : memref<1x!tpu.dma_semaphore, #tpu.memory_space<semaphore_mem>> -> memref<!tpu.dma_semaphore, #tpu.memory_space<semaphore_mem>>
      tpu.enqueue_dma source(%arg7 : memref<128x128xbf16, #tpu.memory_space<any>>) target(%arg25 : memref<128x128xbf16, #tpu.memory_space<vmem>>) target_semaphore(%128 : memref<!tpu.dma_semaphore, #tpu.memory_space<semaphore_mem>>)
      %c5_i32 = arith.constant 5 : i32
      %129 = tpu.memref_slice %arg29[%c5_i32] : memref<8x!tpu.dma_semaphore, #tpu.memory_space<semaphore_mem>> -> memref<1x!tpu.dma_semaphore, #tpu.memory_space<semaphore_mem>>
      %130 = tpu.memref_squeeze %129 : memref<1x!tpu.dma_semaphore, #tpu.memory_space<semaphore_mem>> -> memref<!tpu.dma_semaphore, #tpu.memory_space<semaphore_mem>>
      tpu.enqueue_dma source(%arg8 : memref<128x512xbf16, #tpu.memory_space<any>>) target(%arg26 : memref<128x512xbf16, #tpu.memory_space<vmem>>) target_semaphore(%130 : memref<!tpu.dma_semaphore, #tpu.memory_space<semaphore_mem>>)
      %c6_i32 = arith.constant 6 : i32
      %131 = tpu.memref_slice %arg29[%c6_i32] : memref<8x!tpu.dma_semaphore, #tpu.memory_space<semaphore_mem>> -> memref<1x!tpu.dma_semaphore, #tpu.memory_space<semaphore_mem>>
      %132 = tpu.memref_squeeze %131 : memref<1x!tpu.dma_semaphore, #tpu.memory_space<semaphore_mem>> -> memref<!tpu.dma_semaphore, #tpu.memory_space<semaphore_mem>>
      tpu.enqueue_dma source(%arg9 : memref<256x1024xbf16, #tpu.memory_space<any>>) target(%arg27 : memref<256x1024xbf16, #tpu.memory_space<vmem>>) target_semaphore(%132 : memref<!tpu.dma_semaphore, #tpu.memory_space<semaphore_mem>>)
      %c7_i32 = arith.constant 7 : i32
      %133 = tpu.memref_slice %arg29[%c7_i32] : memref<8x!tpu.dma_semaphore, #tpu.memory_space<semaphore_mem>> -> memref<1x!tpu.dma_semaphore, #tpu.memory_space<semaphore_mem>>
      %134 = tpu.memref_squeeze %133 : memref<1x!tpu.dma_semaphore, #tpu.memory_space<semaphore_mem>> -> memref<!tpu.dma_semaphore, #tpu.memory_space<semaphore_mem>>
      tpu.enqueue_dma source(%arg10 : memref<512x640xbf16, #tpu.memory_space<any>>) target(%arg28 : memref<512x640xbf16, #tpu.memory_space<vmem>>) target_semaphore(%134 : memref<!tpu.dma_semaphore, #tpu.memory_space<semaphore_mem>>)
    } else {
    }
    %c0 = arith.constant 0 : index
    %c0_1 = arith.constant 0 : index
    %3 = vector.load %arg1[%c0, %c0_1] : memref<16x640xbf16, #tpu.memory_space<vmem>>, vector<16x640xbf16>
    %4 = arith.extui %0 : i1 to i32
    %c0_i32_2 = arith.constant 0 : i32
    %5 = arith.cmpi ne, %4, %c0_i32_2 : i32
    scf.if %5 {
      %c0_i32_68 = arith.constant 0 : i32
      %119 = tpu.memref_slice %arg29[%c0_i32_68] : memref<8x!tpu.dma_semaphore, #tpu.memory_space<semaphore_mem>> -> memref<1x!tpu.dma_semaphore, #tpu.memory_space<semaphore_mem>>
      %120 = tpu.memref_squeeze %119 : memref<1x!tpu.dma_semaphore, #tpu.memory_space<semaphore_mem>> -> memref<!tpu.dma_semaphore, #tpu.memory_space<semaphore_mem>>
      tpu.wait_dma2 semaphore(%120 : memref<!tpu.dma_semaphore, #tpu.memory_space<semaphore_mem>>) src(%arg3 : memref<640x512xbf16, #tpu.memory_space<any>>) dst(%arg21 : memref<640x512xbf16, #tpu.memory_space<vmem>>)
    } else {
    }
    %c0_3 = arith.constant 0 : index
    %c0_4 = arith.constant 0 : index
    %6 = vector.load %arg21[%c0_3, %c0_4] : memref<640x512xbf16, #tpu.memory_space<vmem>>, vector<640x512xbf16>
    %cst = arith.constant dense<0.000000e+00> : vector<16x512xf32>
    %7 = tpu.matmul %3, %6, %cst {dimension_numbers = #tpu.dot_dimension_numbers<[1], [0], [0], [1], [0, 0, 1, 1], [], []>} : vector<16x640xbf16>, vector<640x512xbf16>, vector<16x512xf32> -> vector<16x512xf32>
    %c0_5 = arith.constant 0 : index
    %c0_6 = arith.constant 0 : index
    %8 = vector.load %arg11[%c0_5, %c0_6] : memref<1x512xf32, #tpu.memory_space<vmem>>, vector<1x512xf32>
    %9 = vector.broadcast %8 : vector<1x512xf32> to vector<16x512xf32>
    %10 = arith.addf %7, %9 : vector<16x512xf32>
    %cst_7 = arith.constant 0.000000e+00 : f32
    %11 = vector.broadcast %cst_7 : f32 to vector<16x512xf32>
    %12 = arith.cmpf ogt, %10, %11 : vector<16x512xf32>
    %cst_8 = arith.constant 0.00999999977 : f32
    %13 = vector.broadcast %cst_8 : f32 to vector<16x512xf32>
    %14 = arith.mulf %13, %10 : vector<16x512xf32>
    %15 = arith.select %12, %10, %14 : vector<16x512xi1>, vector<16x512xf32>
    %16 = arith.truncf %15 : vector<16x512xf32> to vector<16x512xbf16>
    %17 = arith.extui %0 : i1 to i32
    %c0_i32_9 = arith.constant 0 : i32
    %18 = arith.cmpi ne, %17, %c0_i32_9 : i32
    scf.if %18 {
      %c1_i32 = arith.constant 1 : i32
      %119 = tpu.memref_slice %arg29[%c1_i32] : memref<8x!tpu.dma_semaphore, #tpu.memory_space<semaphore_mem>> -> memref<1x!tpu.dma_semaphore, #tpu.memory_space<semaphore_mem>>
      %120 = tpu.memref_squeeze %119 : memref<1x!tpu.dma_semaphore, #tpu.memory_space<semaphore_mem>> -> memref<!tpu.dma_semaphore, #tpu.memory_space<semaphore_mem>>
      tpu.wait_dma2 semaphore(%120 : memref<!tpu.dma_semaphore, #tpu.memory_space<semaphore_mem>>) src(%arg4 : memref<512x512xbf16, #tpu.memory_space<any>>) dst(%arg22 : memref<512x512xbf16, #tpu.memory_space<vmem>>)
    } else {
    }
    %c0_10 = arith.constant 0 : index
    %c0_11 = arith.constant 0 : index
    %19 = vector.load %arg22[%c0_10, %c0_11] : memref<512x512xbf16, #tpu.memory_space<vmem>>, vector<512x512xbf16>
    %cst_12 = arith.constant dense<0.000000e+00> : vector<16x512xf32>
    %20 = tpu.matmul %16, %19, %cst_12 {dimension_numbers = #tpu.dot_dimension_numbers<[1], [0], [0], [1], [0, 0, 1, 1], [], []>} : vector<16x512xbf16>, vector<512x512xbf16>, vector<16x512xf32> -> vector<16x512xf32>
    %c0_13 = arith.constant 0 : index
    %c0_14 = arith.constant 0 : index
    %21 = vector.load %arg12[%c0_13, %c0_14] : memref<1x512xf32, #tpu.memory_space<vmem>>, vector<1x512xf32>
    %22 = vector.broadcast %21 : vector<1x512xf32> to vector<16x512xf32>
    %23 = arith.addf %20, %22 : vector<16x512xf32>
    %24 = vector.extract_strided_slice %23 {offsets = [0, 0], sizes = [16, 256], strides = [1, 1]} : vector<16x512xf32> to vector<16x256xf32>
    %cst_15 = arith.constant 0.000000e+00 : f32
    %25 = vector.broadcast %cst_15 : f32 to vector<16x256xf32>
    %26 = arith.cmpf ogt, %24, %25 : vector<16x256xf32>
    %cst_16 = arith.constant 0.00999999977 : f32
    %27 = vector.broadcast %cst_16 : f32 to vector<16x256xf32>
    %28 = arith.mulf %27, %24 : vector<16x256xf32>
    %29 = arith.select %26, %24, %28 : vector<16x256xi1>, vector<16x256xf32>
    %30 = vector.extract_strided_slice %23 {offsets = [0, 256], sizes = [16, 256], strides = [1, 1]} : vector<16x512xf32> to vector<16x256xf32>
    %31 = arith.addf %29, %30 : vector<16x256xf32>
    %32 = arith.truncf %31 : vector<16x256xf32> to vector<16x256xbf16>
    %33 = arith.extui %0 : i1 to i32
    %c0_i32_17 = arith.constant 0 : i32
    %34 = arith.cmpi ne, %33, %c0_i32_17 : i32
    scf.if %34 {
      %c2_i32 = arith.constant 2 : i32
      %119 = tpu.memref_slice %arg29[%c2_i32] : memref<8x!tpu.dma_semaphore, #tpu.memory_space<semaphore_mem>> -> memref<1x!tpu.dma_semaphore, #tpu.memory_space<semaphore_mem>>
      %120 = tpu.memref_squeeze %119 : memref<1x!tpu.dma_semaphore, #tpu.memory_space<semaphore_mem>> -> memref<!tpu.dma_semaphore, #tpu.memory_space<semaphore_mem>>
      tpu.wait_dma2 semaphore(%120 : memref<!tpu.dma_semaphore, #tpu.memory_space<semaphore_mem>>) src(%arg5 : memref<256x256xbf16, #tpu.memory_space<any>>) dst(%arg23 : memref<256x256xbf16, #tpu.memory_space<vmem>>)
    } else {
    }
    %c0_18 = arith.constant 0 : index
    %c0_19 = arith.constant 0 : index
    %35 = vector.load %arg23[%c0_18, %c0_19] : memref<256x256xbf16, #tpu.memory_space<vmem>>, vector<256x256xbf16>
    %cst_20 = arith.constant dense<0.000000e+00> : vector<16x256xf32>
    %36 = tpu.matmul %32, %35, %cst_20 {dimension_numbers = #tpu.dot_dimension_numbers<[1], [0], [0], [1], [0, 0, 1, 1], [], []>} : vector<16x256xbf16>, vector<256x256xbf16>, vector<16x256xf32> -> vector<16x256xf32>
    %c0_21 = arith.constant 0 : index
    %c0_22 = arith.constant 0 : index
    %37 = vector.load %arg13[%c0_21, %c0_22] : memref<1x256xf32, #tpu.memory_space<vmem>>, vector<1x256xf32>
    %38 = vector.broadcast %37 : vector<1x256xf32> to vector<16x256xf32>
    %39 = arith.addf %36, %38 : vector<16x256xf32>
    %40 = vector.extract_strided_slice %39 {offsets = [0, 0], sizes = [16, 128], strides = [1, 1]} : vector<16x256xf32> to vector<16x128xf32>
    %cst_23 = arith.constant 0.000000e+00 : f32
    %41 = vector.broadcast %cst_23 : f32 to vector<16x128xf32>
    %42 = arith.cmpf ogt, %40, %41 : vector<16x128xf32>
    %cst_24 = arith.constant 0.00999999977 : f32
    %43 = vector.broadcast %cst_24 : f32 to vector<16x128xf32>
    %44 = arith.mulf %43, %40 : vector<16x128xf32>
    %45 = arith.select %42, %40, %44 : vector<16x128xi1>, vector<16x128xf32>
    %46 = vector.extract_strided_slice %39 {offsets = [0, 128], sizes = [16, 128], strides = [1, 1]} : vector<16x256xf32> to vector<16x128xf32>
    %47 = arith.addf %45, %46 : vector<16x128xf32>
    %48 = arith.truncf %47 : vector<16x128xf32> to vector<16x128xbf16>
    %49 = arith.extui %0 : i1 to i32
    %c0_i32_25 = arith.constant 0 : i32
    %50 = arith.cmpi ne, %49, %c0_i32_25 : i32
    scf.if %50 {
      %c3_i32 = arith.constant 3 : i32
      %119 = tpu.memref_slice %arg29[%c3_i32] : memref<8x!tpu.dma_semaphore, #tpu.memory_space<semaphore_mem>> -> memref<1x!tpu.dma_semaphore, #tpu.memory_space<semaphore_mem>>
      %120 = tpu.memref_squeeze %119 : memref<1x!tpu.dma_semaphore, #tpu.memory_space<semaphore_mem>> -> memref<!tpu.dma_semaphore, #tpu.memory_space<semaphore_mem>>
      tpu.wait_dma2 semaphore(%120 : memref<!tpu.dma_semaphore, #tpu.memory_space<semaphore_mem>>) src(%arg6 : memref<128x256xbf16, #tpu.memory_space<any>>) dst(%arg24 : memref<128x256xbf16, #tpu.memory_space<vmem>>)
    } else {
    }
    %c0_26 = arith.constant 0 : index
    %c0_27 = arith.constant 0 : index
    %51 = vector.load %arg24[%c0_26, %c0_27] : memref<128x256xbf16, #tpu.memory_space<vmem>>, vector<128x256xbf16>
    %cst_28 = arith.constant dense<0.000000e+00> : vector<16x256xf32>
    %52 = tpu.matmul %48, %51, %cst_28 {dimension_numbers = #tpu.dot_dimension_numbers<[1], [0], [0], [1], [0, 0, 1, 1], [], []>} : vector<16x128xbf16>, vector<128x256xbf16>, vector<16x256xf32> -> vector<16x256xf32>
    %c0_29 = arith.constant 0 : index
    %c0_30 = arith.constant 0 : index
    %53 = vector.load %arg14[%c0_29, %c0_30] : memref<1x256xf32, #tpu.memory_space<vmem>>, vector<1x256xf32>
    %54 = vector.broadcast %53 : vector<1x256xf32> to vector<16x256xf32>
    %55 = arith.addf %52, %54 : vector<16x256xf32>
    %56 = vector.extract_strided_slice %55 {offsets = [0, 0], sizes = [16, 128], strides = [1, 1]} : vector<16x256xf32> to vector<16x128xf32>
    %57 = vector.extract_strided_slice %55 {offsets = [0, 128], sizes = [16, 128], strides = [1, 1]} : vector<16x256xf32> to vector<16x128xf32>
    %c0_31 = arith.constant 0 : index
    %c0_32 = arith.constant 0 : index
    %58 = vector.load %arg2[%c0_31, %c0_32] : memref<16x128xf32, #tpu.memory_space<vmem>>, vector<16x128xf32>
    %cst_33 = arith.constant 5.000000e-01 : f32
    %59 = vector.broadcast %cst_33 : f32 to vector<16x128xf32>
    %60 = arith.mulf %59, %57 : vector<16x128xf32>
    %61 = math.exp %60 : vector<16x128xf32>
    %62 = arith.mulf %58, %61 : vector<16x128xf32>
    %63 = arith.addf %56, %62 : vector<16x128xf32>
    %64 = arith.truncf %63 : vector<16x128xf32> to vector<16x128xbf16>
    %65 = arith.extui %0 : i1 to i32
    %c0_i32_34 = arith.constant 0 : i32
    %66 = arith.cmpi ne, %65, %c0_i32_34 : i32
    scf.if %66 {
      %c4_i32 = arith.constant 4 : i32
      %119 = tpu.memref_slice %arg29[%c4_i32] : memref<8x!tpu.dma_semaphore, #tpu.memory_space<semaphore_mem>> -> memref<1x!tpu.dma_semaphore, #tpu.memory_space<semaphore_mem>>
      %120 = tpu.memref_squeeze %119 : memref<1x!tpu.dma_semaphore, #tpu.memory_space<semaphore_mem>> -> memref<!tpu.dma_semaphore, #tpu.memory_space<semaphore_mem>>
      tpu.wait_dma2 semaphore(%120 : memref<!tpu.dma_semaphore, #tpu.memory_space<semaphore_mem>>) src(%arg7 : memref<128x128xbf16, #tpu.memory_space<any>>) dst(%arg25 : memref<128x128xbf16, #tpu.memory_space<vmem>>)
    } else {
    }
    %c0_35 = arith.constant 0 : index
    %c0_36 = arith.constant 0 : index
    %67 = vector.load %arg25[%c0_35, %c0_36] : memref<128x128xbf16, #tpu.memory_space<vmem>>, vector<128x128xbf16>
    %cst_37 = arith.constant dense<0.000000e+00> : vector<16x128xf32>
    %68 = tpu.matmul %64, %67, %cst_37 {dimension_numbers = #tpu.dot_dimension_numbers<[1], [0], [0], [1], [0, 0, 1, 1], [], []>} : vector<16x128xbf16>, vector<128x128xbf16>, vector<16x128xf32> -> vector<16x128xf32>
    %c0_38 = arith.constant 0 : index
    %c0_39 = arith.constant 0 : index
    %69 = vector.load %arg15[%c0_38, %c0_39] : memref<1x128xf32, #tpu.memory_space<vmem>>, vector<1x128xf32>
    %70 = vector.broadcast %69 : vector<1x128xf32> to vector<16x128xf32>
    %71 = arith.addf %68, %70 : vector<16x128xf32>
    %cst_40 = arith.constant 0.000000e+00 : f32
    %72 = vector.broadcast %cst_40 : f32 to vector<16x128xf32>
    %73 = arith.cmpf ogt, %71, %72 : vector<16x128xf32>
    %cst_41 = arith.constant 0.00999999977 : f32
    %74 = vector.broadcast %cst_41 : f32 to vector<16x128xf32>
    %75 = arith.mulf %74, %71 : vector<16x128xf32>
    %76 = arith.select %73, %71, %75 : vector<16x128xi1>, vector<16x128xf32>
    %77 = arith.truncf %76 : vector<16x128xf32> to vector<16x128xbf16>
    %78 = arith.extui %0 : i1 to i32
    %c0_i32_42 = arith.constant 0 : i32
    %79 = arith.cmpi ne, %78, %c0_i32_42 : i32
    scf.if %79 {
      %c5_i32 = arith.constant 5 : i32
      %119 = tpu.memref_slice %arg29[%c5_i32] : memref<8x!tpu.dma_semaphore, #tpu.memory_space<semaphore_mem>> -> memref<1x!tpu.dma_semaphore, #tpu.memory_space<semaphore_mem>>
      %120 = tpu.memref_squeeze %119 : memref<1x!tpu.dma_semaphore, #tpu.memory_space<semaphore_mem>> -> memref<!tpu.dma_semaphore, #tpu.memory_space<semaphore_mem>>
      tpu.wait_dma2 semaphore(%120 : memref<!tpu.dma_semaphore, #tpu.memory_space<semaphore_mem>>) src(%arg8 : memref<128x512xbf16, #tpu.memory_space<any>>) dst(%arg26 : memref<128x512xbf16, #tpu.memory_space<vmem>>)
    } else {
    }
    %c0_43 = arith.constant 0 : index
    %c0_44 = arith.constant 0 : index
    %80 = vector.load %arg26[%c0_43, %c0_44] : memref<128x512xbf16, #tpu.memory_space<vmem>>, vector<128x512xbf16>
    %cst_45 = arith.constant dense<0.000000e+00> : vector<16x512xf32>
    %81 = tpu.matmul %77, %80, %cst_45 {dimension_numbers = #tpu.dot_dimension_numbers<[1], [0], [0], [1], [0, 0, 1, 1], [], []>} : vector<16x128xbf16>, vector<128x512xbf16>, vector<16x512xf32> -> vector<16x512xf32>
    %c0_46 = arith.constant 0 : index
    %c0_47 = arith.constant 0 : index
    %82 = vector.load %arg16[%c0_46, %c0_47] : memref<1x512xf32, #tpu.memory_space<vmem>>, vector<1x512xf32>
    %83 = vector.broadcast %82 : vector<1x512xf32> to vector<16x512xf32>
    %84 = arith.addf %81, %83 : vector<16x512xf32>
    %85 = vector.extract_strided_slice %84 {offsets = [0, 0], sizes = [16, 256], strides = [1, 1]} : vector<16x512xf32> to vector<16x256xf32>
    %cst_48 = arith.constant 0.000000e+00 : f32
    %86 = vector.broadcast %cst_48 : f32 to vector<16x256xf32>
    %87 = arith.cmpf ogt, %85, %86 : vector<16x256xf32>
    %cst_49 = arith.constant 0.00999999977 : f32
    %88 = vector.broadcast %cst_49 : f32 to vector<16x256xf32>
    %89 = arith.mulf %88, %85 : vector<16x256xf32>
    %90 = arith.select %87, %85, %89 : vector<16x256xi1>, vector<16x256xf32>
    %91 = vector.extract_strided_slice %84 {offsets = [0, 256], sizes = [16, 256], strides = [1, 1]} : vector<16x512xf32> to vector<16x256xf32>
    %92 = arith.addf %90, %91 : vector<16x256xf32>
    %93 = arith.truncf %92 : vector<16x256xf32> to vector<16x256xbf16>
    %94 = arith.extui %0 : i1 to i32
    %c0_i32_50 = arith.constant 0 : i32
    %95 = arith.cmpi ne, %94, %c0_i32_50 : i32
    scf.if %95 {
      %c6_i32 = arith.constant 6 : i32
      %119 = tpu.memref_slice %arg29[%c6_i32] : memref<8x!tpu.dma_semaphore, #tpu.memory_space<semaphore_mem>> -> memref<1x!tpu.dma_semaphore, #tpu.memory_space<semaphore_mem>>
      %120 = tpu.memref_squeeze %119 : memref<1x!tpu.dma_semaphore, #tpu.memory_space<semaphore_mem>> -> memref<!tpu.dma_semaphore, #tpu.memory_space<semaphore_mem>>
      tpu.wait_dma2 semaphore(%120 : memref<!tpu.dma_semaphore, #tpu.memory_space<semaphore_mem>>) src(%arg9 : memref<256x1024xbf16, #tpu.memory_space<any>>) dst(%arg27 : memref<256x1024xbf16, #tpu.memory_space<vmem>>)
    } else {
    }
    %c0_51 = arith.constant 0 : index
    %c0_52 = arith.constant 0 : index
    %96 = vector.load %arg27[%c0_51, %c0_52] : memref<256x1024xbf16, #tpu.memory_space<vmem>>, vector<256x1024xbf16>
    %cst_53 = arith.constant dense<0.000000e+00> : vector<16x1024xf32>
    %97 = tpu.matmul %93, %96, %cst_53 {dimension_numbers = #tpu.dot_dimension_numbers<[1], [0], [0], [1], [0, 0, 1, 1], [], []>} : vector<16x256xbf16>, vector<256x1024xbf16>, vector<16x1024xf32> -> vector<16x1024xf32>
    %c0_54 = arith.constant 0 : index
    %c0_55 = arith.constant 0 : index
    %98 = vector.load %arg17[%c0_54, %c0_55] : memref<1x1024xf32, #tpu.memory_space<vmem>>, vector<1x1024xf32>
    %99 = vector.broadcast %98 : vector<1x1024xf32> to vector<16x1024xf32>
    %100 = arith.addf %97, %99 : vector<16x1024xf32>
    %101 = vector.extract_strided_slice %100 {offsets = [0, 0], sizes = [16, 512], strides = [1, 1]} : vector<16x1024xf32> to vector<16x512xf32>
    %cst_56 = arith.constant 0.000000e+00 : f32
    %102 = vector.broadcast %cst_56 : f32 to vector<16x512xf32>
    %103 = arith.cmpf ogt, %101, %102 : vector<16x512xf32>
    %cst_57 = arith.constant 0.00999999977 : f32
    %104 = vector.broadcast %cst_57 : f32 to vector<16x512xf32>
    %105 = arith.mulf %104, %101 : vector<16x512xf32>
    %106 = arith.select %103, %101, %105 : vector<16x512xi1>, vector<16x512xf32>
    %107 = vector.extract_strided_slice %100 {offsets = [0, 512], sizes = [16, 512], strides = [1, 1]} : vector<16x1024xf32> to vector<16x512xf32>
    %108 = arith.addf %106, %107 : vector<16x512xf32>
    %109 = arith.truncf %108 : vector<16x512xf32> to vector<16x512xbf16>
    %110 = arith.extui %0 : i1 to i32
    %c0_i32_58 = arith.constant 0 : i32
    %111 = arith.cmpi ne, %110, %c0_i32_58 : i32
    scf.if %111 {
      %c7_i32 = arith.constant 7 : i32
      %119 = tpu.memref_slice %arg29[%c7_i32] : memref<8x!tpu.dma_semaphore, #tpu.memory_space<semaphore_mem>> -> memref<1x!tpu.dma_semaphore, #tpu.memory_space<semaphore_mem>>
      %120 = tpu.memref_squeeze %119 : memref<1x!tpu.dma_semaphore, #tpu.memory_space<semaphore_mem>> -> memref<!tpu.dma_semaphore, #tpu.memory_space<semaphore_mem>>
      tpu.wait_dma2 semaphore(%120 : memref<!tpu.dma_semaphore, #tpu.memory_space<semaphore_mem>>) src(%arg10 : memref<512x640xbf16, #tpu.memory_space<any>>) dst(%arg28 : memref<512x640xbf16, #tpu.memory_space<vmem>>)
    } else {
    }
    %c0_59 = arith.constant 0 : index
    %c0_60 = arith.constant 0 : index
    %112 = vector.load %arg28[%c0_59, %c0_60] : memref<512x640xbf16, #tpu.memory_space<vmem>>, vector<512x640xbf16>
    %cst_61 = arith.constant dense<0.000000e+00> : vector<16x640xf32>
    %113 = tpu.matmul %109, %112, %cst_61 {dimension_numbers = #tpu.dot_dimension_numbers<[1], [0], [0], [1], [0, 0, 1, 1], [], []>} : vector<16x512xbf16>, vector<512x640xbf16>, vector<16x640xf32> -> vector<16x640xf32>
    %c0_62 = arith.constant 0 : index
    %c0_63 = arith.constant 0 : index
    %114 = vector.load %arg18[%c0_62, %c0_63] : memref<1x640xf32, #tpu.memory_space<vmem>>, vector<1x640xf32>
    %115 = vector.broadcast %114 : vector<1x640xf32> to vector<16x640xf32>
    %116 = arith.addf %113, %115 : vector<16x640xf32>
    %c0_64 = arith.constant 0 : index
    %c0_65 = arith.constant 0 : index
    %117 = vector.load %arg19[%c0_64, %c0_65] : memref<16x640xf32, #tpu.memory_space<vmem>>, vector<16x640xf32>
    tpu.vector_store %arg19[%c0_64, %c0_65], %116 {strides = array<i32>} : memref<16x640xf32, #tpu.memory_space<vmem>>, vector<16x640xf32>,
    %c0_66 = arith.constant 0 : index
    %c0_67 = arith.constant 0 : index
    %118 = vector.load %arg20[%c0_66, %c0_67] : memref<16x256xf32, #tpu.memory_space<vmem>>, vector<16x256xf32>
    tpu.vector_store %arg20[%c0_66, %c0_67], %55 {strides = array<i32>} : memref<16x256xf32, #tpu.memory_space<vmem>>, vector<16x256xf32>,
    return
  }
  func.func @transform_0(%arg0: i32) -> (i32, i32) {
    %c0_i32 = arith.constant 0 : i32
    %c0_i32_0 = arith.constant 0 : i32
    return %arg0, %c0_i32 : i32, i32
  }
  func.func @transform_1(%arg0: i32) -> (i32, i32) {
    %c0_i32 = arith.constant 0 : i32
    %c0_i32_0 = arith.constant 0 : i32
    return %arg0, %c0_i32 : i32, i32
  }
  func.func @transform_10(%arg0: i32) -> (i32, i32) {
    %c0_i32 = arith.constant 0 : i32
    %c0_i32_0 = arith.constant 0 : i32
    %c0_i32_1 = arith.constant 0 : i32
    return %c0_i32, %c0_i32_0 : i32, i32
  }
  func.func @transform_11(%arg0: i32) -> (i32, i32) {
    %c0_i32 = arith.constant 0 : i32
    %c0_i32_0 = arith.constant 0 : i32
    %c0_i32_1 = arith.constant 0 : i32
    return %c0_i32, %c0_i32_0 : i32, i32
  }
  func.func @transform_12(%arg0: i32) -> (i32, i32) {
    %c0_i32 = arith.constant 0 : i32
    %c0_i32_0 = arith.constant 0 : i32
    %c0_i32_1 = arith.constant 0 : i32
    return %c0_i32, %c0_i32_0 : i32, i32
  }
  func.func @transform_13(%arg0: i32) -> (i32, i32) {
    %c0_i32 = arith.constant 0 : i32
    %c0_i32_0 = arith.constant 0 : i32
    %c0_i32_1 = arith.constant 0 : i32
    return %c0_i32, %c0_i32_0 : i32, i32
  }
  func.func @transform_14(%arg0: i32) -> (i32, i32) {
    %c0_i32 = arith.constant 0 : i32
    %c0_i32_0 = arith.constant 0 : i32
    %c0_i32_1 = arith.constant 0 : i32
    return %c0_i32, %c0_i32_0 : i32, i32
  }
  func.func @transform_15(%arg0: i32) -> (i32, i32) {
    %c0_i32 = arith.constant 0 : i32
    %c0_i32_0 = arith.constant 0 : i32
    %c0_i32_1 = arith.constant 0 : i32
    return %c0_i32, %c0_i32_0 : i32, i32
  }
  func.func @transform_16(%arg0: i32) -> (i32, i32) {
    %c0_i32 = arith.constant 0 : i32
    %c0_i32_0 = arith.constant 0 : i32
    %c0_i32_1 = arith.constant 0 : i32
    return %c0_i32, %c0_i32_0 : i32, i32
  }
  func.func @transform_17(%arg0: i32) -> (i32, i32) {
    %c0_i32 = arith.constant 0 : i32
    %c0_i32_0 = arith.constant 0 : i32
    %c0_i32_1 = arith.constant 0 : i32
    return %c0_i32, %c0_i32_0 : i32, i32
  }
  func.func @transform_18(%arg0: i32) -> (i32, i32) {
    %c0_i32 = arith.constant 0 : i32
    %c0_i32_0 = arith.constant 0 : i32
    return %arg0, %c0_i32 : i32, i32
  }
  func.func @transform_19(%arg0: i32) -> (i32, i32) {
    %c0_i32 = arith.constant 0 : i32
    %c0_i32_0 = arith.constant 0 : i32
    return %arg0, %c0_i32 : i32, i32
  }
}

</mosaic_0001>

<bundles_post_ra>
// kernel: tpu_custom_call.1
= control target key start
LH: loop header
LB: loop body
LE: loop exit
PB: predicated region body
PF: predicated region fallthrough
CT: control target
= control target key end

     0   :  { %s3382_s0 = inlined_call_operand.hbm [shape: bf16[16,640], index: 0, kind: input, shape index: {}]   ;;  %s3383_s1 = inlined_call_operand.hbm [shape: f32[16,128], index: 1, kind: input, shape index: {}]   ;;  %s3384_s2 = inlined_call_operand.hbm [shape: bf16[640,512], index: 2, kind: input, shape index: {}]   ;;  %s3385_s3 = inlined_call_operand.hbm [shape: bf16[512,512], index: 3, kind: input, shape index: {}]   ;;  %s3386_s4 = inlined_call_operand.hbm [shape: bf16[256,256], index: 4, kind: input, shape index: {}]   ;;  %s3387_s5 = inlined_call_operand.hbm [shape: bf16[128,256], index: 5, kind: input, shape index: {}]   ;;  %s3388_s6 = inlined_call_operand.hbm [shape: bf16[128,128], index: 6, kind: input, shape index: {}]   ;;  %s3389_s7 = inlined_call_operand.hbm [shape: bf16[128,512], index: 7, kind: input, shape index: {}]   ;;  %s3390_s8 = inlined_call_operand.hbm [shape: bf16[256,1024], index: 8, kind: input, shape index: {}]   ;;  %s3391_s9 = inlined_call_operand.hbm [shape: bf16[512,640], index: 9, kind: input, shape index: {}]   ;;  %s3392_s10 = inlined_call_operand.vmem [shape: f32[1,512], index: 10, kind: input, shape index: {}]   ;;  %s3393_s11 = inlined_call_operand.vmem [shape: f32[1,512], index: 11, kind: input, shape index: {}]   ;;  %s3394_s12 = inlined_call_operand.vmem [shape: f32[1,256], index: 12, kind: input, shape index: {}]   ;;  %s3395_s13 = inlined_call_operand.vmem [shape: f32[1,256], index: 13, kind: input, shape index: {}]   ;;  %s3396_s14 = inlined_call_operand.vmem [shape: f32[1,128], index: 14, kind: input, shape index: {}]   ;;  %s3397_s15 = inlined_call_operand.vmem [shape: f32[1,512], index: 15, kind: input, shape index: {}]   ;;  %s3398_s16 = inlined_call_operand.vmem [shape: f32[1,1024], index: 16, kind: input, shape index: {}]   ;;  %s3399_s17 = inlined_call_operand.vmem [shape: f32[1,640], index: 17, kind: input, shape index: {}]   ;;  %s3400_s18 = inlined_call_operand.hbm [shape: f32[16,640], index: 18, kind: output, shape index: {0}]   ;;  %s3401_s19 = inlined_call_operand.hbm [shape: f32[16,256], index: 19, kind: output, shape index: {1}]  }
   0x1   :  { %3405 = sst [smem:[#allocation49_spill]] %s3382_s0 }
   0x2   :  { %3406 = sst [smem:[#allocation50_spill]] %s3383_s1 }
   0x3   :  { %3407 = sst [smem:[#allocation51_spill]] %s3384_s2 }
   0x4   :  { %3408 = sst [smem:[#allocation52_spill]] %s3385_s3 }
   0x5   :  { %3409 = sst [smem:[#allocation53_spill]] %s3399_s17 }
   0x6   :  { %3410 = sst [smem:[#allocation54_spill]] %s3400_s18 }
   0x7   :  { %25 = vsyncpa [#allocation12], 0 }
   0x8   :  { %26 = vsyncpa [#allocation15], 0 }
   0x9   :  { %27 = vsyncpa [#allocation13], 0 }
   0xa   :  { %28 = vsyncpa [#allocation18], 0  ;;  %s2906_s0 = smov [#allocation11]   ;;  %s3411_s1 = sld [smem:[#allocation49_spill]] }
   0xb   :  { %s34_s30 = sshll.u32 %s2906_s0, 4  ;;  %s35_s30 = int_to_ptr.vmem [resolvable:$true] %s34_s30 }
  0x10   :  { %s2772_s22 = scalar_lea.hbm %s3411_s1, 640 }
  0x11   :  { %p2773_p0 = scmp.ne.s32.totalorder %s3411_s1, %s2772_s22  ;;  %p2776_p1 = scmp.lt.u32.totalorder %s2772_s22, %s3411_s1 }
  0x13   :  { %p2778_p2 = pnand %p2776_p1, %p2773_p0 }
  0x15   :  { %2781 = shalt.err (!%p2778_p2)
}
  0x16   :  { %s2782_s3 = scalar_lea.vmem %s35_s30, 640  ;;  %p2787_p4 = scmp.lt.s32.totalorder %s35_s30, %s35_s30 }
  0x17   :  { %p2783_p3 = scmp.ne.s32.totalorder %s35_s30, %s2782_s3  ;;  %p2788_p5 = scmp.lt.s32.totalorder %s2782_s3, %s2782_s3 }
  0x19   :  { %p2789_p6 = por %p2788_p5, %p2787_p4 }
  0x1b   :  { %p2790_p7 = pnand %p2789_p6, %p2783_p3 }
  0x1d   :  { %2793 = shalt.err (!%p2790_p7)
}
  0x1e   :  { %s2907_s26 = smov 320   ;;  %s2908_s27 = smov 20  }
  0x1f   :  { %40 = dma.hbm_to_vmem [thread:$0]  %s3411_s1, 640, %s35_s30, [#allocation12], %s2907_s26, %s2907_s26, %s2908_s27  }
  0x20   :  { %s2909_s0 = smov [#allocation14]   ;;  %s3412_s2 = sld [smem:[#allocation50_spill]] }
  0x21   :  { %s46_s20 = sshll.u32 %s2909_s0, 4  ;;  %s47_s20 = int_to_ptr.vmem [resolvable:$true] %s46_s20 }
  0x26   :  { %s2794_s23 = scalar_lea.hbm %s3412_s2, 256 }
  0x27   :  { %p2795_p8 = scmp.ne.s32.totalorder %s3412_s2, %s2794_s23  ;;  %p2798_p9 = scmp.lt.u32.totalorder %s2794_s23, %s3412_s2 }
  0x29   :  { %p2800_p10 = pnand %p2798_p9, %p2795_p8 }
  0x2b   :  { %2803 = shalt.err (!%p2800_p10)
}
  0x2c   :  { %s2804_s17 = scalar_lea.vmem %s47_s20, 256  ;;  %p2809_p12 = scmp.lt.s32.totalorder %s47_s20, %s47_s20 }
  0x2d   :  { %p2805_p11 = scmp.ne.s32.totalorder %s47_s20, %s2804_s17  ;;  %p2810_p13 = scmp.lt.s32.totalorder %s2804_s17, %s2804_s17 }
  0x2f   :  { %p2811_p0 = por %p2810_p13, %p2809_p12 }
  0x31   :  { %p2812_p1 = pnand %p2811_p0, %p2805_p11 }
  0x33   :  { %2815 = shalt.err (!%p2812_p1)
}
  0x34   :  { %s2910_s30 = smov 128   ;;  %s2911_s1 = smov 8  }
  0x35   :  { %52 = dma.hbm_to_vmem [thread:$0]  %s3412_s2, 256, %s47_s20, [#allocation15], %s2910_s30, %s2910_s30, %s2911_s1  }
  0x36   :  { %2882 = dma.done.wait [#allocation12], 640  }
  0x37   :  { %2883 = vsyncadd [#allocation12], 4294966656 }
  0x38   :  { %2884 = dma.done.wait [#allocation15], 256  }
  0x39   :  { %2885 = vsyncadd [#allocation15], 4294967040 }
  0x3a   :  { %s84_s18 = sld [smem:[#allocation0]]   ;;  %s2912_s28 = smov [#allocation2]  }
  0x3b   :  { %s92_s29 = sshll.u32 %s2912_s28, 4  ;;  %s2913_s0 = smov 512   ;;  %s93_s29 = int_to_ptr.vmem [resolvable:$true] %s92_s29 }
  0x3c   :  { %96 = sst [smem:[#allocation20]] %s2913_s0  ;;  %s2914_s17 = smov 4  }
  0x3d   :  { %98 = sst [smem:[#allocation20 + $0x1]] %s2913_s0  ;;  %s2915_s21 = smov 64  }
  0x3e   :  { %100 = sst [smem:[#allocation20 + $0x2]] %s2914_s17  ;;  %s2916_s22 = smov 128  }
  0x3f   :  { %102 = sst [smem:[#allocation20 + $0x3]] %s2915_s21  ;;  %s2917_s23 = smov 2  }
  0x40   :  { %s2563_s20 = sshll.u32 %s84_s18, 26  ;;  %104 = sst [smem:[#allocation20 + $0x4]] %s2916_s22 }
  0x41   :  { %s3083_s2 = sadd.s32 134217728, %s2563_s20  ;;  %106 = sst [smem:[#allocation20 + $0x5]] %s2917_s23 }
  0x42   :  { %s2918_s24 = smov 256   ;;  %110 = sst [smem:[#allocation20 + $0x7]] %s2915_s21 }
  0x43   :  { %108 = sst [smem:[#allocation20 + $0x6]] %s2918_s24  ;;  %s2919_s25 = smov [#allocation10]  }
  0x44   :  { %112 = sst [smem:[#allocation20 + $0x8]] %s2914_s17  ;;  %s2920_s3 = smov [#allocation19]  }
  0x45   :  { %s3413_s26 = sld [smem:[#allocation51_spill]]  ;;  %s2921_s27 = smov [#allocation3]  }
  0x46   :  { %s127_s18 = sshll.u32 %s2921_s27, 4  ;;  %s2922_s28 = smov [#allocation10 + $0x1]   ;;  %s128_s18 = int_to_ptr.vmem [resolvable:$true] %s127_s18 }
  0x47   :  { %s2924_s30 = smov [#allocation4]   ;;  %s2926_s27 = smov [#allocation23]  }
  0x48   :  { %s162_s1 = sshll.u32 %s2924_s30, 4  ;;  %s2930_s30 = smov [#allocation25]   ;;  %s163_s1 = int_to_ptr.vmem [resolvable:$true] %s162_s1 }
  0x4b   :  { %114 = dma.general %s3413_s26, 20480, %s93_s29, %s2919_s25, %s2920_s3, [#allocation20], %s3083_s2, 0  }
  0x4c   :  { %131 = sst [smem:[#allocation22]] %s2913_s0  ;;  %s2923_s29 = smov [#allocation21]  }
  0x4d   :  { %133 = sst [smem:[#allocation22 + $0x1]] %s2913_s0  ;;  %s3414_s3 = sld [smem:[#allocation52_spill]] }
  0x4e   :  { %135 = sst [smem:[#allocation22 + $0x2]] %s2914_s17  ;;  %s2925_s26 = smov [#allocation10 + $0x2]  }
  0x4f   :  { %137 = sst [smem:[#allocation22 + $0x3]] %s2915_s21 }
  0x50   :  { %139 = sst [smem:[#allocation22 + $0x4]] %s2916_s22 }
  0x51   :  { %141 = sst [smem:[#allocation22 + $0x5]] %s2917_s23 }
  0x52   :  { %143 = sst [smem:[#allocation22 + $0x6]] %s2918_s24 }
  0x53   :  { %145 = sst [smem:[#allocation22 + $0x7]] %s2915_s21 }
  0x54   :  { %147 = sst [smem:[#allocation22 + $0x8]] %s2914_s17 }
  0x55   :  { %149 = dma.general %s3414_s3, 16384, %s128_s18, %s2922_s28, %s2923_s29, [#allocation22], %s3083_s2, 0  }
  0x56   :  { %166 = sst [smem:[#allocation24]] %s2918_s24  ;;  %s2927_s29 = smov [#allocation5]  }
  0x57   :  { %168 = sst [smem:[#allocation24 + $0x1]] %s2918_s24  ;;  %s197_s20 = sshll.u32 %s2927_s29, 4  ;;  %s198_s20 = int_to_ptr.vmem [resolvable:$true] %s197_s20 }
  0x58   :  { %170 = sst [smem:[#allocation24 + $0x2]] %s2917_s23  ;;  %s2929_s3 = smov [#allocation10 + $0x3]  }
  0x59   :  { %172 = sst [smem:[#allocation24 + $0x3]] %s2915_s21  ;;  %s2816_s29 = scalar_lea.hbm %s3388_s6, 1024 }
  0x5a   :  { %174 = sst [smem:[#allocation24 + $0x4]] %s2916_s22  ;;  %p2817_p2 = scmp.ne.s32.totalorder %s3388_s6, %s2816_s29 }
  0x5b   :  { %176 = sst [smem:[#allocation24 + $0x5]] %s2917_s23  ;;  %p2820_p3 = scmp.lt.u32.totalorder %s2816_s29, %s3388_s6 }
  0x5c   :  { %178 = sst [smem:[#allocation24 + $0x6]] %s2916_s22 }
  0x5d   :  { %180 = sst [smem:[#allocation24 + $0x7]] %s2915_s21  ;;  %p2822_p4 = pnand %p2820_p3, %p2817_p2 }
  0x5e   :  { %182 = sst [smem:[#allocation24 + $0x8]] %s2914_s17 }
  0x5f   :  { %184 = dma.general %s3386_s4, 4096, %s163_s1, %s2925_s26, %s2926_s27, [#allocation24], %s3083_s2, 0  }
  0x60   :  { %201 = sst [smem:[#allocation26]] %s2918_s24  ;;  %s2928_s4 = smov [#allocation6]  }
  0x61   :  { %203 = sst [smem:[#allocation26 + $0x1]] %s2918_s24  ;;  %s228_s25 = sshll.u32 %s2928_s4, 4  ;;  %s229_s25 = int_to_ptr.vmem [resolvable:$true] %s228_s25 }
  0x62   :  { %205 = sst [smem:[#allocation26 + $0x2]] %s2917_s23  ;;  %s2931_s27 = smov [#allocation7]  }
  0x63   :  { %207 = sst [smem:[#allocation26 + $0x3]] %s2915_s21  ;;  %s3133_s18 = sshll.u32 %s2931_s27, 4  ;;  %s245_s18 = int_to_ptr.vmem [resolvable:$true] %s3133_s18 }
  0x64   :  { %209 = sst [smem:[#allocation26 + $0x4]] %s2916_s22 }
  0x65   :  { %211 = sst [smem:[#allocation26 + $0x5]] %s2917_s23 }
  0x66   :  { %213 = sst [smem:[#allocation26 + $0x6]] %s2916_s22 }
  0x67   :  { %215 = sst [smem:[#allocation26 + $0x7]] %s2915_s21 }
  0x68   :  { %217 = sst [smem:[#allocation26 + $0x8]] %s2914_s17 }
  0x69   :  { %219 = dma.general %s3387_s5, 2048, %s198_s20, %s2929_s3, %s2930_s30, [#allocation26], %s3083_s2, 0  }
  0x6a   :  { %248 = sst [smem:[#allocation32]] %s2913_s0 }
  0x6b   :  { %250 = sst [smem:[#allocation32 + $0x1]] %s2913_s0 }
  0x6c   :  { %252 = sst [smem:[#allocation32 + $0x2]] %s2914_s17 }
  0x6d   :  { %254 = sst [smem:[#allocation32 + $0x3]] %s2915_s21 }
  0x6e   :  { %256 = sst [smem:[#allocation32 + $0x4]] %s2916_s22 }
  0x6f   :  { %258 = sst [smem:[#allocation32 + $0x5]] %s2917_s23 }
  0x70   :  { %260 = sst [smem:[#allocation32 + $0x6]] %s2918_s24 }
  0x71   :  { %262 = sst [smem:[#allocation32 + $0x7]] %s2915_s21 }
  0x72   :  { %264 = sst [smem:[#allocation32 + $0x8]] %s2914_s17 }
  0x73   :  { %2825 = shalt.err (!%p2822_p4)  }
  0x74   :  { %s2826_s1 = scalar_lea.vmem %s229_s25, 1024  ;;  %p2831_p6 = scmp.lt.s32.totalorder %s229_s25, %s229_s25 }
  0x75   :  { %p2827_p5 = scmp.ne.s32.totalorder %s229_s25, %s2826_s1  ;;  %p2832_p7 = scmp.lt.s32.totalorder %s2826_s1, %s2826_s1 }
  0x77   :  { %p2833_p8 = por %p2832_p7, %p2831_p6 }
  0x79   :  { %p2834_p9 = pnand %p2833_p8, %p2827_p5 }
  0x7b   :  { %2837 = shalt.err (!%p2834_p9)  }
  0x7c   :  { %231 = dma.hbm_to_vmem [thread:$0]  %s3388_s6, 1024, %s229_s25, [#allocation10 + $0x4] }
  0x7d   :  { %s2932_s27 = smov [#allocation10 + $0x5]   ;;  %s2933_s5 = smov [#allocation31]  }
  0x7e   :  { %266 = dma.general %s3389_s7, 4096, %s245_s18, %s2932_s27, %s2933_s5, [#allocation32], %s3083_s2, 0  }
  0x7f   :  { %s2934_s29 = smov 1024   ;;  %s2935_s4 = smov [#allocation8]  }
  0x80   :  { %283 = sst [smem:[#allocation34]] %s2934_s29  ;;  %s279_s3 = sshll.u32 %s2935_s4, 4  ;;  %s280_s3 = int_to_ptr.vmem [resolvable:$true] %s279_s3 }
  0x81   :  { %285 = sst [smem:[#allocation34 + $0x1]] %s2934_s29  ;;  %s2936_s30 = smov 8  }
  0x82   :  { %287 = sst [smem:[#allocation34 + $0x2]] %s2936_s30  ;;  %s2937_s6 = smov [#allocation10 + $0x6]  }
  0x83   :  { %289 = sst [smem:[#allocation34 + $0x3]] %s2915_s21  ;;  %s2938_s7 = smov [#allocation33]  }
  0x84   :  { %291 = sst [smem:[#allocation34 + $0x4]] %s2916_s22  ;;  %s2939_s1 = smov 640  }
  0x85   :  { %293 = sst [smem:[#allocation34 + $0x5]] %s2917_s23  ;;  %s2940_s24 = smov [#allocation9]  }
  0x86   :  { %295 = sst [smem:[#allocation34 + $0x6]] %s2913_s0  ;;  %s314_s26 = sshll.u32 %s2940_s24, 4  ;;  %s315_s26 = int_to_ptr.vmem [resolvable:$true] %s314_s26 }
  0x87   :  { %297 = sst [smem:[#allocation34 + $0x7]] %s2915_s21  ;;  %s2941_s27 = smov 5  }
  0x88   :  { %299 = sst [smem:[#allocation34 + $0x8]] %s2914_s17  ;;  %s2942_s0 = smov 320  }
  0x89   :  { %301 = dma.general %s3390_s8, 16384, %s280_s3, %s2937_s6, %s2938_s7, [#allocation34], %s3083_s2, 0  }
  0x8a   :  { %318 = sst [smem:[#allocation36]] %s2939_s1  ;;  %s2943_s8 = smov [#allocation10 + $0x7]  }
  0x8b   :  { %320 = sst [smem:[#allocation36 + $0x1]] %s2939_s1  ;;  %s2944_s5 = smov [#allocation35]  }
  0x8c   :  { %322 = sst [smem:[#allocation36 + $0x2]] %s2941_s27 }
  0x8d   :  { %324 = sst [smem:[#allocation36 + $0x3]] %s2915_s21 }
  0x8e   :  { %326 = sst [smem:[#allocation36 + $0x4]] %s2916_s22 }
  0x8f   :  { %328 = sst [smem:[#allocation36 + $0x5]] %s2917_s23 }
  0x90   :  { %330 = sst [smem:[#allocation36 + $0x6]] %s2942_s0 }
  0x91   :  { %332 = sst [smem:[#allocation36 + $0x7]] %s2915_s21 }
  0x92   :  { %334 = sst [smem:[#allocation36 + $0x8]] %s2914_s17 }
  0x93   :  { %336 = dma.general %s3391_s9, 20480, %s315_s26, %s2943_s8, %s2944_s5, [#allocation36], %s3083_s2, 0  }
  0x94   :  { %v3179_v0 = vld [vmem:[#allocation11] sm:$0xff]  ;;  %v3181_v1 = vld [vmem:[#allocation11 + $0x8] sm:$0xff]  ;;  %v3183_v2 = vld [vmem:[#allocation11 + $0x10] sm:$0xf] }
  0x95   :  { %v3185_v3 = vld [vmem:[#allocation11 + $0x14] sm:$0xff]  ;;  %v3187_v4 = vld [vmem:[#allocation11 + $0x1c] sm:$0xff]  ;;  %v3189_v5 = vld [vmem:[#allocation11 + $0x24] sm:$0xf] }
  0x96   :  { %2886 = dma.done.wait [#allocation10], 20480 }
  0x97   :  { %2887 = vsyncadd [#allocation10], 4294946816  ;;  %v2578_v6 = vcombine.high %v3179_v0, %v3185_v3  ;;  %v351_v7 = vld [vmem:[#allocation2 + $0x8] sm:$0xff]  ;;  %v353_v8 = vld [vmem:[#allocation2 + $0x18] sm:$0xff] }
  0x98   :  { %v350_v9 = vld [vmem:[#allocation2] sm:$0xff]  ;;  %558 = vmatprep.subr.bf16.mxu0 %v351_v7  ;;  %687 = vmatprep.subr.bf16.mxu1 %v353_v8  ;;  %v352_v10 = vld [vmem:[#allocation2 + $0x10] sm:$0xff]  ;;  %v355_v11 = vld [vmem:[#allocation2 + $0x28] sm:$0xff] }
  0x99   :  { %590 = vmatprep.mubr.bf16.mxu0 %v2578_v6  ;;  %719 = vmatprep.mubr.bf16.mxu1 %v2578_v6  ;;  %v357_v12 = vld [vmem:[#allocation2 + $0x38] sm:$0xff]  ;;  %v354_v13 = vld [vmem:[#allocation2 + $0x20] sm:$0xff]  ;;  %v356_v14 = vld [vmem:[#allocation2 + $0x30] sm:$0xff] }
  0x9a   :  { %559 = vmatpush1.bf16.msra.mxu0 %v350_v9  ;;  %688 = vmatpush1.bf16.msra.mxu1 %v352_v10  ;;  %v359_v15 = vld [vmem:[#allocation2 + $0x48] sm:$0xff]  ;;  %v361_v16 = vld [vmem:[#allocation2 + $0x58] sm:$0xff]  ;;  %v358_v17 = vld [vmem:[#allocation2 + $0x40] sm:$0xff] }
  0x9b   :  { %560 = vmatprep.subr.bf16.mxu0 %v355_v11  ;;  %689 = vmatprep.subr.bf16.mxu1 %v357_v12  ;;  %v360_v18 = vld [vmem:[#allocation2 + $0x50] sm:$0xff]  ;;  %v363_v19 = vld [vmem:[#allocation2 + $0x68] sm:$0xff]  ;;  %v365_v20 = vld [vmem:[#allocation2 + $0x78] sm:$0xff] }
  0x9c   :  { %v362_v21 = vld [vmem:[#allocation2 + $0x60] sm:$0xff]  ;;  %v364_v22 = vld [vmem:[#allocation2 + $0x70] sm:$0xff]  ;;  %v367_v23 = vld [vmem:[#allocation2 + $0x88] sm:$0xff] }
  0x9d   :  { %v369_v24 = vld [vmem:[#allocation2 + $0x98] sm:$0xff]  ;;  %v366_v25 = vld [vmem:[#allocation2 + $0x80] sm:$0xff]  ;;  %v368_v26 = vld [vmem:[#allocation2 + $0x90] sm:$0xff] }
  0x9e   :  { %561 = vmatpush1.bf16.msra.mxu0 %v354_v13  ;;  %690 = vmatpush1.bf16.msra.mxu1 %v356_v14  ;;  %v371_v27 = vld [vmem:[#allocation2 + $0xa8] sm:$0xff]  ;;  %v373_v28 = vld [vmem:[#allocation2 + $0xb8] sm:$0xff]  ;;  %v370_v29 = vld [vmem:[#allocation2 + $0xa0] sm:$0xff] }
  0x9f   :  { %562 = vmatprep.subr.bf16.mxu0 %v359_v15  ;;  %691 = vmatprep.subr.bf16.mxu1 %v361_v16  ;;  %v372_v30 = vld [vmem:[#allocation2 + $0xb0] sm:$0xff]  ;;  %v375_v31 = vld [vmem:[#allocation2 + $0xc8] sm:$0xff]  ;;  %v377_v32 = vld [vmem:[#allocation2 + $0xd8] sm:$0xff]  ;;  %v2577_v15 = vcombine.low %v3179_v0, %v3185_v3 }
  0xa0   :  { %v374_v33 = vld [vmem:[#allocation2 + $0xc0] sm:$0xff]  ;;  %v376_v34 = vld [vmem:[#allocation2 + $0xd0] sm:$0xff]  ;;  %v379_v35 = vld [vmem:[#allocation2 + $0xe8] sm:$0xff] }
  0xa1   :  { %v381_v36 = vld [vmem:[#allocation2 + $0xf8] sm:$0xff]  ;;  %v378_v37 = vld [vmem:[#allocation2 + $0xe0] sm:$0xff]  ;;  %v380_v38 = vld [vmem:[#allocation2 + $0xf0] sm:$0xff] }
  0xa2   :  { %563 = vmatpush1.bf16.msra.mxu0 %v358_v17  ;;  %692 = vmatpush1.bf16.msra.mxu1 %v360_v18  ;;  %v383_v39 = vld [vmem:[#allocation2 + $0x108] sm:$0xff]  ;;  %v385_v40 = vld [vmem:[#allocation2 + $0x118] sm:$0xff]  ;;  %v382_v41 = vld [vmem:[#allocation2 + $0x100] sm:$0xff] }
  0xa3   :  { %564 = vmatprep.subr.bf16.mxu0 %v363_v19  ;;  %693 = vmatprep.subr.bf16.mxu1 %v365_v20  ;;  %v384_v42 = vld [vmem:[#allocation2 + $0x110] sm:$0xff]  ;;  %v387_v43 = vld [vmem:[#allocation2 + $0x128] sm:$0xff]  ;;  %v389_v44 = vld [vmem:[#allocation2 + $0x138] sm:$0xff]  ;;  %v2580_v20 = vcombine.high %v3181_v1, %v3187_v4 }
  0xa4   :  { %v386_v45 = vld [vmem:[#allocation2 + $0x120] sm:$0xff]  ;;  %v388_v46 = vld [vmem:[#allocation2 + $0x130] sm:$0xff]  ;;  %v391_v47 = vld [vmem:[#allocation2 + $0x148] sm:$0xff] }
  0xa5   :  { %v393_v48 = vld [vmem:[#allocation2 + $0x158] sm:$0xff]  ;;  %v390_v49 = vld [vmem:[#allocation2 + $0x140] sm:$0xff]  ;;  %v392_v50 = vld [vmem:[#allocation2 + $0x150] sm:$0xff] }
  0xa6   :  { %565 = vmatpush1.bf16.msra.mxu0 %v362_v21  ;;  %694 = vmatpush1.bf16.msra.mxu1 %v364_v22  ;;  %v395_v51 = vld [vmem:[#allocation2 + $0x168] sm:$0xff]  ;;  %v397_v52 = vld [vmem:[#allocation2 + $0x178] sm:$0xff]  ;;  %v394_v53 = vld [vmem:[#allocation2 + $0x160] sm:$0xff] }
  0xa7   :  { %566 = vmatprep.subr.bf16.mxu0 %v367_v23  ;;  %695 = vmatprep.subr.bf16.mxu1 %v369_v24  ;;  %v396_v54 = vld [vmem:[#allocation2 + $0x170] sm:$0xff]  ;;  %v399_v55 = vld [vmem:[#allocation2 + $0x188] sm:$0xff]  ;;  %v401_v56 = vld [vmem:[#allocation2 + $0x198] sm:$0xff] }
  0xa8   :  { %v398_v57 = vld [vmem:[#allocation2 + $0x180] sm:$0xff]  ;;  %v400_v58 = vld [vmem:[#allocation2 + $0x190] sm:$0xff]  ;;  %v403_v59 = vld [vmem:[#allocation2 + $0x1a8] sm:$0xff] }
  0xa9   :  { %v405_v60 = vld [vmem:[#allocation2 + $0x1b8] sm:$0xff]  ;;  %v402_v61 = vld [vmem:[#allocation2 + $0x1a0] sm:$0xff]  ;;  %v404_v62 = vld [vmem:[#allocation2 + $0x1b0] sm:$0xff] }
  0xaa   :  { %567 = vmatpush1.bf16.msra.mxu0 %v366_v25  ;;  %696 = vmatpush1.bf16.msra.mxu1 %v368_v26  ;;  %v407_v63 = vld [vmem:[#allocation2 + $0x1c8] sm:$0xff]  ;;  %v409_v6 = vld [vmem:[#allocation2 + $0x1d8] sm:$0xff]  ;;  %v406_v7 = vld [vmem:[#allocation2 + $0x1c0] sm:$0xff] }
  0xab   :  { %568 = vmatprep.subr.bf16.mxu0 %v371_v27  ;;  %697 = vmatprep.subr.bf16.mxu1 %v373_v28  ;;  %v408_v8 = vld [vmem:[#allocation2 + $0x1d0] sm:$0xff]  ;;  %v411_v9 = vld [vmem:[#allocation2 + $0x1e8] sm:$0xff]  ;;  %v413_v10 = vld [vmem:[#allocation2 + $0x1f8] sm:$0xff] }
  0xac   :  { %v410_v11 = vld [vmem:[#allocation2 + $0x1e0] sm:$0xff]  ;;  %v412_v12 = vld [vmem:[#allocation2 + $0x1f0] sm:$0xff]  ;;  %v415_v13 = vld [vmem:[#allocation2 + $0x208] sm:$0xff] }
  0xad   :  { %v417_v14 = vld [vmem:[#allocation2 + $0x218] sm:$0xff]  ;;  %v414_v16 = vld [vmem:[#allocation2 + $0x200] sm:$0xff]  ;;  %v416_v17 = vld [vmem:[#allocation2 + $0x210] sm:$0xff] }
  0xae   :  { %569 = vmatpush1.bf16.msra.mxu0 %v370_v29  ;;  %698 = vmatpush1.bf16.msra.mxu1 %v372_v30  ;;  %v419_v18 = vld [vmem:[#allocation2 + $0x228] sm:$0xff]  ;;  %v421_v19 = vld [vmem:[#allocation2 + $0x238] sm:$0xff]  ;;  %v418_v21 = vld [vmem:[#allocation2 + $0x220] sm:$0xff] }
  0xaf   :  { %570 = vmatprep.subr.bf16.mxu0 %v375_v31  ;;  %699 = vmatprep.subr.bf16.mxu1 %v377_v32  ;;  %v420_v22 = vld [vmem:[#allocation2 + $0x230] sm:$0xff]  ;;  %v423_v0 = vld [vmem:[#allocation2 + $0x248] sm:$0xff]  ;;  %v425_v3 = vld [vmem:[#allocation2 + $0x258] sm:$0xff] }
  0xb0   :  { %v422_v23 = vld [vmem:[#allocation2 + $0x240] sm:$0xff]  ;;  %v424_v24 = vld [vmem:[#allocation2 + $0x250] sm:$0xff]  ;;  %v427_v25 = vld [vmem:[#allocation2 + $0x268] sm:$0xff] }
  0xb1   :  { %v429_v26 = vld [vmem:[#allocation2 + $0x278] sm:$0xff]  ;;  %v426_v27 = vld [vmem:[#allocation2 + $0x260] sm:$0xff]  ;;  %v428_v28 = vld [vmem:[#allocation2 + $0x270] sm:$0xff] }
  0xb2   :  { %571 = vmatpush1.bf16.msra.mxu0 %v374_v33  ;;  %700 = vmatpush1.bf16.msra.mxu1 %v376_v34  ;;  %v431_v29 = vld [vmem:[#allocation2 + $0x288] sm:$0xff]  ;;  %v433_v30 = vld [vmem:[#allocation2 + $0x298] sm:$0xff]  ;;  %v430_v31 = vld [vmem:[#allocation2 + $0x280] sm:$0xff] }
  0xb3   :  { %572 = vmatprep.subr.bf16.mxu0 %v379_v35  ;;  %701 = vmatprep.subr.bf16.mxu1 %v381_v36  ;;  %v432_v32 = vld [vmem:[#allocation2 + $0x290] sm:$0xff]  ;;  %v435_v33 = vld [vmem:[#allocation2 + $0x2a8] sm:$0xff]  ;;  %v437_v34 = vld [vmem:[#allocation2 + $0x2b8] sm:$0xff] }
  0xb4   :  { %v434_v35 = vld [vmem:[#allocation2 + $0x2a0] sm:$0xff]  ;;  %v436_v36 = vld [vmem:[#allocation2 + $0x2b0] sm:$0xff] }
  0xb6   :  { %573 = vmatpush1.bf16.msra.mxu0 %v378_v37  ;;  %702 = vmatpush1.bf16.msra.mxu1 %v380_v38  ;;  %v439_v37 = vld [vmem:[#allocation2 + $0x2c8] sm:$0xff]  ;;  %v441_v38 = vld [vmem:[#allocation2 + $0x2d8] sm:$0xff] }
  0xb7   :  { %574 = vmatprep.subr.bf16.mxu0 %v383_v39  ;;  %703 = vmatprep.subr.bf16.mxu1 %v385_v40  ;;  %v438_v39 = vld [vmem:[#allocation2 + $0x2c0] sm:$0xff]  ;;  %v440_v40 = vld [vmem:[#allocation2 + $0x2d0] sm:$0xff] }
  0xba   :  { %575 = vmatpush1.bf16.msra.mxu0 %v382_v41  ;;  %704 = vmatpush1.bf16.msra.mxu1 %v384_v42  ;;  %v443_v41 = vld [vmem:[#allocation2 + $0x2e8] sm:$0xff]  ;;  %v445_v42 = vld [vmem:[#allocation2 + $0x2f8] sm:$0xff] }
  0xbb   :  { %576 = vmatprep.subr.bf16.mxu0 %v387_v43  ;;  %705 = vmatprep.subr.bf16.mxu1 %v389_v44  ;;  %v442_v43 = vld [vmem:[#allocation2 + $0x2e0] sm:$0xff]  ;;  %v444_v44 = vld [vmem:[#allocation2 + $0x2f0] sm:$0xff] }
  0xbe   :  { %577 = vmatpush1.bf16.msra.mxu0 %v386_v45  ;;  %706 = vmatpush1.bf16.msra.mxu1 %v388_v46  ;;  %v447_v45 = vld [vmem:[#allocation2 + $0x308] sm:$0xff]  ;;  %v449_v46 = vld [vmem:[#allocation2 + $0x318] sm:$0xff] }
  0xbf   :  { %578 = vmatprep.subr.bf16.mxu0 %v391_v47  ;;  %707 = vmatprep.subr.bf16.mxu1 %v393_v48  ;;  %v446_v47 = vld [vmem:[#allocation2 + $0x300] sm:$0xff]  ;;  %v448_v48 = vld [vmem:[#allocation2 + $0x310] sm:$0xff] }
  0xc2   :  { %579 = vmatpush1.bf16.msra.mxu0 %v390_v49  ;;  %708 = vmatpush1.bf16.msra.mxu1 %v392_v50  ;;  %v451_v49 = vld [vmem:[#allocation2 + $0x328] sm:$0xff]  ;;  %v453_v50 = vld [vmem:[#allocation2 + $0x338] sm:$0xff] }
  0xc3   :  { %580 = vmatprep.subr.bf16.mxu0 %v395_v51  ;;  %709 = vmatprep.subr.bf16.mxu1 %v397_v52  ;;  %v450_v51 = vld [vmem:[#allocation2 + $0x320] sm:$0xff]  ;;  %v452_v52 = vld [vmem:[#allocation2 + $0x330] sm:$0xff] }
  0xc6   :  { %581 = vmatpush1.bf16.msra.mxu0 %v394_v53  ;;  %710 = vmatpush1.bf16.msra.mxu1 %v396_v54  ;;  %v455_v53 = vld [vmem:[#allocation2 + $0x348] sm:$0xff]  ;;  %v457_v54 = vld [vmem:[#allocation2 + $0x358] sm:$0xff] }
  0xc7   :  { %582 = vmatprep.subr.bf16.mxu0 %v399_v55  ;;  %711 = vmatprep.subr.bf16.mxu1 %v401_v56  ;;  %v454_v55 = vld [vmem:[#allocation2 + $0x340] sm:$0xff]  ;;  %v456_v56 = vld [vmem:[#allocation2 + $0x350] sm:$0xff] }
  0xca   :  { %583 = vmatpush1.bf16.msra.mxu0 %v398_v57  ;;  %712 = vmatpush1.bf16.msra.mxu1 %v400_v58  ;;  %v459_v57 = vld [vmem:[#allocation2 + $0x368] sm:$0xff]  ;;  %v461_v58 = vld [vmem:[#allocation2 + $0x378] sm:$0xff] }
  0xcb   :  { %584 = vmatprep.subr.bf16.mxu0 %v403_v59  ;;  %713 = vmatprep.subr.bf16.mxu1 %v405_v60  ;;  %v458_v59 = vld [vmem:[#allocation2 + $0x360] sm:$0xff]  ;;  %v460_v60 = vld [vmem:[#allocation2 + $0x370] sm:$0xff] }
  0xce   :  { %585 = vmatpush1.bf16.msra.mxu0 %v402_v61  ;;  %714 = vmatpush1.bf16.msra.mxu1 %v404_v62  ;;  %v463_v61 = vld [vmem:[#allocation2 + $0x388] sm:$0xff]  ;;  %v465_v62 = vld [vmem:[#allocation2 + $0x398] sm:$0xff] }
  0xcf   :  { %586 = vmatprep.subr.bf16.mxu0 %v407_v63  ;;  %715 = vmatprep.subr.bf16.mxu1 %v409_v6  ;;  %v462_v63 = vld [vmem:[#allocation2 + $0x380] sm:$0xff]  ;;  %v464_v6 = vld [vmem:[#allocation2 + $0x390] sm:$0xff] }
  0xd2   :  { %587 = vmatpush1.bf16.msra.mxu0 %v406_v7  ;;  %716 = vmatpush1.bf16.msra.mxu1 %v408_v8  ;;  %v467_v7 = vld [vmem:[#allocation2 + $0x3a8] sm:$0xff]  ;;  %v469_v8 = vld [vmem:[#allocation2 + $0x3b8] sm:$0xff] }
  0xd3   :  { %588 = vmatprep.subr.bf16.mxu0 %v411_v9  ;;  %717 = vmatprep.subr.bf16.mxu1 %v413_v10  ;;  %v466_v9 = vld [vmem:[#allocation2 + $0x3a0] sm:$0xff]  ;;  %v468_v10 = vld [vmem:[#allocation2 + $0x3b0] sm:$0xff] }
  0xd6   :  { %589 = vmatpush1.bf16.msra.mxu0 %v410_v11  ;;  %718 = vmatpush1.bf16.msra.mxu1 %v412_v12  ;;  %v471_v11 = vld [vmem:[#allocation2 + $0x3c8] sm:$0xff]  ;;  %v473_v12 = vld [vmem:[#allocation2 + $0x3d8] sm:$0xff] }
  0xd7   :  { %601 = vmatprep.subr.bf16.mxu0 %v415_v13  ;;  %730 = vmatprep.subr.bf16.mxu1 %v417_v14  ;;  %v470_v13 = vld [vmem:[#allocation2 + $0x3c0] sm:$0xff]  ;;  %v472_v14 = vld [vmem:[#allocation2 + $0x3d0] sm:$0xff] }
  0xd9   :  { %591 = vmatmul.mubr.bf16.vlgmr.msra.gmra.mrb[0].mxu0 %v2577_v15  ;;  %720 = vmatmul.mubr.bf16.vlgmr.msra.gmra.mrb[0].mxu1 %v2577_v15  ;;  %v475_v15 = vld [vmem:[#allocation2 + $0x3e8] sm:$0xff] }
  0xda   :  { %602 = vmatpush1.bf16.msra.mxu0 %v414_v16  ;;  %731 = vmatpush1.bf16.msra.mxu1 %v416_v17  ;;  %v477_v16 = vld [vmem:[#allocation2 + $0x3f8] sm:$0xff]  ;;  %v474_v17 = vld [vmem:[#allocation2 + $0x3e0] sm:$0xff] }
  0xdb   :  { %603 = vmatprep.subr.bf16.mxu0 %v419_v18  ;;  %732 = vmatprep.subr.bf16.mxu1 %v421_v19  ;;  %v476_v18 = vld [vmem:[#allocation2 + $0x3f0] sm:$0xff]  ;;  %v479_v19 = vld [vmem:[#allocation2 + $0x408] sm:$0xff] }
  0xdc   :  { %633 = vmatprep.mubr.bf16.mxu0 %v2580_v20  ;;  %762 = vmatprep.mubr.bf16.mxu1 %v2580_v20  ;;  %v481_v20 = vld [vmem:[#allocation2 + $0x418] sm:$0xff] }
  0xde   :  { %604 = vmatpush1.bf16.msra.mxu0 %v418_v21  ;;  %733 = vmatpush1.bf16.msra.mxu1 %v420_v22  ;;  %v2579_v21 = vcombine.low %v3181_v1, %v3187_v4  ;;  %v478_v22 = vld [vmem:[#allocation2 + $0x400] sm:$0xff]  ;;  %v488_v4 = vld [vmem:[#allocation2 + $0x450] sm:$0xff] }
  0xdf   :  { %605 = vmatprep.subr.bf16.mxu0 %v423_v0  ;;  %734 = vmatprep.subr.bf16.mxu1 %v425_v3  ;;  %v480_v0 = vld [vmem:[#allocation2 + $0x410] sm:$0xff]  ;;  %v483_v3 = vld [vmem:[#allocation2 + $0x428] sm:$0xff]  ;;  %v486_v1 = vld [vmem:[#allocation2 + $0x440] sm:$0xff] }
  0xe2   :  { %606 = vmatpush1.bf16.msra.mxu0 %v422_v23  ;;  %735 = vmatpush1.bf16.msra.mxu1 %v424_v24  ;;  %v485_v23 = vld [vmem:[#allocation2 + $0x438] sm:$0xff]  ;;  %v482_v24 = vld [vmem:[#allocation2 + $0x420] sm:$0xff] }
  0xe3   :  { %607 = vmatprep.subr.bf16.mxu0 %v427_v25  ;;  %736 = vmatprep.subr.bf16.mxu1 %v429_v26  ;;  %v484_v25 = vld [vmem:[#allocation2 + $0x430] sm:$0xff]  ;;  %v487_v26 = vld [vmem:[#allocation2 + $0x448] sm:$0xff] }
  0xe6   :  { %608 = vmatpush1.bf16.msra.mxu0 %v426_v27  ;;  %737 = vmatpush1.bf16.msra.mxu1 %v428_v28  ;;  %v489_v27 = vld [vmem:[#allocation2 + $0x458] sm:$0xff]  ;;  %v2945_v28 = vmov 0  }
  0xe7   :  { %609 = vmatprep.subr.bf16.mxu0 %v431_v29  ;;  %738 = vmatprep.subr.bf16.mxu1 %v433_v30  ;;  %v491_v29 = vld [vmem:[#allocation2 + $0x468] sm:$0xff]  ;;  %v493_v30 = vld [vmem:[#allocation2 + $0x478] sm:$0xff] }
  0xea   :  { %610 = vmatpush1.bf16.msra.mxu0 %v430_v31  ;;  %739 = vmatpush1.bf16.msra.mxu1 %v432_v32  ;;  %v490_v31 = vld [vmem:[#allocation2 + $0x460] sm:$0xff]  ;;  %v492_v32 = vld [vmem:[#allocation2 + $0x470] sm:$0xff] }
  0xeb   :  { %611 = vmatprep.subr.bf16.mxu0 %v435_v33  ;;  %740 = vmatprep.subr.bf16.mxu1 %v437_v34  ;;  %v495_v33 = vld [vmem:[#allocation2 + $0x488] sm:$0xff]  ;;  %v497_v34 = vld [vmem:[#allocation2 + $0x498] sm:$0xff] }
  0xee   :  { %612 = vmatpush1.bf16.msra.mxu0 %v434_v35  ;;  %741 = vmatpush1.bf16.msra.mxu1 %v436_v36  ;;  %v494_v35 = vld [vmem:[#allocation2 + $0x480] sm:$0xff]  ;;  %v496_v36 = vld [vmem:[#allocation2 + $0x490] sm:$0xff] }
  0xef   :  { %613 = vmatprep.subr.bf16.mxu0 %v439_v37  ;;  %742 = vmatprep.subr.bf16.mxu1 %v441_v38  ;;  %v499_v37 = vld [vmem:[#allocation2 + $0x4a8] sm:$0xff]  ;;  %v501_v38 = vld [vmem:[#allocation2 + $0x4b8] sm:$0xff] }
  0xf2   :  { %614 = vmatpush1.bf16.msra.mxu0 %v438_v39  ;;  %743 = vmatpush1.bf16.msra.mxu1 %v440_v40  ;;  %v498_v39 = vld [vmem:[#allocation2 + $0x4a0] sm:$0xff]  ;;  %v500_v40 = vld [vmem:[#allocation2 + $0x4b0] sm:$0xff] }
  0xf3   :  { %615 = vmatprep.subr.bf16.mxu0 %v443_v41  ;;  %744 = vmatprep.subr.bf16.mxu1 %v445_v42  ;;  %v503_v41 = vld [vmem:[#allocation2 + $0x4c8] sm:$0xff]  ;;  %v505_v42 = vld [vmem:[#allocation2 + $0x4d8] sm:$0xff] }
  0xf6   :  { %616 = vmatpush1.bf16.msra.mxu0 %v442_v43  ;;  %745 = vmatpush1.bf16.msra.mxu1 %v444_v44  ;;  %v502_v43 = vld [vmem:[#allocation2 + $0x4c0] sm:$0xff]  ;;  %v504_v44 = vld [vmem:[#allocation2 + $0x4d0] sm:$0xff] }
  0xf7   :  { %617 = vmatprep.subr.bf16.mxu0 %v447_v45  ;;  %746 = vmatprep.subr.bf16.mxu1 %v449_v46  ;;  %v507_v45 = vld [vmem:[#allocation2 + $0x4e8] sm:$0xff]  ;;  %v509_v46 = vld [vmem:[#allocation2 + $0x4f8] sm:$0xff] }
  0xfa   :  { %618 = vmatpush1.bf16.msra.mxu0 %v446_v47  ;;  %747 = vmatpush1.bf16.msra.mxu1 %v448_v48  ;;  %v506_v47 = vld [vmem:[#allocation2 + $0x4e0] sm:$0xff]  ;;  %v508_v48 = vld [vmem:[#allocation2 + $0x4f0] sm:$0xff] }
  0xfb   :  { %619 = vmatprep.subr.bf16.mxu0 %v451_v49  ;;  %748 = vmatprep.subr.bf16.mxu1 %v453_v50  ;;  %v2581_v49 = vcombine.low %v3183_v2, %v3189_v5  ;;  %v512_v50 = vlaneseq }
  0xfe   :  { %620 = vmatpush1.bf16.msra.mxu0 %v450_v51  ;;  %749 = vmatpush1.bf16.msra.mxu1 %v452_v52  ;;  %v3203_v51 = vshrl.u32 %v512_v50, 7 }
  0xff   :  { %621 = vmatprep.subr.bf16.mxu0 %v455_v53  ;;  %750 = vmatprep.subr.bf16.mxu1 %v457_v54  ;;  %v510_v54 = vld [vmem:[%s3392_s10] sm:$0xf] }
 0x100   :  { %v3206_v52 = vsub.s32 0, %v3203_v51  ;;  %v3209_v53 = vsub.s32 2, %v3203_v51  ;;  %v3218_v2 = vsub.s32 3, %v3203_v51 }
 0x102   :  { %622 = vmatpush1.bf16.msra.mxu0 %v454_v55  ;;  %751 = vmatpush1.bf16.msra.mxu1 %v456_v56  ;;  %v3215_v55 = vsub.s32 1, %v3203_v51  ;;  %v515_v5 = vrot.slane %v510_v54, %v3206_v52  ;;  %v523_v56 = vrot.slane %v510_v54, %v3209_v53 }
 0x103   :  { %623 = vmatprep.subr.bf16.mxu0 %v459_v57  ;;  %752 = vmatprep.subr.bf16.mxu1 %v461_v58  ;;  %v527_v58 = vrot.slane %v510_v54, %v3218_v2 }
 0x104   :  { %v519_v57 = vrot.slane %v510_v54, %v3215_v55 }
 0x106   :  { %624 = vmatpush1.bf16.msra.mxu0 %v458_v59  ;;  %753 = vmatpush1.bf16.msra.mxu1 %v460_v60 }
 0x107   :  { %625 = vmatprep.subr.bf16.mxu0 %v463_v61  ;;  %754 = vmatprep.subr.bf16.mxu1 %v465_v62 }
 0x10a   :  { %626 = vmatpush1.bf16.msra.mxu0 %v462_v63  ;;  %755 = vmatpush1.bf16.msra.mxu1 %v464_v6 }
 0x10b   :  { %627 = vmatprep.subr.bf16.mxu0 %v467_v7  ;;  %756 = vmatprep.subr.bf16.mxu1 %v469_v8 }
 0x10e   :  { %628 = vmatpush1.bf16.msra.mxu0 %v466_v9  ;;  %757 = vmatpush1.bf16.msra.mxu1 %v468_v10 }
 0x10f   :  { %629 = vmatprep.subr.bf16.mxu0 %v471_v11  ;;  %758 = vmatprep.subr.bf16.mxu1 %v473_v12 }
 0x112   :  { %630 = vmatpush1.bf16.msra.mxu0 %v470_v13  ;;  %759 = vmatpush1.bf16.msra.mxu1 %v472_v14 }
 0x113   :  { %631 = vmatprep.subr.bf16.mxu0 %v475_v15  ;;  %760 = vmatprep.subr.bf16.mxu1 %v477_v16 }
 0x116   :  { %632 = vmatpush1.bf16.msra.mxu0 %v474_v17  ;;  %761 = vmatpush1.bf16.msra.mxu1 %v476_v18 }
 0x117   :  { %644 = vmatprep.subr.bf16.mxu0 %v479_v19  ;;  %773 = vmatprep.subr.bf16.mxu1 %v481_v20 }
 0x119   :  { %634 = vmatmul.mubr.bf16.vlgmr.msra.gmra.mrb[0].mxu0 %v2579_v21  ;;  %763 = vmatmul.mubr.bf16.vlgmr.msra.gmra.mrb[0].mxu1 %v2579_v21 }
 0x11a   :  { %645 = vmatpush1.bf16.msra.mxu0 %v478_v22  ;;  %774 = vmatpush1.bf16.msra.mxu1 %v480_v0 }
 0x11b   :  { %646 = vmatprep.subr.bf16.mxu0 %v483_v3  ;;  %775 = vmatprep.subr.bf16.mxu1 %v485_v23 }
 0x11c   :  { %676 = vmatprep.mubr.bf16.mxu0 %v2945_v28  ;;  %805 = vmatprep.mubr.bf16.mxu1 %v2945_v28 }
 0x11e   :  { %647 = vmatpush1.bf16.msra.mxu0 %v482_v24  ;;  %776 = vmatpush1.bf16.msra.mxu1 %v484_v25 }
 0x11f   :  { %648 = vmatprep.subr.bf16.mxu0 %v487_v26  ;;  %777 = vmatprep.subr.bf16.mxu1 %v489_v27 }
 0x122   :  { %649 = vmatpush1.bf16.msra.mxu0 %v486_v1  ;;  %778 = vmatpush1.bf16.msra.mxu1 %v488_v4 }
 0x123   :  { %650 = vmatprep.subr.bf16.mxu0 %v491_v29  ;;  %779 = vmatprep.subr.bf16.mxu1 %v493_v30 }
 0x126   :  { %651 = vmatpush1.bf16.msra.mxu0 %v490_v31  ;;  %780 = vmatpush1.bf16.msra.mxu1 %v492_v32 }
 0x127   :  { %652 = vmatprep.subr.bf16.mxu0 %v495_v33  ;;  %781 = vmatprep.subr.bf16.mxu1 %v497_v34 }
 0x12a   :  { %653 = vmatpush1.bf16.msra.mxu0 %v494_v35  ;;  %782 = vmatpush1.bf16.msra.mxu1 %v496_v36 }
 0x12b   :  { %654 = vmatprep.subr.bf16.mxu0 %v499_v37  ;;  %783 = vmatprep.subr.bf16.mxu1 %v501_v38 }
 0x12e   :  { %655 = vmatpush1.bf16.msra.mxu0 %v498_v39  ;;  %784 = vmatpush1.bf16.msra.mxu1 %v500_v40 }
 0x12f   :  { %656 = vmatprep.subr.bf16.mxu0 %v503_v41  ;;  %785 = vmatprep.subr.bf16.mxu1 %v505_v42 }
 0x132   :  { %657 = vmatpush1.bf16.msra.mxu0 %v502_v43  ;;  %786 = vmatpush1.bf16.msra.mxu1 %v504_v44 }
 0x133   :  { %658 = vmatprep.subr.bf16.mxu0 %v507_v45  ;;  %787 = vmatprep.subr.bf16.mxu1 %v509_v46 }
 0x136   :  { %659 = vmatpush1.bf16.msra.mxu0 %v506_v47  ;;  %788 = vmatpush1.bf16.msra.mxu1 %v508_v48 }
 0x139   :  { %677 = vmatmul.mubr.bf16.vlgmr.msra.gmra.mrb[0].mxu0 %v2581_v49  ;;  %806 = vmatmul.mubr.bf16.vlgmr.msra.gmra.mrb[0].mxu1 %v2581_v49 }
 0x20c   :  { %v678_v59 = vpop.f32.mrb[0].mxu0  ;;  %v807_v60 = vpop.f32.mrb[0].mxu1 }
 0x20d   :  { %v2664_v61 = vadd.f32 %v678_v59, %v515_v5  ;;  %v2668_v62 = vadd.f32 %v807_v60, %v523_v56  ;;  %v680_v63 = vpop.f32.mrb[1].mxu0  ;;  %v809_v6 = vpop.f32.mrb[1].mxu1 }
 0x20e   :  { %v2665_v7 = vadd.f32 %v680_v63, %v519_v57  ;;  %v2669_v8 = vadd.f32 %v809_v6, %v527_v58  ;;  %v682_v9 = vpop.f32.mrb[2].mxu0  ;;  %v811_v10 = vpop.f32.mrb[2].mxu1 }
 0x20f   :  { %vm816_vm0 = vcmp.gt.f32.partialorder %v2664_v61, 0.0  ;;  %v824_v11 = vmul.f32 0.01, %v2664_v61  ;;  %vm818_vm1 = vcmp.gt.f32.partialorder %v2668_v62, 0.0  ;;  %v826_v12 = vmul.f32 0.01, %v2668_v62 }
 0x210   :  { %vm817_vm2 = vcmp.gt.f32.partialorder %v2665_v7, 0.0  ;;  %v825_v13 = vmul.f32 0.01, %v2665_v7  ;;  %vm819_vm3 = vcmp.gt.f32.partialorder %v2669_v8, 0.0  ;;  %v827_v14 = vmul.f32 0.01, %v2669_v8 }
 0x211   :  { %v2666_v15 = vadd.f32 %v682_v9, %v515_v5  ;;  %v2670_v16 = vadd.f32 %v811_v10, %v523_v56  ;;  %v684_v17 = vpop.f32.mrb[3].mxu0  ;;  %v813_v18 = vpop.f32.mrb[3].mxu1  ;;  %v832_v19 = vsel %vm816_vm0, %v2664_v61, %v824_v11  ;;  %v834_v20 = vsel %vm818_vm1, %v2668_v62, %v826_v12 }
 0x212   :  { %v2667_v21 = vadd.f32 %v684_v17, %v519_v57  ;;  %v2671_v22 = vadd.f32 %v813_v18, %v527_v58  ;;  %v833_v25 = vsel %vm817_vm2, %v2665_v7, %v825_v13  ;;  %v835_v26 = vsel %vm819_vm3, %v2669_v8, %v827_v14 }
 0x213   :  { %vm820_vm4 = vcmp.gt.f32.partialorder %v2666_v15, 0.0  ;;  %v828_v0 = vmul.f32 0.01, %v2666_v15  ;;  %vm822_vm5 = vcmp.gt.f32.partialorder %v2670_v16, 0.0  ;;  %v830_v3 = vmul.f32 0.01, %v2670_v16 }
 0x214   :  { %vm821_vm6 = vcmp.gt.f32.partialorder %v2667_v21, 0.0  ;;  %v829_v23 = vmul.f32 0.01, %v2667_v21  ;;  %vm823_vm7 = vcmp.gt.f32.partialorder %v2671_v22, 0.0  ;;  %v831_v24 = vmul.f32 0.01, %v2671_v22 }
 0x215   :  { %v836_v27 = vsel %vm820_vm4, %v2666_v15, %v828_v0  ;;  %v838_v1 = vsel %vm822_vm5, %v2670_v16, %v830_v3 }
 0x216   :  { %v3226_v4 = vpack.c.bf16 %v836_v27, %v832_v19  ;;  %v3228_v29 = vpack.c.bf16 %v838_v1, %v834_v20  ;;  %v837_v30 = vsel %vm821_vm6, %v2667_v21, %v829_v23  ;;  %v839_v31 = vsel %vm823_vm7, %v2671_v22, %v831_v24 }
 0x217   :  { %v841_v32 = vpack.c.bf16 %v837_v30, %v833_v25  ;;  %v3230_v33 = vpack.c.bf16 %v839_v31, %v835_v26 }
 0x218   :  { %2888 = dma.done.wait [#allocation10 + $0x1], 16384 }
 0x219   :  { %2889 = vsyncadd [#allocation10 + $0x1], 4294950912  ;;  %1034 = vmatprep.mubr.bf16.mxu0 %v841_v32  ;;  %1120 = vmatprep.mubr.bf16.mxu1 %v841_v32  ;;  %v853_v34 = vld [vmem:[#allocation3 + $0x8] sm:$0xff]  ;;  %v855_v35 = vld [vmem:[#allocation3 + $0x18] sm:$0xff] }
 0x21a   :  { %v852_v36 = vld [vmem:[#allocation3] sm:$0xff]  ;;  %1002 = vmatprep.subr.bf16.mxu0 %v853_v34  ;;  %1088 = vmatprep.subr.bf16.mxu1 %v855_v35  ;;  %v854_v37 = vld [vmem:[#allocation3 + $0x10] sm:$0xff]  ;;  %v857_v38 = vld [vmem:[#allocation3 + $0x28] sm:$0xff] }
 0x21b   :  { %v859_v39 = vld [vmem:[#allocation3 + $0x38] sm:$0xff]  ;;  %1003 = vmatpush1.bf16.msra.mxu0 %v852_v36  ;;  %1089 = vmatpush1.bf16.msra.mxu1 %v854_v37  ;;  %v856_v40 = vld [vmem:[#allocation3 + $0x20] sm:$0xff]  ;;  %v858_v41 = vld [vmem:[#allocation3 + $0x30] sm:$0xff] }
 0x21c   :  { %1004 = vmatprep.subr.bf16.mxu0 %v857_v38  ;;  %1090 = vmatprep.subr.bf16.mxu1 %v859_v39  ;;  %v861_v42 = vld [vmem:[#allocation3 + $0x48] sm:$0xff]  ;;  %v863_v43 = vld [vmem:[#allocation3 + $0x58] sm:$0xff]  ;;  %v860_v44 = vld [vmem:[#allocation3 + $0x40] sm:$0xff] }
 0x21d   :  { %v862_v45 = vld [vmem:[#allocation3 + $0x50] sm:$0xff]  ;;  %v865_v46 = vld [vmem:[#allocation3 + $0x68] sm:$0xff]  ;;  %v867_v47 = vld [vmem:[#allocation3 + $0x78] sm:$0xff] }
 0x21e   :  { %v864_v48 = vld [vmem:[#allocation3 + $0x60] sm:$0xff]  ;;  %v866_v49 = vld [vmem:[#allocation3 + $0x70] sm:$0xff]  ;;  %v869_v50 = vld [vmem:[#allocation3 + $0x88] sm:$0xff] }
 0x21f   :  { %1005 = vmatpush1.bf16.msra.mxu0 %v856_v40  ;;  %1091 = vmatpush1.bf16.msra.mxu1 %v858_v41  ;;  %v871_v54 = vld [vmem:[#allocation3 + $0x98] sm:$0xff]  ;;  %v868_v5 = vld [vmem:[#allocation3 + $0x80] sm:$0xff]  ;;  %v870_v56 = vld [vmem:[#allocation3 + $0x90] sm:$0xff] }
 0x220   :  { %1006 = vmatprep.subr.bf16.mxu0 %v861_v42  ;;  %1092 = vmatprep.subr.bf16.mxu1 %v863_v43  ;;  %v873_v57 = vld [vmem:[#allocation3 + $0xa8] sm:$0xff]  ;;  %v875_v58 = vld [vmem:[#allocation3 + $0xb8] sm:$0xff]  ;;  %v872_v59 = vld [vmem:[#allocation3 + $0xa0] sm:$0xff] }
 0x221   :  { %v874_v60 = vld [vmem:[#allocation3 + $0xb0] sm:$0xff]  ;;  %v877_v61 = vld [vmem:[#allocation3 + $0xc8] sm:$0xff]  ;;  %v879_v62 = vld [vmem:[#allocation3 + $0xd8] sm:$0xff] }
 0x222   :  { %v876_v63 = vld [vmem:[#allocation3 + $0xc0] sm:$0xff]  ;;  %v878_v6 = vld [vmem:[#allocation3 + $0xd0] sm:$0xff]  ;;  %v881_v7 = vld [vmem:[#allocation3 + $0xe8] sm:$0xff] }
 0x223   :  { %1007 = vmatpush1.bf16.msra.mxu0 %v860_v44  ;;  %1093 = vmatpush1.bf16.msra.mxu1 %v862_v45  ;;  %v883_v8 = vld [vmem:[#allocation3 + $0xf8] sm:$0xff]  ;;  %v880_v9 = vld [vmem:[#allocation3 + $0xe0] sm:$0xff]  ;;  %v882_v10 = vld [vmem:[#allocation3 + $0xf0] sm:$0xff] }
 0x224   :  { %1008 = vmatprep.subr.bf16.mxu0 %v865_v46  ;;  %1094 = vmatprep.subr.bf16.mxu1 %v867_v47  ;;  %v885_v11 = vld [vmem:[#allocation3 + $0x108] sm:$0xff]  ;;  %v887_v12 = vld [vmem:[#allocation3 + $0x118] sm:$0xff]  ;;  %v884_v13 = vld [vmem:[#allocation3 + $0x100] sm:$0xff] }
 0x225   :  { %v886_v14 = vld [vmem:[#allocation3 + $0x110] sm:$0xff]  ;;  %v889_v15 = vld [vmem:[#allocation3 + $0x128] sm:$0xff]  ;;  %v891_v16 = vld [vmem:[#allocation3 + $0x138] sm:$0xff] }
 0x226   :  { %v888_v17 = vld [vmem:[#allocation3 + $0x120] sm:$0xff]  ;;  %v890_v18 = vld [vmem:[#allocation3 + $0x130] sm:$0xff]  ;;  %v893_v19 = vld [vmem:[#allocation3 + $0x148] sm:$0xff] }
 0x227   :  { %1009 = vmatpush1.bf16.msra.mxu0 %v864_v48  ;;  %1095 = vmatpush1.bf16.msra.mxu1 %v866_v49  ;;  %v895_v20 = vld [vmem:[#allocation3 + $0x158] sm:$0xff]  ;;  %v892_v21 = vld [vmem:[#allocation3 + $0x140] sm:$0xff]  ;;  %v894_v22 = vld [vmem:[#allocation3 + $0x150] sm:$0xff] }
 0x228   :  { %1010 = vmatprep.subr.bf16.mxu0 %v869_v50  ;;  %1096 = vmatprep.subr.bf16.mxu1 %v871_v54  ;;  %v897_v0 = vld [vmem:[#allocation3 + $0x168] sm:$0xff]  ;;  %v899_v3 = vld [vmem:[#allocation3 + $0x178] sm:$0xff]  ;;  %v896_v23 = vld [vmem:[#allocation3 + $0x160] sm:$0xff] }
 0x229   :  { %v898_v24 = vld [vmem:[#allocation3 + $0x170] sm:$0xff]  ;;  %v901_v25 = vld [vmem:[#allocation3 + $0x188] sm:$0xff]  ;;  %v903_v26 = vld [vmem:[#allocation3 + $0x198] sm:$0xff] }
 0x22a   :  { %v900_v27 = vld [vmem:[#allocation3 + $0x180] sm:$0xff]  ;;  %v902_v1 = vld [vmem:[#allocation3 + $0x190] sm:$0xff]  ;;  %v905_v30 = vld [vmem:[#allocation3 + $0x1a8] sm:$0xff] }
 0x22b   :  { %1011 = vmatpush1.bf16.msra.mxu0 %v868_v5  ;;  %1097 = vmatpush1.bf16.msra.mxu1 %v870_v56  ;;  %v907_v31 = vld [vmem:[#allocation3 + $0x1b8] sm:$0xff]  ;;  %v904_v32 = vld [vmem:[#allocation3 + $0x1a0] sm:$0xff]  ;;  %v906_v34 = vld [vmem:[#allocation3 + $0x1b0] sm:$0xff] }
 0x22c   :  { %1012 = vmatprep.subr.bf16.mxu0 %v873_v57  ;;  %1098 = vmatprep.subr.bf16.mxu1 %v875_v58  ;;  %v909_v35 = vld [vmem:[#allocation3 + $0x1c8] sm:$0xff]  ;;  %v911_v36 = vld [vmem:[#allocation3 + $0x1d8] sm:$0xff]  ;;  %v908_v37 = vld [vmem:[#allocation3 + $0x1c0] sm:$0xff] }
 0x22d   :  { %v910_v38 = vld [vmem:[#allocation3 + $0x1d0] sm:$0xff]  ;;  %v913_v39 = vld [vmem:[#allocation3 + $0x1e8] sm:$0xff]  ;;  %v915_v40 = vld [vmem:[#allocation3 + $0x1f8] sm:$0xff] }
 0x22e   :  { %v912_v41 = vld [vmem:[#allocation3 + $0x1e0] sm:$0xff]  ;;  %v914_v42 = vld [vmem:[#allocation3 + $0x1f0] sm:$0xff]  ;;  %v917_v43 = vld [vmem:[#allocation3 + $0x208] sm:$0xff] }
 0x22f   :  { %1013 = vmatpush1.bf16.msra.mxu0 %v872_v59  ;;  %1099 = vmatpush1.bf16.msra.mxu1 %v874_v60  ;;  %v919_v44 = vld [vmem:[#allocation3 + $0x218] sm:$0xff]  ;;  %v916_v45 = vld [vmem:[#allocation3 + $0x200] sm:$0xff]  ;;  %v918_v46 = vld [vmem:[#allocation3 + $0x210] sm:$0xff] }
 0x230   :  { %1014 = vmatprep.subr.bf16.mxu0 %v877_v61  ;;  %1100 = vmatprep.subr.bf16.mxu1 %v879_v62  ;;  %v921_v47 = vld [vmem:[#allocation3 + $0x228] sm:$0xff]  ;;  %v923_v48 = vld [vmem:[#allocation3 + $0x238] sm:$0xff]  ;;  %v920_v49 = vld [vmem:[#allocation3 + $0x220] sm:$0xff] }
 0x231   :  { %v922_v50 = vld [vmem:[#allocation3 + $0x230] sm:$0xff]  ;;  %v925_v54 = vld [vmem:[#allocation3 + $0x248] sm:$0xff]  ;;  %v927_v5 = vld [vmem:[#allocation3 + $0x258] sm:$0xff] }
 0x232   :  { %v924_v56 = vld [vmem:[#allocation3 + $0x240] sm:$0xff]  ;;  %v926_v57 = vld [vmem:[#allocation3 + $0x250] sm:$0xff]  ;;  %v929_v58 = vld [vmem:[#allocation3 + $0x268] sm:$0xff] }
 0x233   :  { %1015 = vmatpush1.bf16.msra.mxu0 %v876_v63  ;;  %1101 = vmatpush1.bf16.msra.mxu1 %v878_v6  ;;  %v928_v59 = vld [vmem:[#allocation3 + $0x260] sm:$0xff]  ;;  %v930_v60 = vld [vmem:[#allocation3 + $0x270] sm:$0xff]  ;;  %v933_v61 = vld [vmem:[#allocation3 + $0x288] sm:$0xff] }
 0x234   :  { %1016 = vmatprep.subr.bf16.mxu0 %v881_v7  ;;  %1102 = vmatprep.subr.bf16.mxu1 %v883_v8  ;;  %v935_v62 = vld [vmem:[#allocation3 + $0x298] sm:$0xff]  ;;  %v934_v63 = vld [vmem:[#allocation3 + $0x290] sm:$0xff]  ;;  %v937_v6 = vld [vmem:[#allocation3 + $0x2a8] sm:$0xff] }
 0x235   :  { %v939_v7 = vld [vmem:[#allocation3 + $0x2b8] sm:$0xff]  ;;  %v936_v8 = vld [vmem:[#allocation3 + $0x2a0] sm:$0xff] }
 0x237   :  { %1017 = vmatpush1.bf16.msra.mxu0 %v880_v9  ;;  %1103 = vmatpush1.bf16.msra.mxu1 %v882_v10  ;;  %v938_v9 = vld [vmem:[#allocation3 + $0x2b0] sm:$0xff]  ;;  %v941_v10 = vld [vmem:[#allocation3 + $0x2c8] sm:$0xff] }
 0x238   :  { %1018 = vmatprep.subr.bf16.mxu0 %v885_v11  ;;  %1104 = vmatprep.subr.bf16.mxu1 %v887_v12  ;;  %v943_v11 = vld [vmem:[#allocation3 + $0x2d8] sm:$0xff]  ;;  %v940_v12 = vld [vmem:[#allocation3 + $0x2c0] sm:$0xff] }
 0x23b   :  { %1019 = vmatpush1.bf16.msra.mxu0 %v884_v13  ;;  %1105 = vmatpush1.bf16.msra.mxu1 %v886_v14  ;;  %v942_v13 = vld [vmem:[#allocation3 + $0x2d0] sm:$0xff]  ;;  %v945_v14 = vld [vmem:[#allocation3 + $0x2e8] sm:$0xff] }
 0x23c   :  { %1020 = vmatprep.subr.bf16.mxu0 %v889_v15  ;;  %1106 = vmatprep.subr.bf16.mxu1 %v891_v16  ;;  %v947_v15 = vld [vmem:[#allocation3 + $0x2f8] sm:$0xff]  ;;  %v944_v16 = vld [vmem:[#allocation3 + $0x2e0] sm:$0xff] }
 0x23f   :  { %1021 = vmatpush1.bf16.msra.mxu0 %v888_v17  ;;  %1107 = vmatpush1.bf16.msra.mxu1 %v890_v18  ;;  %v946_v17 = vld [vmem:[#allocation3 + $0x2f0] sm:$0xff]  ;;  %v949_v18 = vld [vmem:[#allocation3 + $0x308] sm:$0xff] }
 0x240   :  { %1022 = vmatprep.subr.bf16.mxu0 %v893_v19  ;;  %1108 = vmatprep.subr.bf16.mxu1 %v895_v20  ;;  %v951_v19 = vld [vmem:[#allocation3 + $0x318] sm:$0xff]  ;;  %v948_v20 = vld [vmem:[#allocation3 + $0x300] sm:$0xff] }
 0x243   :  { %1023 = vmatpush1.bf16.msra.mxu0 %v892_v21  ;;  %1109 = vmatpush1.bf16.msra.mxu1 %v894_v22  ;;  %v950_v21 = vld [vmem:[#allocation3 + $0x310] sm:$0xff]  ;;  %v953_v22 = vld [vmem:[#allocation3 + $0x328] sm:$0xff] }
 0x244   :  { %1024 = vmatprep.subr.bf16.mxu0 %v897_v0  ;;  %1110 = vmatprep.subr.bf16.mxu1 %v899_v3  ;;  %v955_v0 = vld [vmem:[#allocation3 + $0x338] sm:$0xff]  ;;  %v952_v3 = vld [vmem:[#allocation3 + $0x320] sm:$0xff] }
 0x247   :  { %1025 = vmatpush1.bf16.msra.mxu0 %v896_v23  ;;  %1111 = vmatpush1.bf16.msra.mxu1 %v898_v24  ;;  %v954_v23 = vld [vmem:[#allocation3 + $0x330] sm:$0xff]  ;;  %v957_v24 = vld [vmem:[#allocation3 + $0x348] sm:$0xff] }
 0x248   :  { %1026 = vmatprep.subr.bf16.mxu0 %v901_v25  ;;  %1112 = vmatprep.subr.bf16.mxu1 %v903_v26  ;;  %v959_v25 = vld [vmem:[#allocation3 + $0x358] sm:$0xff]  ;;  %v956_v26 = vld [vmem:[#allocation3 + $0x340] sm:$0xff] }
 0x24b   :  { %1027 = vmatpush1.bf16.msra.mxu0 %v900_v27  ;;  %1113 = vmatpush1.bf16.msra.mxu1 %v902_v1  ;;  %v958_v27 = vld [vmem:[#allocation3 + $0x350] sm:$0xff]  ;;  %v961_v1 = vld [vmem:[#allocation3 + $0x368] sm:$0xff] }
 0x24c   :  { %1028 = vmatprep.subr.bf16.mxu0 %v905_v30  ;;  %1114 = vmatprep.subr.bf16.mxu1 %v907_v31  ;;  %v963_v30 = vld [vmem:[#allocation3 + $0x378] sm:$0xff]  ;;  %v960_v31 = vld [vmem:[#allocation3 + $0x360] sm:$0xff] }
 0x24f   :  { %1029 = vmatpush1.bf16.msra.mxu0 %v904_v32  ;;  %1115 = vmatpush1.bf16.msra.mxu1 %v906_v34  ;;  %v962_v32 = vld [vmem:[#allocation3 + $0x370] sm:$0xff]  ;;  %v965_v34 = vld [vmem:[#allocation3 + $0x388] sm:$0xff] }
 0x250   :  { %1030 = vmatprep.subr.bf16.mxu0 %v909_v35  ;;  %1116 = vmatprep.subr.bf16.mxu1 %v911_v36  ;;  %v967_v35 = vld [vmem:[#allocation3 + $0x398] sm:$0xff]  ;;  %v964_v36 = vld [vmem:[#allocation3 + $0x380] sm:$0xff] }
 0x253   :  { %1031 = vmatpush1.bf16.msra.mxu0 %v908_v37  ;;  %1117 = vmatpush1.bf16.msra.mxu1 %v910_v38  ;;  %v966_v37 = vld [vmem:[#allocation3 + $0x390] sm:$0xff]  ;;  %v969_v38 = vld [vmem:[#allocation3 + $0x3a8] sm:$0xff] }
 0x254   :  { %1032 = vmatprep.subr.bf16.mxu0 %v913_v39  ;;  %1118 = vmatprep.subr.bf16.mxu1 %v915_v40  ;;  %v971_v39 = vld [vmem:[#allocation3 + $0x3b8] sm:$0xff]  ;;  %v968_v40 = vld [vmem:[#allocation3 + $0x3a0] sm:$0xff] }
 0x257   :  { %1033 = vmatpush1.bf16.msra.mxu0 %v912_v41  ;;  %1119 = vmatpush1.bf16.msra.mxu1 %v914_v42  ;;  %v970_v41 = vld [vmem:[#allocation3 + $0x3b0] sm:$0xff]  ;;  %v973_v42 = vld [vmem:[#allocation3 + $0x3c8] sm:$0xff] }
 0x258   :  { %1045 = vmatprep.subr.bf16.mxu0 %v917_v43  ;;  %1131 = vmatprep.subr.bf16.mxu1 %v919_v44  ;;  %v975_v43 = vld [vmem:[#allocation3 + $0x3d8] sm:$0xff]  ;;  %v972_v44 = vld [vmem:[#allocation3 + $0x3c0] sm:$0xff] }
 0x25a   :  { %1035 = vmatmul.mubr.bf16.vlgmr.msra.gmra.mrb[4].mxu0 %v3226_v4  ;;  %1121 = vmatmul.mubr.bf16.vlgmr.msra.gmra.mrb[4].mxu1 %v3226_v4  ;;  %v931_v4 = vld [vmem:[#allocation3 + $0x278] sm:$0xff] }
 0x25b   :  { %1046 = vmatpush1.bf16.msra.mxu0 %v916_v45  ;;  %1132 = vmatpush1.bf16.msra.mxu1 %v918_v46  ;;  %v974_v45 = vld [vmem:[#allocation3 + $0x3d0] sm:$0xff]  ;;  %v977_v46 = vld [vmem:[#allocation3 + $0x3e8] sm:$0xff] }
 0x25c   :  { %1047 = vmatprep.subr.bf16.mxu0 %v921_v47  ;;  %1133 = vmatprep.subr.bf16.mxu1 %v923_v48  ;;  %v979_v47 = vld [vmem:[#allocation3 + $0x3f8] sm:$0xff]  ;;  %v976_v48 = vld [vmem:[#allocation3 + $0x3e0] sm:$0xff] }
 0x25d   :  { %1077 = vmatprep.mubr.bf16.mxu0 %v3230_v33  ;;  %1163 = vmatprep.mubr.bf16.mxu1 %v3230_v33  ;;  %v932_v33 = vld [vmem:[#allocation3 + $0x280] sm:$0xff] }
 0x25f   :  { %1048 = vmatpush1.bf16.msra.mxu0 %v920_v49  ;;  %1134 = vmatpush1.bf16.msra.mxu1 %v922_v50  ;;  %v978_v49 = vld [vmem:[#allocation3 + $0x3f0] sm:$0xff]  ;;  %v980_v50 = vld [vmem:[%s3393_s11] sm:$0xf] }
 0x260   :  { %1049 = vmatprep.subr.bf16.mxu0 %v925_v54  ;;  %1135 = vmatprep.subr.bf16.mxu1 %v927_v5  ;;  %v985_v54 = vrot.slane %v980_v50, %v3206_v52  ;;  %v989_v5 = vrot.slane %v980_v50, %v3215_v55 }
 0x263   :  { %1050 = vmatpush1.bf16.msra.mxu0 %v924_v56  ;;  %1136 = vmatpush1.bf16.msra.mxu1 %v926_v57  ;;  %v993_v56 = vrot.slane %v980_v50, %v3209_v53 }
 0x264   :  { %1051 = vmatprep.subr.bf16.mxu0 %v929_v58  ;;  %1137 = vmatprep.subr.bf16.mxu1 %v931_v4  ;;  %v997_v4 = vrot.slane %v980_v50, %v3218_v2 }
 0x267   :  { %1052 = vmatpush1.bf16.msra.mxu0 %v928_v59  ;;  %1138 = vmatpush1.bf16.msra.mxu1 %v930_v60 }
 0x268   :  { %1053 = vmatprep.subr.bf16.mxu0 %v933_v61  ;;  %1139 = vmatprep.subr.bf16.mxu1 %v935_v62 }
 0x26b   :  { %1054 = vmatpush1.bf16.msra.mxu0 %v932_v33  ;;  %1140 = vmatpush1.bf16.msra.mxu1 %v934_v63 }
 0x26c   :  { %1055 = vmatprep.subr.bf16.mxu0 %v937_v6  ;;  %1141 = vmatprep.subr.bf16.mxu1 %v939_v7 }
 0x26f   :  { %1056 = vmatpush1.bf16.msra.mxu0 %v936_v8  ;;  %1142 = vmatpush1.bf16.msra.mxu1 %v938_v9 }
 0x270   :  { %1057 = vmatprep.subr.bf16.mxu0 %v941_v10  ;;  %1143 = vmatprep.subr.bf16.mxu1 %v943_v11 }
 0x273   :  { %1058 = vmatpush1.bf16.msra.mxu0 %v940_v12  ;;  %1144 = vmatpush1.bf16.msra.mxu1 %v942_v13 }
 0x274   :  { %1059 = vmatprep.subr.bf16.mxu0 %v945_v14  ;;  %1145 = vmatprep.subr.bf16.mxu1 %v947_v15 }
 0x277   :  { %1060 = vmatpush1.bf16.msra.mxu0 %v944_v16  ;;  %1146 = vmatpush1.bf16.msra.mxu1 %v946_v17 }
 0x278   :  { %1061 = vmatprep.subr.bf16.mxu0 %v949_v18  ;;  %1147 = vmatprep.subr.bf16.mxu1 %v951_v19 }
 0x27b   :  { %1062 = vmatpush1.bf16.msra.mxu0 %v948_v20  ;;  %1148 = vmatpush1.bf16.msra.mxu1 %v950_v21 }
 0x27c   :  { %1063 = vmatprep.subr.bf16.mxu0 %v953_v22  ;;  %1149 = vmatprep.subr.bf16.mxu1 %v955_v0 }
 0x27f   :  { %1064 = vmatpush1.bf16.msra.mxu0 %v952_v3  ;;  %1150 = vmatpush1.bf16.msra.mxu1 %v954_v23 }
 0x280   :  { %1065 = vmatprep.subr.bf16.mxu0 %v957_v24  ;;  %1151 = vmatprep.subr.bf16.mxu1 %v959_v25 }
 0x283   :  { %1066 = vmatpush1.bf16.msra.mxu0 %v956_v26  ;;  %1152 = vmatpush1.bf16.msra.mxu1 %v958_v27 }
 0x284   :  { %1067 = vmatprep.subr.bf16.mxu0 %v961_v1  ;;  %1153 = vmatprep.subr.bf16.mxu1 %v963_v30 }
 0x287   :  { %1068 = vmatpush1.bf16.msra.mxu0 %v960_v31  ;;  %1154 = vmatpush1.bf16.msra.mxu1 %v962_v32 }
 0x288   :  { %1069 = vmatprep.subr.bf16.mxu0 %v965_v34  ;;  %1155 = vmatprep.subr.bf16.mxu1 %v967_v35 }
 0x28b   :  { %1070 = vmatpush1.bf16.msra.mxu0 %v964_v36  ;;  %1156 = vmatpush1.bf16.msra.mxu1 %v966_v37 }
 0x28c   :  { %1071 = vmatprep.subr.bf16.mxu0 %v969_v38  ;;  %1157 = vmatprep.subr.bf16.mxu1 %v971_v39 }
 0x28f   :  { %1072 = vmatpush1.bf16.msra.mxu0 %v968_v40  ;;  %1158 = vmatpush1.bf16.msra.mxu1 %v970_v41 }
 0x290   :  { %1073 = vmatprep.subr.bf16.mxu0 %v973_v42  ;;  %1159 = vmatprep.subr.bf16.mxu1 %v975_v43 }
 0x293   :  { %1074 = vmatpush1.bf16.msra.mxu0 %v972_v44  ;;  %1160 = vmatpush1.bf16.msra.mxu1 %v974_v45 }
 0x294   :  { %1075 = vmatprep.subr.bf16.mxu0 %v977_v46  ;;  %1161 = vmatprep.subr.bf16.mxu1 %v979_v47 }
 0x297   :  { %1076 = vmatpush1.bf16.msra.mxu0 %v976_v48  ;;  %1162 = vmatpush1.bf16.msra.mxu1 %v978_v49 }
 0x29a   :  { %1078 = vmatmul.mubr.bf16.vlgmr.msra.gmra.mrb[4].mxu0 %v3228_v29  ;;  %1164 = vmatmul.mubr.bf16.vlgmr.msra.gmra.mrb[4].mxu1 %v3228_v29 }
 0x36d   :  { %v1079_v57 = vpop.f32.mrb[4].mxu0  ;;  %v1165_v58 = vpop.f32.mrb[4].mxu1 }
 0x36e   :  { %v2672_v59 = vadd.f32 %v1079_v57, %v985_v54  ;;  %v1081_v60 = vpop.f32.mrb[5].mxu0  ;;  %v1167_v61 = vpop.f32.mrb[5].mxu1  ;;  %v2676_v6 = vadd.f32 %v1165_v58, %v993_v56 }
 0x36f   :  { %v2673_v62 = vadd.f32 %v1081_v60, %v989_v5  ;;  %v1083_v33 = vpop.f32.mrb[6].mxu0  ;;  %v1169_v29 = vpop.f32.mrb[6].mxu1  ;;  %v2677_v11 = vadd.f32 %v1167_v61, %v997_v4 }
 0x370   :  { %vm1174_vm8 = vcmp.gt.f32.partialorder %v2672_v59, 0.0  ;;  %v1178_v63 = vmul.f32 0.01, %v2672_v59  ;;  %v2674_v7 = vadd.f32 %v1083_v33, %v985_v54  ;;  %v1085_v8 = vpop.f32.mrb[7].mxu0  ;;  %v1171_v9 = vpop.f32.mrb[7].mxu1  ;;  %v2678_v15 = vadd.f32 %v1169_v29, %v993_v56 }
 0x371   :  { %vm1175_vm9 = vcmp.gt.f32.partialorder %v2673_v62, 0.0  ;;  %v1179_v10 = vmul.f32 0.01, %v2673_v62  ;;  %v2675_v12 = vadd.f32 %v1085_v8, %v989_v5  ;;  %v2679_v21 = vadd.f32 %v1171_v9, %v997_v4 }
 0x372   :  { %v1182_v13 = vsel %vm1174_vm8, %v2672_v59, %v1178_v63  ;;  %vm1176_vm10 = vcmp.gt.f32.partialorder %v2674_v7, 0.0  ;;  %v1180_v14 = vmul.f32 0.01, %v2674_v7 }
 0x373   :  { %v3245_v16 = vadd.f32 %v2676_v6, %v1182_v13  ;;  %v1183_v17 = vsel %vm1175_vm9, %v2673_v62, %v1179_v10  ;;  %vm1177_vm11 = vcmp.gt.f32.partialorder %v2675_v12, 0.0  ;;  %v1181_v18 = vmul.f32 0.01, %v2675_v12 }
 0x374   :  { %v1187_v19 = vadd.f32 %v2677_v11, %v1183_v17  ;;  %v1184_v20 = vsel %vm1176_vm10, %v2674_v7, %v1180_v14 }
 0x375   :  { %v3247_v22 = vadd.f32 %v2678_v15, %v1184_v20  ;;  %v1185_v0 = vsel %vm1177_vm11, %v2675_v12, %v1181_v18 }
 0x376   :  { %v1189_v3 = vadd.f32 %v2679_v21, %v1185_v0 }
 0x377   :  { %v1190_v23 = vpack.c.bf16 %v3247_v22, %v3245_v16 }
 0x378   :  { %v1191_v24 = vpack.c.bf16 %v1189_v3, %v1187_v19 }
 0x379   :  { %2890 = dma.done.wait [#allocation10 + $0x2], 4096 }
 0x37a   :  { %2891 = vsyncadd [#allocation10 + $0x2], 4294963200  ;;  %1276 = vmatprep.mubr.bf16.mxu0 %v1191_v24  ;;  %v1201_v25 = vld [vmem:[#allocation4 + $0x8] sm:$0xff]  ;;  %v1200_v26 = vld [vmem:[#allocation4] sm:$0xff] }
 0x37b   :  { %v1203_v27 = vld [vmem:[#allocation4 + $0x18] sm:$0xff]  ;;  %1244 = vmatprep.subr.bf16.mxu0 %v1201_v25  ;;  %v1202_v1 = vld [vmem:[#allocation4 + $0x10] sm:$0xff]  ;;  %v1205_v30 = vld [vmem:[#allocation4 + $0x28] sm:$0xff] }
 0x37c   :  { %1245 = vmatpush1.bf16.msra.mxu0 %v1200_v26  ;;  %v1204_v31 = vld [vmem:[#allocation4 + $0x20] sm:$0xff]  ;;  %v1207_v32 = vld [vmem:[#allocation4 + $0x38] sm:$0xff]  ;;  %v1206_v34 = vld [vmem:[#allocation4 + $0x30] sm:$0xff] }
 0x37d   :  { %1246 = vmatprep.subr.bf16.mxu0 %v1203_v27  ;;  %v1209_v35 = vld [vmem:[#allocation4 + $0x48] sm:$0xff]  ;;  %v1208_v36 = vld [vmem:[#allocation4 + $0x40] sm:$0xff]  ;;  %v1211_v37 = vld [vmem:[#allocation4 + $0x58] sm:$0xff] }
 0x37e   :  { %v1210_v38 = vld [vmem:[#allocation4 + $0x50] sm:$0xff]  ;;  %v1213_v39 = vld [vmem:[#allocation4 + $0x68] sm:$0xff]  ;;  %v1212_v40 = vld [vmem:[#allocation4 + $0x60] sm:$0xff] }
 0x37f   :  { %v1215_v41 = vld [vmem:[#allocation4 + $0x78] sm:$0xff]  ;;  %v1214_v42 = vld [vmem:[#allocation4 + $0x70] sm:$0xff]  ;;  %v1217_v43 = vld [vmem:[#allocation4 + $0x88] sm:$0xff] }
 0x380   :  { %1247 = vmatpush1.bf16.msra.mxu0 %v1202_v1  ;;  %v1216_v44 = vld [vmem:[#allocation4 + $0x80] sm:$0xff]  ;;  %v1219_v45 = vld [vmem:[#allocation4 + $0x98] sm:$0xff]  ;;  %v1218_v46 = vld [vmem:[#allocation4 + $0x90] sm:$0xff] }
 0x381   :  { %1248 = vmatprep.subr.bf16.mxu0 %v1205_v30  ;;  %v1221_v47 = vld [vmem:[#allocation4 + $0xa8] sm:$0xff]  ;;  %v1220_v48 = vld [vmem:[#allocation4 + $0xa0] sm:$0xff]  ;;  %v1223_v49 = vld [vmem:[#allocation4 + $0xb8] sm:$0xff] }
 0x382   :  { %v1222_v50 = vld [vmem:[#allocation4 + $0xb0] sm:$0xff]  ;;  %v1225_v54 = vld [vmem:[#allocation4 + $0xc8] sm:$0xff]  ;;  %v1224_v5 = vld [vmem:[#allocation4 + $0xc0] sm:$0xff] }
 0x383   :  { %v1227_v56 = vld [vmem:[#allocation4 + $0xd8] sm:$0xff]  ;;  %v1226_v57 = vld [vmem:[#allocation4 + $0xd0] sm:$0xff]  ;;  %v1229_v58 = vld [vmem:[#allocation4 + $0xe8] sm:$0xff] }
 0x384   :  { %1249 = vmatpush1.bf16.msra.mxu0 %v1204_v31  ;;  %v1228_v4 = vld [vmem:[#allocation4 + $0xe0] sm:$0xff]  ;;  %v1231_v59 = vld [vmem:[#allocation4 + $0xf8] sm:$0xff]  ;;  %v1230_v60 = vld [vmem:[#allocation4 + $0xf0] sm:$0xff] }
 0x385   :  { %1250 = vmatprep.subr.bf16.mxu0 %v1207_v32  ;;  %v1232_v61 = vld [vmem:[%s3394_s12] sm:$0x3] }
 0x386   :  { %v1237_v62 = vrot.slane %v1232_v61, %v3206_v52  ;;  %v1241_v29 = vrot.slane %v1232_v61, %v3215_v55 }
 0x388   :  { %1251 = vmatpush1.bf16.msra.mxu0 %v1206_v34 }
 0x389   :  { %1252 = vmatprep.subr.bf16.mxu0 %v1209_v35 }
 0x38c   :  { %1253 = vmatpush1.bf16.msra.mxu0 %v1208_v36 }
 0x38d   :  { %1254 = vmatprep.subr.bf16.mxu0 %v1211_v37 }
 0x390   :  { %1255 = vmatpush1.bf16.msra.mxu0 %v1210_v38 }
 0x391   :  { %1256 = vmatprep.subr.bf16.mxu0 %v1213_v39 }
 0x394   :  { %1257 = vmatpush1.bf16.msra.mxu0 %v1212_v40 }
 0x395   :  { %1258 = vmatprep.subr.bf16.mxu0 %v1215_v41 }
 0x398   :  { %1259 = vmatpush1.bf16.msra.mxu0 %v1214_v42 }
 0x399   :  { %1260 = vmatprep.subr.bf16.mxu0 %v1217_v43 }
 0x39c   :  { %1261 = vmatpush1.bf16.msra.mxu0 %v1216_v44 }
 0x39d   :  { %1262 = vmatprep.subr.bf16.mxu0 %v1219_v45 }
 0x3a0   :  { %1263 = vmatpush1.bf16.msra.mxu0 %v1218_v46 }
 0x3a1   :  { %1264 = vmatprep.subr.bf16.mxu0 %v1221_v47 }
 0x3a4   :  { %1265 = vmatpush1.bf16.msra.mxu0 %v1220_v48 }
 0x3a5   :  { %1266 = vmatprep.subr.bf16.mxu0 %v1223_v49 }
 0x3a8   :  { %1267 = vmatpush1.bf16.msra.mxu0 %v1222_v50 }
 0x3a9   :  { %1268 = vmatprep.subr.bf16.mxu0 %v1225_v54 }
 0x3ac   :  { %1269 = vmatpush1.bf16.msra.mxu0 %v1224_v5 }
 0x3ad   :  { %1270 = vmatprep.subr.bf16.mxu0 %v1227_v56 }
 0x3b0   :  { %1271 = vmatpush1.bf16.msra.mxu0 %v1226_v57 }
 0x3b1   :  { %1272 = vmatprep.subr.bf16.mxu0 %v1229_v58 }
 0x3b4   :  { %1273 = vmatpush1.bf16.msra.mxu0 %v1228_v4 }
 0x3b5   :  { %1274 = vmatprep.subr.bf16.mxu0 %v1231_v59 }
 0x3b8   :  { %1275 = vmatpush1.bf16.msra.mxu0 %v1230_v60 }
 0x3bb   :  { %1277 = vmatmul.mubr.bf16.vlgmr.msra.gmra.mrb[8].mxu0 %v1190_v23 }
 0x48e   :  { %v1278_v33 = vpop.f32.mrb[8].mxu0 }
 0x48f   :  { %v1279_v63 = vadd.f32 %v1278_v33, %v1237_v62  ;;  %v1280_v6 = vpop.f32.mrb[9].mxu0 }
 0x490   :  { %v1282_v7 = vpop.f32.mrb[10].mxu0  ;;  %v1281_v11 = vadd.f32 %v1280_v6, %v1241_v29 }
 0x491   :  { %vm1287_vm12 = vcmp.gt.f32.partialorder %v1279_v63, 0.0  ;;  %v1289_v8 = vmul.f32 0.01, %v1279_v63  ;;  %v1283_v9 = vadd.f32 %v1282_v7, %v1237_v62  ;;  %v1284_v10 = vpop.f32.mrb[11].mxu0 }
 0x492   :  { %v1285_v15 = vadd.f32 %v1284_v10, %v1241_v29 }
 0x493   :  { %v1291_v12 = vsel %vm1287_vm12, %v1279_v63, %v1289_v8  ;;  %vm1288_vm13 = vcmp.gt.f32.partialorder %v1283_v9, 0.0  ;;  %v1290_v13 = vmul.f32 0.01, %v1283_v9 }
 0x494   :  { %v1293_v14 = vadd.f32 %v1291_v12, %v1281_v11 }
 0x495   :  { %v1292_v16 = vsel %vm1288_vm13, %v1283_v9, %v1290_v13 }
 0x496   :  { %v1294_v17 = vadd.f32 %v1292_v16, %v1285_v15 }
 0x498   :  { %v1295_v18 = vpack.c.bf16 %v1294_v17, %v1293_v14 }
 0x499   :  { %2892 = dma.done.wait [#allocation10 + $0x3], 2048 }
 0x49a   :  { %2893 = vsyncadd [#allocation10 + $0x3], 4294965248  ;;  %1364 = vmatprep.mubr.bf16.mxu1 %v2945_v28  ;;  %v1305_v19 = vld [vmem:[#allocation5 + $0x8] sm:$0xff]  ;;  %v1304_v20 = vld [vmem:[#allocation5] sm:$0xff] }
 0x49b   :  { %v1307_v21 = vld [vmem:[#allocation5 + $0x18] sm:$0xff]  ;;  %1332 = vmatprep.subr.bf16.mxu1 %v1305_v19  ;;  %v1306_v22 = vld [vmem:[#allocation5 + $0x10] sm:$0xff]  ;;  %v1309_v0 = vld [vmem:[#allocation5 + $0x28] sm:$0xff] }
 0x49c   :  { %1333 = vmatpush1.bf16.msra.mxu1 %v1304_v20  ;;  %v1308_v3 = vld [vmem:[#allocation5 + $0x20] sm:$0xff]  ;;  %v1311_v23 = vld [vmem:[#allocation5 + $0x38] sm:$0xff]  ;;  %v1310_v24 = vld [vmem:[#allocation5 + $0x30] sm:$0xff] }
 0x49d   :  { %1334 = vmatprep.subr.bf16.mxu1 %v1307_v21  ;;  %v1313_v25 = vld [vmem:[#allocation5 + $0x48] sm:$0xff]  ;;  %v1312_v26 = vld [vmem:[#allocation5 + $0x40] sm:$0xff]  ;;  %v1315_v27 = vld [vmem:[#allocation5 + $0x58] sm:$0xff] }
 0x49e   :  { %v1314_v1 = vld [vmem:[#allocation5 + $0x50] sm:$0xff]  ;;  %v1317_v30 = vld [vmem:[#allocation5 + $0x68] sm:$0xff]  ;;  %v1316_v31 = vld [vmem:[#allocation5 + $0x60] sm:$0xff] }
 0x49f   :  { %v1319_v32 = vld [vmem:[#allocation5 + $0x78] sm:$0xff]  ;;  %v1318_v34 = vld [vmem:[#allocation5 + $0x70] sm:$0xff]  ;;  %v1320_v35 = vld [vmem:[%s3395_s13] sm:$0x3] }
 0x4a0   :  { %1335 = vmatpush1.bf16.msra.mxu1 %v1306_v22  ;;  %v1329_v36 = vrot.slane %v1320_v35, %v3215_v55  ;;  %v1325_v47 = vrot.slane %v1320_v35, %v3206_v52  ;;  %v1375_v48 = vld [vmem:[#allocation14] sm:$0xff]  ;;  %v1376_v50 = vld [vmem:[#allocation14 + $0x8] sm:$0xff] }
 0x4a1   :  { %1336 = vmatprep.subr.bf16.mxu1 %v1309_v0 }
 0x4a4   :  { %1337 = vmatpush1.bf16.msra.mxu1 %v1308_v3 }
 0x4a5   :  { %1338 = vmatprep.subr.bf16.mxu1 %v1311_v23 }
 0x4a8   :  { %1339 = vmatpush1.bf16.msra.mxu1 %v1310_v24 }
 0x4a9   :  { %1340 = vmatprep.subr.bf16.mxu1 %v1313_v25 }
 0x4ac   :  { %1341 = vmatpush1.bf16.msra.mxu1 %v1312_v26 }
 0x4ad   :  { %1342 = vmatprep.subr.bf16.mxu1 %v1315_v27 }
 0x4b0   :  { %1343 = vmatpush1.bf16.msra.mxu1 %v1314_v1 }
 0x4b1   :  { %1344 = vmatprep.subr.bf16.mxu1 %v1317_v30 }
 0x4b4   :  { %1345 = vmatpush1.bf16.msra.mxu1 %v1316_v31 }
 0x4b5   :  { %1346 = vmatprep.subr.bf16.mxu1 %v1319_v32 }
 0x4b8   :  { %1347 = vmatpush1.bf16.msra.mxu1 %v1318_v34 }
 0x4bb   :  { %1365 = vmatmul.mubr.bf16.vlgmr.msra.gmra.mrb[8].mxu1 %v1295_v18 }
 0x58e   :  { %v1366_v37 = vpop.f32.mrb[8].mxu1 }
 0x58f   :  { %v1368_v38 = vpop.f32.mrb[9].mxu1  ;;  %v3271_v54 = vadd.f32 %v1366_v37, %v1325_v47 }
 0x590   :  { %v3264_v39 = vadd.f32 %v1368_v38, %v1329_v36  ;;  %v1370_v40 = vpop.f32.mrb[10].mxu1 }
 0x591   :  { %v1372_v41 = vpop.f32.mrb[11].mxu1  ;;  %v3274_v58 = vadd.f32 %v1370_v40, %v1325_v47 }
 0x592   :  { %v1377_v42 = vmul.f32 0.5, %v3264_v39  ;;  %v3267_v43 = vadd.f32 %v1372_v41, %v1329_v36 }
 0x594   :  { %v1379_v44 = vmul.f32 1.442695, %v1377_v42  ;;  %v1378_v45 = vmul.f32 0.5, %v3267_v43 }
 0x596   :  { %2768 = vpow2.f32 %v1379_v44  ;;  %v1381_v46 = vmul.f32 1.442695, %v1378_v45 }
 0x598   :  { %2770 = vpow2.f32 %v1381_v46 }
 0x5a0   :  { %v2769_v49 = vpop.eup %2768 }
 0x5a1   :  { %v1383_v5 = vmul.f32 %v2769_v49, %v1375_v48 }
 0x5a2   :  { %v2771_v56 = vpop.eup %2770 }
 0x5a3   :  { %v1385_v57 = vadd.f32 %v1383_v5, %v3271_v54  ;;  %v1384_v4 = vmul.f32 %v2771_v56, %v1376_v50 }
 0x5a5   :  { %v1386_v59 = vadd.f32 %v1384_v4, %v3274_v58 }
 0x5a7   :  { %v1387_v60 = vpack.c.bf16 %v1386_v59, %v1385_v57 }
 0x5a8   :  { %2894 = dma.done.wait [#allocation10 + $0x4], 1024 }
 0x5a9   :  { %2895 = vsyncadd [#allocation10 + $0x4], 4294966272  ;;  %v2946_v61 = vmov 0.0   ;;  %vm2947_vm14 = vmmov 0   ;;  %v1396_v62 = vld [vmem:[#allocation6] sm:$0xff]  ;;  %v1397_v33 = vld [vmem:[#allocation6 + $0x8] sm:$0xff] }
 0x5aa   :  { %2644 = vmatprep.subr.bf16.mxu1 %v2946_v61  ;;  %2660 = vmatprep.mubr.msk.bf16.mxu1 %vm2947_vm14, %v2946_v61  ;;  %v1398_v29 = vld [vmem:[#allocation6 + $0x10] sm:$0xff]  ;;  %v1399_v63 = vld [vmem:[#allocation6 + $0x18] sm:$0xff]  ;;  %v1400_v6 = vld [vmem:[#allocation6 + $0x20] sm:$0xff] }
 0x5ab   :  { %2645 = vmatpush3.bf16.msra.mxu1 %v1396_v62  ;;  %v1401_v7 = vld [vmem:[#allocation6 + $0x28] sm:$0xff]  ;;  %v1402_v8 = vld [vmem:[#allocation6 + $0x30] sm:$0xff]  ;;  %v1403_v9 = vld [vmem:[#allocation6 + $0x38] sm:$0xff] }
 0x5ac   :  { %2646 = vmatprep.subr.bf16.mxu1 %v2946_v61  ;;  %v2582_v10 = vld [vmem:[%s3396_s14] ss:$0 sm:$0xff] }
 0x5af   :  { %2647 = vmatpush3.bf16.msra.mxu1 %v1397_v33 }
 0x5b0   :  { %2648 = vmatprep.subr.bf16.mxu1 %v2946_v61 }
 0x5b3   :  { %2649 = vmatpush3.bf16.msra.mxu1 %v1398_v29 }
 0x5b4   :  { %2650 = vmatprep.subr.bf16.mxu1 %v2946_v61 }
 0x5b7   :  { %2651 = vmatpush3.bf16.msra.mxu1 %v1399_v63 }
 0x5b8   :  { %2652 = vmatprep.subr.bf16.mxu1 %v2946_v61 }
 0x5bb   :  { %2653 = vmatpush3.bf16.msra.mxu1 %v1400_v6 }
 0x5bc   :  { %2654 = vmatprep.subr.bf16.mxu1 %v2946_v61 }
 0x5bf   :  { %2655 = vmatpush3.bf16.msra.mxu1 %v1401_v7 }
 0x5c0   :  { %2656 = vmatprep.subr.bf16.mxu1 %v2946_v61 }
 0x5c3   :  { %2657 = vmatpush3.bf16.msra.mxu1 %v1402_v8 }
 0x5c4   :  { %2658 = vmatprep.subr.bf16.mxu1 %v2946_v61 }
 0x5c7   :  { %2659 = vmatpush3.bf16.msra.mxu1 %v1403_v9 }
 0x5ca   :  { %2661 = vmatmul.mubr.bf16.vlgmr.msra.gmra.mrb[12].mxu1 %v1387_v60 }
 0x69d   :  { %v1445_v11 = vpop.f32.mrb[12].mxu1 }
 0x69e   :  { %v1446_v12 = vadd.f32 %v2582_v10, %v1445_v11  ;;  %v2662_v13 = vpop.f32.mrb[13].mxu1 }
 0x69f   :  { %v1448_v14 = vpop.f32.mrb[14].mxu1 }
 0x6a0   :  { %v1454_v15 = vmul.f32 0.01, %v1446_v12  ;;  %v1449_v16 = vadd.f32 %v2582_v10, %v1448_v14  ;;  %v2663_v17 = vpop.f32.mrb[15].mxu1  ;;  %vm1452_vm15 = vcmp.gt.f32.partialorder %v1446_v12, 0.0 }
 0x6a2   :  { %vm1453_vm0 = vcmp.gt.f32.partialorder %v1449_v16, 0.0  ;;  %v1455_v18 = vmul.f32 0.01, %v1449_v16  ;;  %v1456_v19 = vsel %vm1452_vm15, %v1446_v12, %v1454_v15 }
 0x6a4   :  { %v1457_v20 = vsel %vm1453_vm0, %v1449_v16, %v1455_v18 }
 0x6a5   :  { %v3280_v21 = vpack.c.bf16 %v1457_v20, %v1456_v19 }
 0x6a6   :  { %2896 = dma.done.wait [#allocation10 + $0x5], 4096 }
 0x6a7   :  { %2897 = vsyncadd [#allocation10 + $0x5], 4294963200  ;;  %1553 = vmatprep.mubr.bf16.mxu0 %v2945_v28  ;;  %1596 = vmatprep.mubr.bf16.mxu1 %v2945_v28  ;;  %v1468_v22 = vld [vmem:[#allocation7 + $0x8] sm:$0xff]  ;;  %v1470_v0 = vld [vmem:[#allocation7 + $0x18] sm:$0xff] }
 0x6a8   :  { %v1467_v3 = vld [vmem:[#allocation7] sm:$0xff]  ;;  %1521 = vmatprep.subr.bf16.mxu0 %v1468_v22  ;;  %1564 = vmatprep.subr.bf16.mxu1 %v1470_v0  ;;  %v1469_v23 = vld [vmem:[#allocation7 + $0x10] sm:$0xff]  ;;  %v1472_v24 = vld [vmem:[#allocation7 + $0x28] sm:$0xff] }
 0x6a9   :  { %v1474_v25 = vld [vmem:[#allocation7 + $0x38] sm:$0xff]  ;;  %1522 = vmatpush1.bf16.msra.mxu0 %v1467_v3  ;;  %1565 = vmatpush1.bf16.msra.mxu1 %v1469_v23  ;;  %v1471_v26 = vld [vmem:[#allocation7 + $0x20] sm:$0xff]  ;;  %v1473_v27 = vld [vmem:[#allocation7 + $0x30] sm:$0xff] }
 0x6aa   :  { %1523 = vmatprep.subr.bf16.mxu0 %v1472_v24  ;;  %1566 = vmatprep.subr.bf16.mxu1 %v1474_v25  ;;  %v1476_v1 = vld [vmem:[#allocation7 + $0x48] sm:$0xff]  ;;  %v1478_v30 = vld [vmem:[#allocation7 + $0x58] sm:$0xff]  ;;  %v1475_v28 = vld [vmem:[#allocation7 + $0x40] sm:$0xff] }
 0x6ab   :  { %v1477_v31 = vld [vmem:[#allocation7 + $0x50] sm:$0xff]  ;;  %v1480_v32 = vld [vmem:[#allocation7 + $0x68] sm:$0xff]  ;;  %v1482_v34 = vld [vmem:[#allocation7 + $0x78] sm:$0xff] }
 0x6ac   :  { %v1479_v35 = vld [vmem:[#allocation7 + $0x60] sm:$0xff]  ;;  %v1481_v36 = vld [vmem:[#allocation7 + $0x70] sm:$0xff]  ;;  %v1484_v37 = vld [vmem:[#allocation7 + $0x88] sm:$0xff] }
 0x6ad   :  { %1524 = vmatpush1.bf16.msra.mxu0 %v1471_v26  ;;  %1567 = vmatpush1.bf16.msra.mxu1 %v1473_v27  ;;  %v1486_v38 = vld [vmem:[#allocation7 + $0x98] sm:$0xff]  ;;  %v1483_v40 = vld [vmem:[#allocation7 + $0x80] sm:$0xff]  ;;  %v1485_v41 = vld [vmem:[#allocation7 + $0x90] sm:$0xff] }
 0x6ae   :  { %1525 = vmatprep.subr.bf16.mxu0 %v1476_v1  ;;  %1568 = vmatprep.subr.bf16.mxu1 %v1478_v30  ;;  %v1488_v42 = vld [vmem:[#allocation7 + $0xa8] sm:$0xff]  ;;  %v1490_v44 = vld [vmem:[#allocation7 + $0xb8] sm:$0xff]  ;;  %v1487_v45 = vld [vmem:[#allocation7 + $0xa0] sm:$0xff] }
 0x6af   :  { %v1489_v46 = vld [vmem:[#allocation7 + $0xb0] sm:$0xff]  ;;  %v1492_v47 = vld [vmem:[#allocation7 + $0xc8] sm:$0xff]  ;;  %v1494_v48 = vld [vmem:[#allocation7 + $0xd8] sm:$0xff] }
 0x6b0   :  { %v1491_v49 = vld [vmem:[#allocation7 + $0xc0] sm:$0xff]  ;;  %v1493_v50 = vld [vmem:[#allocation7 + $0xd0] sm:$0xff]  ;;  %v1496_v5 = vld [vmem:[#allocation7 + $0xe8] sm:$0xff] }
 0x6b1   :  { %1526 = vmatpush1.bf16.msra.mxu0 %v1475_v28  ;;  %1569 = vmatpush1.bf16.msra.mxu1 %v1477_v31  ;;  %v1498_v56 = vld [vmem:[#allocation7 + $0xf8] sm:$0xff]  ;;  %v1495_v57 = vld [vmem:[#allocation7 + $0xe0] sm:$0xff]  ;;  %v1497_v4 = vld [vmem:[#allocation7 + $0xf0] sm:$0xff] }
 0x6b2   :  { %1527 = vmatprep.subr.bf16.mxu0 %v1480_v32  ;;  %1570 = vmatprep.subr.bf16.mxu1 %v1482_v34  ;;  %v1499_v59 = vld [vmem:[%s3397_s15] sm:$0xf] }
 0x6b3   :  { %v1504_v60 = vrot.slane %v1499_v59, %v3206_v52  ;;  %v1512_v61 = vrot.slane %v1499_v59, %v3209_v53  ;;  %v1508_v62 = vrot.slane %v1499_v59, %v3215_v55  ;;  %v1516_v33 = vrot.slane %v1499_v59, %v3218_v2 }
 0x6b5   :  { %1528 = vmatpush1.bf16.msra.mxu0 %v1479_v35  ;;  %1571 = vmatpush1.bf16.msra.mxu1 %v1481_v36 }
 0x6b6   :  { %1529 = vmatprep.subr.bf16.mxu0 %v1484_v37  ;;  %1572 = vmatprep.subr.bf16.mxu1 %v1486_v38 }
 0x6b9   :  { %1530 = vmatpush1.bf16.msra.mxu0 %v1483_v40  ;;  %1573 = vmatpush1.bf16.msra.mxu1 %v1485_v41 }
 0x6ba   :  { %1531 = vmatprep.subr.bf16.mxu0 %v1488_v42  ;;  %1574 = vmatprep.subr.bf16.mxu1 %v1490_v44 }
 0x6bd   :  { %1532 = vmatpush1.bf16.msra.mxu0 %v1487_v45  ;;  %1575 = vmatpush1.bf16.msra.mxu1 %v1489_v46 }
 0x6be   :  { %1533 = vmatprep.subr.bf16.mxu0 %v1492_v47  ;;  %1576 = vmatprep.subr.bf16.mxu1 %v1494_v48 }
 0x6c1   :  { %1534 = vmatpush1.bf16.msra.mxu0 %v1491_v49  ;;  %1577 = vmatpush1.bf16.msra.mxu1 %v1493_v50 }
 0x6c2   :  { %1535 = vmatprep.subr.bf16.mxu0 %v1496_v5  ;;  %1578 = vmatprep.subr.bf16.mxu1 %v1498_v56 }
 0x6c5   :  { %1536 = vmatpush1.bf16.msra.mxu0 %v1495_v57  ;;  %1579 = vmatpush1.bf16.msra.mxu1 %v1497_v4 }
 0x6c8   :  { %1554 = vmatmul.mubr.bf16.vlgmr.msra.gmra.mrb[12].mxu0 %v3280_v21  ;;  %1597 = vmatmul.mubr.bf16.vlgmr.msra.gmra.mrb[16].mxu1 %v3280_v21 }
 0x79b   :  { %v1555_v29 = vpop.f32.mrb[12].mxu0  ;;  %v1598_v63 = vpop.f32.mrb[16].mxu1 }
 0x79c   :  { %v1556_v6 = vadd.f32 %v1555_v29, %v1504_v60  ;;  %v1557_v7 = vpop.f32.mrb[13].mxu0  ;;  %v1600_v8 = vpop.f32.mrb[17].mxu1  ;;  %v1599_v9 = vadd.f32 %v1598_v63, %v1512_v61 }
 0x79d   :  { %v1558_v10 = vadd.f32 %v1557_v7, %v1508_v62  ;;  %v1559_v11 = vpop.f32.mrb[14].mxu0  ;;  %v1602_v12 = vpop.f32.mrb[18].mxu1  ;;  %v1601_v14 = vadd.f32 %v1600_v8, %v1516_v33 }
 0x79e   :  { %vm1607_vm1 = vcmp.gt.f32.partialorder %v1556_v6, 0.0  ;;  %v1611_v13 = vmul.f32 0.01, %v1556_v6  ;;  %v1560_v15 = vadd.f32 %v1559_v11, %v1504_v60  ;;  %v1561_v16 = vpop.f32.mrb[15].mxu0  ;;  %v1604_v17 = vpop.f32.mrb[19].mxu1  ;;  %v1603_v22 = vadd.f32 %v1602_v12, %v1512_v61 }
 0x79f   :  { %vm1608_vm2 = vcmp.gt.f32.partialorder %v1558_v10, 0.0  ;;  %v1612_v18 = vmul.f32 0.01, %v1558_v10  ;;  %v1562_v19 = vadd.f32 %v1561_v16, %v1508_v62  ;;  %v1605_v26 = vadd.f32 %v1604_v17, %v1516_v33 }
 0x7a0   :  { %v1615_v20 = vsel %vm1607_vm1, %v1556_v6, %v1611_v13  ;;  %vm1609_vm3 = vcmp.gt.f32.partialorder %v1560_v15, 0.0  ;;  %v1613_v21 = vmul.f32 0.01, %v1560_v15 }
 0x7a1   :  { %v1619_v0 = vadd.f32 %v1615_v20, %v1599_v9  ;;  %v1616_v3 = vsel %vm1608_vm2, %v1558_v10, %v1612_v18  ;;  %vm1610_vm4 = vcmp.gt.f32.partialorder %v1562_v19, 0.0  ;;  %v1614_v23 = vmul.f32 0.01, %v1562_v19 }
 0x7a2   :  { %v1620_v24 = vadd.f32 %v1616_v3, %v1601_v14  ;;  %v1617_v25 = vsel %vm1609_vm3, %v1560_v15, %v1613_v21 }
 0x7a3   :  { %v1621_v27 = vadd.f32 %v1617_v25, %v1603_v22  ;;  %v1618_v1 = vsel %vm1610_vm4, %v1562_v19, %v1614_v23 }
 0x7a4   :  { %v1622_v30 = vadd.f32 %v1618_v1, %v1605_v26 }
 0x7a5   :  { %v3293_v28 = vpack.c.bf16 %v1621_v27, %v1619_v0 }
 0x7a6   :  { %v3295_v31 = vpack.c.bf16 %v1622_v30, %v1620_v24 }
 0x7a7   :  { %2898 = dma.done.wait [#allocation10 + $0x6], 16384 }
 0x7a8   :  { %2899 = vsyncadd [#allocation10 + $0x6], 4294950912  ;;  %1835 = vmatprep.mubr.bf16.mxu0 %v3295_v31  ;;  %1878 = vmatprep.mubr.bf16.mxu1 %v3295_v31  ;;  %v1634_v32 = vld [vmem:[#allocation8 + $0x8] sm:$0xff]  ;;  %v1636_v34 = vld [vmem:[#allocation8 + $0x18] sm:$0xff] }
 0x7a9   :  { %v1633_v35 = vld [vmem:[#allocation8] sm:$0xff]  ;;  %1803 = vmatprep.subr.bf16.mxu0 %v1634_v32  ;;  %1846 = vmatprep.subr.bf16.mxu1 %v1636_v34  ;;  %v1635_v36 = vld [vmem:[#allocation8 + $0x10] sm:$0xff]  ;;  %v1642_v37 = vld [vmem:[#allocation8 + $0x48] sm:$0xff] }
 0x7aa   :  { %v1644_v38 = vld [vmem:[#allocation8 + $0x58] sm:$0xff]  ;;  %1804 = vmatpush1.bf16.msra.mxu0 %v1633_v35  ;;  %1847 = vmatpush1.bf16.msra.mxu1 %v1635_v36  ;;  %v1641_v40 = vld [vmem:[#allocation8 + $0x40] sm:$0xff]  ;;  %v1643_v41 = vld [vmem:[#allocation8 + $0x50] sm:$0xff] }
 0x7ab   :  { %1805 = vmatprep.subr.bf16.mxu0 %v1642_v37  ;;  %1848 = vmatprep.subr.bf16.mxu1 %v1644_v38  ;;  %v1650_v42 = vld [vmem:[#allocation8 + $0x88] sm:$0xff]  ;;  %v1652_v44 = vld [vmem:[#allocation8 + $0x98] sm:$0xff]  ;;  %v1649_v45 = vld [vmem:[#allocation8 + $0x80] sm:$0xff] }
 0x7ac   :  { %v1651_v46 = vld [vmem:[#allocation8 + $0x90] sm:$0xff]  ;;  %v1658_v47 = vld [vmem:[#allocation8 + $0xc8] sm:$0xff]  ;;  %v1660_v48 = vld [vmem:[#allocation8 + $0xd8] sm:$0xff] }
 0x7ad   :  { %v1657_v49 = vld [vmem:[#allocation8 + $0xc0] sm:$0xff]  ;;  %v1659_v50 = vld [vmem:[#allocation8 + $0xd0] sm:$0xff]  ;;  %v1666_v5 = vld [vmem:[#allocation8 + $0x108] sm:$0xff] }
 0x7ae   :  { %1806 = vmatpush1.bf16.msra.mxu0 %v1641_v40  ;;  %1849 = vmatpush1.bf16.msra.mxu1 %v1643_v41  ;;  %v1668_v56 = vld [vmem:[#allocation8 + $0x118] sm:$0xff]  ;;  %v1665_v57 = vld [vmem:[#allocation8 + $0x100] sm:$0xff]  ;;  %v1667_v4 = vld [vmem:[#allocation8 + $0x110] sm:$0xff] }
 0x7af   :  { %1807 = vmatprep.subr.bf16.mxu0 %v1650_v42  ;;  %1850 = vmatprep.subr.bf16.mxu1 %v1652_v44  ;;  %v1674_v59 = vld [vmem:[#allocation8 + $0x148] sm:$0xff]  ;;  %v1676_v60 = vld [vmem:[#allocation8 + $0x158] sm:$0xff]  ;;  %v1673_v61 = vld [vmem:[#allocation8 + $0x140] sm:$0xff] }
 0x7b0   :  { %v1675_v62 = vld [vmem:[#allocation8 + $0x150] sm:$0xff]  ;;  %v1682_v33 = vld [vmem:[#allocation8 + $0x188] sm:$0xff]  ;;  %v1684_v29 = vld [vmem:[#allocation8 + $0x198] sm:$0xff] }
 0x7b1   :  { %v1681_v63 = vld [vmem:[#allocation8 + $0x180] sm:$0xff]  ;;  %v1683_v6 = vld [vmem:[#allocation8 + $0x190] sm:$0xff]  ;;  %v1690_v7 = vld [vmem:[#allocation8 + $0x1c8] sm:$0xff] }
 0x7b2   :  { %1808 = vmatpush1.bf16.msra.mxu0 %v1649_v45  ;;  %1851 = vmatpush1.bf16.msra.mxu1 %v1651_v46  ;;  %v1692_v8 = vld [vmem:[#allocation8 + $0x1d8] sm:$0xff]  ;;  %v1689_v9 = vld [vmem:[#allocation8 + $0x1c0] sm:$0xff]  ;;  %v1691_v10 = vld [vmem:[#allocation8 + $0x1d0] sm:$0xff] }
 0x7b3   :  { %1809 = vmatprep.subr.bf16.mxu0 %v1658_v47  ;;  %1852 = vmatprep.subr.bf16.mxu1 %v1660_v48  ;;  %v1698_v11 = vld [vmem:[#allocation8 + $0x208] sm:$0xff]  ;;  %v1700_v12 = vld [vmem:[#allocation8 + $0x218] sm:$0xff]  ;;  %v1697_v13 = vld [vmem:[#allocation8 + $0x200] sm:$0xff] }
 0x7b4   :  { %v1699_v14 = vld [vmem:[#allocation8 + $0x210] sm:$0xff]  ;;  %v1706_v15 = vld [vmem:[#allocation8 + $0x248] sm:$0xff]  ;;  %v1708_v16 = vld [vmem:[#allocation8 + $0x258] sm:$0xff] }
 0x7b5   :  { %v1705_v17 = vld [vmem:[#allocation8 + $0x240] sm:$0xff]  ;;  %v1707_v18 = vld [vmem:[#allocation8 + $0x250] sm:$0xff]  ;;  %v1714_v19 = vld [vmem:[#allocation8 + $0x288] sm:$0xff] }
 0x7b6   :  { %1810 = vmatpush1.bf16.msra.mxu0 %v1657_v49  ;;  %1853 = vmatpush1.bf16.msra.mxu1 %v1659_v50  ;;  %v1716_v20 = vld [vmem:[#allocation8 + $0x298] sm:$0xff]  ;;  %v1713_v21 = vld [vmem:[#allocation8 + $0x280] sm:$0xff]  ;;  %v1715_v22 = vld [vmem:[#allocation8 + $0x290] sm:$0xff] }
 0x7b7   :  { %1811 = vmatprep.subr.bf16.mxu0 %v1666_v5  ;;  %1854 = vmatprep.subr.bf16.mxu1 %v1668_v56  ;;  %v1722_v0 = vld [vmem:[#allocation8 + $0x2c8] sm:$0xff]  ;;  %v1724_v3 = vld [vmem:[#allocation8 + $0x2d8] sm:$0xff]  ;;  %v1721_v23 = vld [vmem:[#allocation8 + $0x2c0] sm:$0xff] }
 0x7b8   :  { %v1723_v24 = vld [vmem:[#allocation8 + $0x2d0] sm:$0xff]  ;;  %v1730_v25 = vld [vmem:[#allocation8 + $0x308] sm:$0xff]  ;;  %v1732_v26 = vld [vmem:[#allocation8 + $0x318] sm:$0xff] }
 0x7b9   :  { %v1729_v27 = vld [vmem:[#allocation8 + $0x300] sm:$0xff]  ;;  %v1731_v1 = vld [vmem:[#allocation8 + $0x310] sm:$0xff]  ;;  %v1738_v30 = vld [vmem:[#allocation8 + $0x348] sm:$0xff] }
 0x7ba   :  { %1812 = vmatpush1.bf16.msra.mxu0 %v1665_v57  ;;  %1855 = vmatpush1.bf16.msra.mxu1 %v1667_v4  ;;  %v1740_v32 = vld [vmem:[#allocation8 + $0x358] sm:$0xff]  ;;  %v1737_v34 = vld [vmem:[#allocation8 + $0x340] sm:$0xff]  ;;  %v1739_v35 = vld [vmem:[#allocation8 + $0x350] sm:$0xff] }
 0x7bb   :  { %1813 = vmatprep.subr.bf16.mxu0 %v1674_v59  ;;  %1856 = vmatprep.subr.bf16.mxu1 %v1676_v60  ;;  %v1746_v36 = vld [vmem:[#allocation8 + $0x388] sm:$0xff]  ;;  %v1748_v37 = vld [vmem:[#allocation8 + $0x398] sm:$0xff]  ;;  %v1745_v38 = vld [vmem:[#allocation8 + $0x380] sm:$0xff] }
 0x7bc   :  { %v1747_v40 = vld [vmem:[#allocation8 + $0x390] sm:$0xff]  ;;  %v1754_v41 = vld [vmem:[#allocation8 + $0x3c8] sm:$0xff]  ;;  %v1756_v42 = vld [vmem:[#allocation8 + $0x3d8] sm:$0xff] }
 0x7bd   :  { %v1753_v44 = vld [vmem:[#allocation8 + $0x3c0] sm:$0xff]  ;;  %v1755_v45 = vld [vmem:[#allocation8 + $0x3d0] sm:$0xff]  ;;  %v1638_v46 = vld [vmem:[#allocation8 + $0x28] sm:$0xff] }
 0x7be   :  { %1814 = vmatpush1.bf16.msra.mxu0 %v1673_v61  ;;  %1857 = vmatpush1.bf16.msra.mxu1 %v1675_v62  ;;  %v1640_v47 = vld [vmem:[#allocation8 + $0x38] sm:$0xff]  ;;  %v1637_v48 = vld [vmem:[#allocation8 + $0x20] sm:$0xff]  ;;  %v1639_v49 = vld [vmem:[#allocation8 + $0x30] sm:$0xff] }
 0x7bf   :  { %1815 = vmatprep.subr.bf16.mxu0 %v1682_v33  ;;  %1858 = vmatprep.subr.bf16.mxu1 %v1684_v29  ;;  %v1646_v50 = vld [vmem:[#allocation8 + $0x68] sm:$0xff]  ;;  %v1648_v5 = vld [vmem:[#allocation8 + $0x78] sm:$0xff]  ;;  %v1645_v56 = vld [vmem:[#allocation8 + $0x60] sm:$0xff] }
 0x7c0   :  { %v1647_v57 = vld [vmem:[#allocation8 + $0x70] sm:$0xff]  ;;  %v1654_v4 = vld [vmem:[#allocation8 + $0xa8] sm:$0xff]  ;;  %v1656_v59 = vld [vmem:[#allocation8 + $0xb8] sm:$0xff] }
 0x7c1   :  { %v1653_v60 = vld [vmem:[#allocation8 + $0xa0] sm:$0xff]  ;;  %v1655_v61 = vld [vmem:[#allocation8 + $0xb0] sm:$0xff]  ;;  %v1662_v62 = vld [vmem:[#allocation8 + $0xe8] sm:$0xff] }
 0x7c2   :  { %1816 = vmatpush1.bf16.msra.mxu0 %v1681_v63  ;;  %1859 = vmatpush1.bf16.msra.mxu1 %v1683_v6  ;;  %v1664_v33 = vld [vmem:[#allocation8 + $0xf8] sm:$0xff]  ;;  %v1661_v29 = vld [vmem:[#allocation8 + $0xe0] sm:$0xff]  ;;  %v1663_v63 = vld [vmem:[#allocation8 + $0xf0] sm:$0xff] }
 0x7c3   :  { %1817 = vmatprep.subr.bf16.mxu0 %v1690_v7  ;;  %1860 = vmatprep.subr.bf16.mxu1 %v1692_v8  ;;  %v1670_v6 = vld [vmem:[#allocation8 + $0x128] sm:$0xff]  ;;  %v1672_v7 = vld [vmem:[#allocation8 + $0x138] sm:$0xff]  ;;  %v1671_v8 = vld [vmem:[#allocation8 + $0x130] sm:$0xff] }
 0x7c6   :  { %1818 = vmatpush1.bf16.msra.mxu0 %v1689_v9  ;;  %1861 = vmatpush1.bf16.msra.mxu1 %v1691_v10  ;;  %v1678_v9 = vld [vmem:[#allocation8 + $0x168] sm:$0xff]  ;;  %v1680_v10 = vld [vmem:[#allocation8 + $0x178] sm:$0xff] }
 0x7c7   :  { %1819 = vmatprep.subr.bf16.mxu0 %v1698_v11  ;;  %1862 = vmatprep.subr.bf16.mxu1 %v1700_v12  ;;  %v1677_v11 = vld [vmem:[#allocation8 + $0x160] sm:$0xff]  ;;  %v1679_v12 = vld [vmem:[#allocation8 + $0x170] sm:$0xff] }
 0x7ca   :  { %1820 = vmatpush1.bf16.msra.mxu0 %v1697_v13  ;;  %1863 = vmatpush1.bf16.msra.mxu1 %v1699_v14  ;;  %v1686_v13 = vld [vmem:[#allocation8 + $0x1a8] sm:$0xff]  ;;  %v1688_v14 = vld [vmem:[#allocation8 + $0x1b8] sm:$0xff] }
 0x7cb   :  { %1821 = vmatprep.subr.bf16.mxu0 %v1706_v15  ;;  %1864 = vmatprep.subr.bf16.mxu1 %v1708_v16  ;;  %v1685_v15 = vld [vmem:[#allocation8 + $0x1a0] sm:$0xff]  ;;  %v1687_v16 = vld [vmem:[#allocation8 + $0x1b0] sm:$0xff] }
 0x7ce   :  { %1822 = vmatpush1.bf16.msra.mxu0 %v1705_v17  ;;  %1865 = vmatpush1.bf16.msra.mxu1 %v1707_v18  ;;  %v1694_v17 = vld [vmem:[#allocation8 + $0x1e8] sm:$0xff]  ;;  %v1696_v18 = vld [vmem:[#allocation8 + $0x1f8] sm:$0xff] }
 0x7cf   :  { %1823 = vmatprep.subr.bf16.mxu0 %v1714_v19  ;;  %1866 = vmatprep.subr.bf16.mxu1 %v1716_v20  ;;  %v1693_v19 = vld [vmem:[#allocation8 + $0x1e0] sm:$0xff]  ;;  %v1695_v20 = vld [vmem:[#allocation8 + $0x1f0] sm:$0xff] }
 0x7d2   :  { %1824 = vmatpush1.bf16.msra.mxu0 %v1713_v21  ;;  %1867 = vmatpush1.bf16.msra.mxu1 %v1715_v22  ;;  %v1702_v21 = vld [vmem:[#allocation8 + $0x228] sm:$0xff]  ;;  %v1704_v22 = vld [vmem:[#allocation8 + $0x238] sm:$0xff] }
 0x7d3   :  { %1825 = vmatprep.subr.bf16.mxu0 %v1722_v0  ;;  %1868 = vmatprep.subr.bf16.mxu1 %v1724_v3  ;;  %v1701_v0 = vld [vmem:[#allocation8 + $0x220] sm:$0xff]  ;;  %v1703_v3 = vld [vmem:[#allocation8 + $0x230] sm:$0xff] }
 0x7d6   :  { %1826 = vmatpush1.bf16.msra.mxu0 %v1721_v23  ;;  %1869 = vmatpush1.bf16.msra.mxu1 %v1723_v24  ;;  %v1710_v23 = vld [vmem:[#allocation8 + $0x268] sm:$0xff]  ;;  %v1712_v24 = vld [vmem:[#allocation8 + $0x278] sm:$0xff] }
 0x7d7   :  { %1827 = vmatprep.subr.bf16.mxu0 %v1730_v25  ;;  %1870 = vmatprep.subr.bf16.mxu1 %v1732_v26  ;;  %v1709_v25 = vld [vmem:[#allocation8 + $0x260] sm:$0xff]  ;;  %v1711_v26 = vld [vmem:[#allocation8 + $0x270] sm:$0xff] }
 0x7da   :  { %1828 = vmatpush1.bf16.msra.mxu0 %v1729_v27  ;;  %1871 = vmatpush1.bf16.msra.mxu1 %v1731_v1  ;;  %v1718_v27 = vld [vmem:[#allocation8 + $0x2a8] sm:$0xff]  ;;  %v1720_v1 = vld [vmem:[#allocation8 + $0x2b8] sm:$0xff] }
 0x7db   :  { %1829 = vmatprep.subr.bf16.mxu0 %v1738_v30  ;;  %1872 = vmatprep.subr.bf16.mxu1 %v1740_v32  ;;  %v1717_v30 = vld [vmem:[#allocation8 + $0x2a0] sm:$0xff]  ;;  %v1719_v32 = vld [vmem:[#allocation8 + $0x2b0] sm:$0xff] }
 0x7de   :  { %1830 = vmatpush1.bf16.msra.mxu0 %v1737_v34  ;;  %1873 = vmatpush1.bf16.msra.mxu1 %v1739_v35  ;;  %v1726_v34 = vld [vmem:[#allocation8 + $0x2e8] sm:$0xff]  ;;  %v1728_v35 = vld [vmem:[#allocation8 + $0x2f8] sm:$0xff] }
 0x7df   :  { %1831 = vmatprep.subr.bf16.mxu0 %v1746_v36  ;;  %1874 = vmatprep.subr.bf16.mxu1 %v1748_v37  ;;  %v1725_v36 = vld [vmem:[#allocation8 + $0x2e0] sm:$0xff]  ;;  %v1727_v37 = vld [vmem:[#allocation8 + $0x2f0] sm:$0xff] }
 0x7e2   :  { %1832 = vmatpush1.bf16.msra.mxu0 %v1745_v38  ;;  %1875 = vmatpush1.bf16.msra.mxu1 %v1747_v40  ;;  %v1734_v38 = vld [vmem:[#allocation8 + $0x328] sm:$0xff]  ;;  %v1736_v40 = vld [vmem:[#allocation8 + $0x338] sm:$0xff] }
 0x7e3   :  { %1833 = vmatprep.subr.bf16.mxu0 %v1754_v41  ;;  %1876 = vmatprep.subr.bf16.mxu1 %v1756_v42  ;;  %v1733_v41 = vld [vmem:[#allocation8 + $0x320] sm:$0xff]  ;;  %v1735_v42 = vld [vmem:[#allocation8 + $0x330] sm:$0xff] }
 0x7e6   :  { %1834 = vmatpush1.bf16.msra.mxu0 %v1753_v44  ;;  %1877 = vmatpush1.bf16.msra.mxu1 %v1755_v45  ;;  %v1742_v44 = vld [vmem:[#allocation8 + $0x368] sm:$0xff]  ;;  %v1744_v45 = vld [vmem:[#allocation8 + $0x378] sm:$0xff] }
 0x7e7   :  { %1889 = vmatprep.subr.bf16.mxu0 %v1638_v46  ;;  %1932 = vmatprep.subr.bf16.mxu1 %v1640_v47  ;;  %v1741_v46 = vld [vmem:[#allocation8 + $0x360] sm:$0xff]  ;;  %v1743_v47 = vld [vmem:[#allocation8 + $0x370] sm:$0xff] }
 0x7e9   :  { %1836 = vmatmul.mubr.bf16.vlgmr.msra.gmra.mrb[16].mxu0 %v3293_v28  ;;  %1879 = vmatmul.mubr.bf16.vlgmr.msra.gmra.mrb[20].mxu1 %v3293_v28 }
 0x7ea   :  { %1890 = vmatpush1.bf16.msra.mxu0 %v1637_v48  ;;  %1933 = vmatpush1.bf16.msra.mxu1 %v1639_v49  ;;  %v1750_v48 = vld [vmem:[#allocation8 + $0x3a8] sm:$0xff]  ;;  %v1752_v49 = vld [vmem:[#allocation8 + $0x3b8] sm:$0xff] }
 0x7eb   :  { %1891 = vmatprep.subr.bf16.mxu0 %v1646_v50  ;;  %1934 = vmatprep.subr.bf16.mxu1 %v1648_v5  ;;  %v1749_v50 = vld [vmem:[#allocation8 + $0x3a0] sm:$0xff]  ;;  %v1751_v5 = vld [vmem:[#allocation8 + $0x3b0] sm:$0xff] }
 0x7ec   :  { %1921 = vmatprep.mubr.bf16.mxu0 %v3295_v31  ;;  %1964 = vmatprep.mubr.bf16.mxu1 %v3295_v31  ;;  %v1669_v31 = vld [vmem:[#allocation8 + $0x120] sm:$0xff] }
 0x7ee   :  { %1892 = vmatpush1.bf16.msra.mxu0 %v1645_v56  ;;  %1935 = vmatpush1.bf16.msra.mxu1 %v1647_v57  ;;  %v1758_v56 = vld [vmem:[#allocation8 + $0x3e8] sm:$0xff]  ;;  %v1760_v57 = vld [vmem:[#allocation8 + $0x3f8] sm:$0xff] }
 0x7ef   :  { %1893 = vmatprep.subr.bf16.mxu0 %v1654_v4  ;;  %1936 = vmatprep.subr.bf16.mxu1 %v1656_v59  ;;  %v1757_v4 = vld [vmem:[#allocation8 + $0x3e0] sm:$0xff]  ;;  %v1759_v59 = vld [vmem:[#allocation8 + $0x3f0] sm:$0xff] }
 0x7f2   :  { %1894 = vmatpush1.bf16.msra.mxu0 %v1653_v60  ;;  %1937 = vmatpush1.bf16.msra.mxu1 %v1655_v61 }
 0x7f3   :  { %1895 = vmatprep.subr.bf16.mxu0 %v1662_v62  ;;  %1938 = vmatprep.subr.bf16.mxu1 %v1664_v33 }
 0x7f6   :  { %1896 = vmatpush1.bf16.msra.mxu0 %v1661_v29  ;;  %1939 = vmatpush1.bf16.msra.mxu1 %v1663_v63 }
 0x7f7   :  { %1897 = vmatprep.subr.bf16.mxu0 %v1670_v6  ;;  %1940 = vmatprep.subr.bf16.mxu1 %v1672_v7 }
 0x7fa   :  { %1898 = vmatpush1.bf16.msra.mxu0 %v1669_v31  ;;  %1941 = vmatpush1.bf16.msra.mxu1 %v1671_v8  ;;  %v1761_v31 = vld [vmem:[%s3398_s16] sm:$0xff] }
 0x7fb   :  { %1899 = vmatprep.subr.bf16.mxu0 %v1678_v9  ;;  %1942 = vmatprep.subr.bf16.mxu1 %v1680_v10  ;;  %v1766_v8 = vrot.slane %v1761_v31, %v3206_v52  ;;  %v1774_v9 = vrot.slane %v1761_v31, %v3209_v53  ;;  %v1770_v10 = vrot.slane %v1761_v31, %v3215_v55 }
 0x7fe   :  { %1900 = vmatpush1.bf16.msra.mxu0 %v1677_v11  ;;  %1943 = vmatpush1.bf16.msra.mxu1 %v1679_v12 }
 0x7ff   :  { %1901 = vmatprep.subr.bf16.mxu0 %v1686_v13  ;;  %1944 = vmatprep.subr.bf16.mxu1 %v1688_v14  ;;  %v1781_v13 = vsub.s32 4, %v3203_v51 }
 0x802   :  { %1902 = vmatpush1.bf16.msra.mxu0 %v1685_v15  ;;  %1945 = vmatpush1.bf16.msra.mxu1 %v1687_v16  ;;  %v1789_v16 = vsub.s32 6, %v3203_v51 }
 0x803   :  { %1903 = vmatprep.subr.bf16.mxu0 %v1694_v17  ;;  %1946 = vmatprep.subr.bf16.mxu1 %v1696_v18 }
 0x806   :  { %1904 = vmatpush1.bf16.msra.mxu0 %v1693_v19  ;;  %1947 = vmatpush1.bf16.msra.mxu1 %v1695_v20  ;;  %v1785_v19 = vsub.s32 5, %v3203_v51  ;;  %v1793_v20 = vsub.s32 7, %v3203_v51 }
 0x807   :  { %1905 = vmatprep.subr.bf16.mxu0 %v1702_v21  ;;  %1948 = vmatprep.subr.bf16.mxu1 %v1704_v22 }
 0x80a   :  { %1906 = vmatpush1.bf16.msra.mxu0 %v1701_v0  ;;  %1949 = vmatpush1.bf16.msra.mxu1 %v1703_v3  ;;  %v1782_v0 = vrot.slane %v1761_v31, %v1781_v13 }
 0x80b   :  { %1907 = vmatprep.subr.bf16.mxu0 %v1710_v23  ;;  %1950 = vmatprep.subr.bf16.mxu1 %v1712_v24 }
 0x80e   :  { %1908 = vmatpush1.bf16.msra.mxu0 %v1709_v25  ;;  %1951 = vmatpush1.bf16.msra.mxu1 %v1711_v26  ;;  %v1790_v26 = vrot.slane %v1761_v31, %v1789_v16 }
 0x80f   :  { %1909 = vmatprep.subr.bf16.mxu0 %v1718_v27  ;;  %1952 = vmatprep.subr.bf16.mxu1 %v1720_v1 }
 0x812   :  { %1910 = vmatpush1.bf16.msra.mxu0 %v1717_v30  ;;  %1953 = vmatpush1.bf16.msra.mxu1 %v1719_v32  ;;  %v1786_v30 = vrot.slane %v1761_v31, %v1785_v19  ;;  %v1794_v32 = vrot.slane %v1761_v31, %v1793_v20 }
 0x813   :  { %1911 = vmatprep.subr.bf16.mxu0 %v1726_v34  ;;  %1954 = vmatprep.subr.bf16.mxu1 %v1728_v35 }
 0x816   :  { %1912 = vmatpush1.bf16.msra.mxu0 %v1725_v36  ;;  %1955 = vmatpush1.bf16.msra.mxu1 %v1727_v37 }
 0x817   :  { %1913 = vmatprep.subr.bf16.mxu0 %v1734_v38  ;;  %1956 = vmatprep.subr.bf16.mxu1 %v1736_v40 }
 0x81a   :  { %1914 = vmatpush1.bf16.msra.mxu0 %v1733_v41  ;;  %1957 = vmatpush1.bf16.msra.mxu1 %v1735_v42 }
 0x81b   :  { %1915 = vmatprep.subr.bf16.mxu0 %v1742_v44  ;;  %1958 = vmatprep.subr.bf16.mxu1 %v1744_v45 }
 0x81e   :  { %1916 = vmatpush1.bf16.msra.mxu0 %v1741_v46  ;;  %1959 = vmatpush1.bf16.msra.mxu1 %v1743_v47 }
 0x81f   :  { %1917 = vmatprep.subr.bf16.mxu0 %v1750_v48  ;;  %1960 = vmatprep.subr.bf16.mxu1 %v1752_v49 }
 0x822   :  { %1918 = vmatpush1.bf16.msra.mxu0 %v1749_v50  ;;  %1961 = vmatpush1.bf16.msra.mxu1 %v1751_v5 }
 0x823   :  { %1919 = vmatprep.subr.bf16.mxu0 %v1758_v56  ;;  %1962 = vmatprep.subr.bf16.mxu1 %v1760_v57 }
 0x826   :  { %1920 = vmatpush1.bf16.msra.mxu0 %v1757_v4  ;;  %1963 = vmatpush1.bf16.msra.mxu1 %v1759_v59 }
 0x829   :  { %1922 = vmatmul.mubr.bf16.vlgmr.msra.gmra.mrb[20].mxu0 %v3293_v28  ;;  %1965 = vmatmul.mubr.bf16.vlgmr.msra.gmra.mrb[24].mxu1 %v3293_v28  ;;  %v1778_v28 = vrot.slane %v1761_v31, %v3218_v2 }
 0x8bc   :  { %v1837_v60 = vpop.f32.mrb[16].mxu0  ;;  %v1880_v61 = vpop.f32.mrb[20].mxu1 }
 0x8bd   :  { %v1839_v62 = vpop.f32.mrb[17].mxu0  ;;  %v1882_v33 = vpop.f32.mrb[21].mxu1  ;;  %v1838_v11 = vadd.f32 %v1837_v60, %v1766_v8  ;;  %v1881_v12 = vadd.f32 %v1880_v61, %v1774_v9 }
 0x8be   :  { %v1841_v29 = vpop.f32.mrb[18].mxu0  ;;  %v1884_v63 = vpop.f32.mrb[22].mxu1  ;;  %v1840_v14 = vadd.f32 %v1839_v62, %v1770_v10  ;;  %v1883_v15 = vadd.f32 %v1882_v33, %v1778_v28 }
 0x8bf   :  { %v1843_v6 = vpop.f32.mrb[19].mxu0  ;;  %v1886_v7 = vpop.f32.mrb[23].mxu1  ;;  %v1842_v17 = vadd.f32 %v1841_v29, %v1766_v8  ;;  %v1885_v18 = vadd.f32 %v1884_v63, %v1774_v9  ;;  %vm1975_vm5 = vcmp.gt.f32.partialorder %v1838_v11, 0.0  ;;  %v1983_v21 = vmul.f32 0.01, %v1838_v11 }
 0x8c0   :  { %v1985_v22 = vmul.f32 0.01, %v1881_v12  ;;  %vm1977_vm6 = vcmp.gt.f32.partialorder %v1881_v12, 0.0  ;;  %v1984_v3 = vmul.f32 0.01, %v1840_v14  ;;  %v1844_v24 = vadd.f32 %v1843_v6, %v1770_v10 }
 0x8c1   :  { %v1986_v23 = vmul.f32 0.01, %v1883_v15  ;;  %vm1976_vm7 = vcmp.gt.f32.partialorder %v1840_v14, 0.0  ;;  %vm1978_vm8 = vcmp.gt.f32.partialorder %v1883_v15, 0.0  ;;  %v1887_v25 = vadd.f32 %v1886_v7, %v1778_v28 }
 0x8c2   :  { %v1987_v27 = vmul.f32 0.01, %v1842_v17  ;;  %v1989_v1 = vmul.f32 0.01, %v1885_v18  ;;  %vm1979_vm9 = vcmp.gt.f32.partialorder %v1842_v17, 0.0  ;;  %vm1981_vm10 = vcmp.gt.f32.partialorder %v1885_v18, 0.0 }
 0x8c3   :  { %v1991_v34 = vsel %vm1975_vm5, %v1838_v11, %v1983_v21  ;;  %v1993_v35 = vsel %vm1977_vm6, %v1881_v12, %v1985_v22  ;;  %vm1980_vm11 = vcmp.gt.f32.partialorder %v1844_v24, 0.0  ;;  %v1988_v36 = vmul.f32 0.01, %v1844_v24 }
 0x8c4   :  { %v1992_v40 = vsel %vm1976_vm7, %v1840_v14, %v1984_v3  ;;  %v1994_v41 = vsel %vm1978_vm8, %v1883_v15, %v1986_v23  ;;  %vm1982_vm12 = vcmp.gt.f32.partialorder %v1887_v25, 0.0  ;;  %v1990_v42 = vmul.f32 0.01, %v1887_v25 }
 0x8c5   :  { %v1995_v5 = vsel %vm1979_vm9, %v1842_v17, %v1987_v27  ;;  %v1997_v57 = vsel %vm1981_vm10, %v1885_v18, %v1989_v1  ;;  %v1996_v9 = vsel %vm1980_vm11, %v1844_v24, %v1988_v36 }
 0x8c6   :  { %v1998_v10 = vsel %vm1982_vm12, %v1887_v25, %v1990_v42 }
 0x8fc   :  { %v1923_v37 = vpop.f32.mrb[20].mxu0  ;;  %v1966_v38 = vpop.f32.mrb[24].mxu1 }
 0x8fd   :  { %v1924_v44 = vadd.f32 %v1923_v37, %v1782_v0  ;;  %v1967_v45 = vadd.f32 %v1966_v38, %v1790_v26  ;;  %v1925_v46 = vpop.f32.mrb[21].mxu0  ;;  %v1968_v47 = vpop.f32.mrb[25].mxu1 }
 0x8fe   :  { %v1926_v48 = vadd.f32 %v1925_v46, %v1786_v30  ;;  %v1969_v49 = vadd.f32 %v1968_v47, %v1794_v32  ;;  %v1927_v50 = vpop.f32.mrb[22].mxu0  ;;  %v1970_v56 = vpop.f32.mrb[26].mxu1 }
 0x8ff   :  { %v1999_v4 = vadd.f32 %v1991_v34, %v1924_v44  ;;  %v2001_v59 = vadd.f32 %v1993_v35, %v1967_v45  ;;  %v1928_v60 = vadd.f32 %v1927_v50, %v1782_v0  ;;  %v1971_v61 = vadd.f32 %v1970_v56, %v1790_v26  ;;  %v1929_v62 = vpop.f32.mrb[23].mxu0  ;;  %v1972_v33 = vpop.f32.mrb[27].mxu1 }
 0x900   :  { %v2000_v29 = vadd.f32 %v1992_v40, %v1926_v48  ;;  %v2002_v63 = vadd.f32 %v1994_v41, %v1969_v49  ;;  %v1930_v6 = vadd.f32 %v1929_v62, %v1786_v30  ;;  %v1973_v7 = vadd.f32 %v1972_v33, %v1794_v32 }
 0x901   :  { %v2003_v31 = vadd.f32 %v1995_v5, %v1928_v60  ;;  %v2005_v8 = vadd.f32 %v1997_v57, %v1971_v61 }
 0x902   :  { %v2004_v28 = vadd.f32 %v1996_v9, %v1930_v6  ;;  %v2006_v11 = vadd.f32 %v1998_v10, %v1973_v7 }
 0x903   :  { %v3325_v12 = vpack.c.bf16 %v2003_v31, %v1999_v4  ;;  %v3327_v14 = vpack.c.bf16 %v2005_v8, %v2001_v59 }
 0x904   :  { %v3329_v15 = vpack.c.bf16 %v2004_v28, %v2000_v29  ;;  %v3331_v16 = vpack.c.bf16 %v2006_v11, %v2002_v63 }
 0x905   :  { %2900 = dma.done.wait [#allocation10 + $0x7], 20480 }
 0x906   :  { %2901 = vsyncadd [#allocation10 + $0x7], 4294946816  ;;  %2238 = vmatprep.mubr.bf16.mxu0 %v3329_v15  ;;  %2324 = vmatprep.mubr.bf16.mxu1 %v3329_v15  ;;  %2470 = vst [vmem:[#allocation17] sm:$0xff] %v3271_v54  ;;  %v2020_v17 = vld [vmem:[#allocation9 + $0x8] sm:$0xff]  ;;  %v2022_v18 = vld [vmem:[#allocation9 + $0x18] sm:$0xff]  ;;  %s2948_s16 = smov [#allocation17]  }
 0x907   :  { %2471 = vst [vmem:[#allocation17 + $0x8] sm:$0xff] %v3264_v39  ;;  %2472 = vst [vmem:[#allocation17 + $0x10] sm:$0xff] %v3274_v58  ;;  %v2019_v19 = vld [vmem:[#allocation9] sm:$0xff]  ;;  %2206 = vmatprep.subr.bf16.mxu0 %v2020_v17  ;;  %2292 = vmatprep.subr.bf16.mxu1 %v2022_v18  ;;  %v2021_v20 = vld [vmem:[#allocation9 + $0x10] sm:$0xff]  ;;  %s2491_s3 = sshll.u32 %s2948_s16, 4  ;;  %s2492_s3 = int_to_ptr.vmem [resolvable:$true] %s2491_s3 }
 0x908   :  { %2473 = vst [vmem:[#allocation17 + $0x18] sm:$0xff] %v3267_v43  ;;  %v2025_v21 = vld [vmem:[#allocation9 + $0x30] sm:$0xff]  ;;  %v2027_v22 = vld [vmem:[#allocation9 + $0x40] sm:$0xff]  ;;  %2207 = vmatpush1.bf16.msra.mxu0 %v2019_v19  ;;  %2293 = vmatpush1.bf16.msra.mxu1 %v2021_v20  ;;  %v2024_v0 = vld [vmem:[#allocation9 + $0x28] sm:$0xff]  ;;  %s2838_s30 = scalar_lea.vmem %s2492_s3, 512  ;;  %p2843_p11 = scmp.lt.s32.totalorder %s2492_s3, %s2492_s3 }
 0x909   :  { %2208 = vmatprep.subr.bf16.mxu0 %v2025_v21  ;;  %2294 = vmatprep.subr.bf16.mxu1 %v2027_v22  ;;  %v2026_v54 = vld [vmem:[#allocation9 + $0x38] sm:$0xff]  ;;  %v2032_v39 = vld [vmem:[#allocation9 + $0x68] sm:$0xff]  ;;  %v2029_v43 = vld [vmem:[#allocation9 + $0x50] sm:$0xff]  ;;  %p2839_p10 = scmp.ne.s32.totalorder %s2492_s3, %s2838_s30  ;;  %p2844_p12 = scmp.lt.s32.totalorder %s2838_s30, %s2838_s30 }
 0x90a   :  { %v2030_v3 = vld [vmem:[#allocation9 + $0x58] sm:$0xff]  ;;  %v2031_v58 = vld [vmem:[#allocation9 + $0x60] sm:$0xff]  ;;  %v2037_v24 = vld [vmem:[#allocation9 + $0x90] sm:$0xff] }
 0x90b   :  { %v2035_v23 = vld [vmem:[#allocation9 + $0x80] sm:$0xff]  ;;  %v2034_v25 = vld [vmem:[#allocation9 + $0x78] sm:$0xff]  ;;  %v2036_v26 = vld [vmem:[#allocation9 + $0x88] sm:$0xff]  ;;  %p2845_p13 = por %p2844_p12, %p2843_p11 }
 0x90c   :  { %2209 = vmatpush1.bf16.msra.mxu0 %v2024_v0  ;;  %2295 = vmatpush1.bf16.msra.mxu1 %v2026_v54  ;;  %v2040_v27 = vld [vmem:[#allocation9 + $0xa8] sm:$0xff]  ;;  %v2042_v1 = vld [vmem:[#allocation9 + $0xb8] sm:$0xff]  ;;  %v2039_v30 = vld [vmem:[#allocation9 + $0xa0] sm:$0xff] }
 0x90d   :  { %2210 = vmatprep.subr.bf16.mxu0 %v2030_v3  ;;  %2296 = vmatprep.subr.bf16.mxu1 %v2032_v39  ;;  %v2041_v32 = vld [vmem:[#allocation9 + $0xb0] sm:$0xff]  ;;  %v2047_v35 = vld [vmem:[#allocation9 + $0xe0] sm:$0xff]  ;;  %v2044_v36 = vld [vmem:[#allocation9 + $0xc8] sm:$0xff]  ;;  %p2846_p0 = pnand %p2845_p13, %p2839_p10 }
 0x90e   :  { %v2045_v34 = vld [vmem:[#allocation9 + $0xd0] sm:$0xff]  ;;  %v2046_v37 = vld [vmem:[#allocation9 + $0xd8] sm:$0xff]  ;;  %v2052_v40 = vld [vmem:[#allocation9 + $0x108] sm:$0xff] }
 0x90f   :  { %v2050_v38 = vld [vmem:[#allocation9 + $0xf8] sm:$0xff]  ;;  %v2049_v41 = vld [vmem:[#allocation9 + $0xf0] sm:$0xff]  ;;  %v2051_v42 = vld [vmem:[#allocation9 + $0x100] sm:$0xff] }
 0x910   :  { %2211 = vmatpush1.bf16.msra.mxu0 %v2029_v43  ;;  %2297 = vmatpush1.bf16.msra.mxu1 %v2031_v58  ;;  %v2055_v44 = vld [vmem:[#allocation9 + $0x120] sm:$0xff]  ;;  %v2057_v45 = vld [vmem:[#allocation9 + $0x130] sm:$0xff]  ;;  %v2054_v46 = vld [vmem:[#allocation9 + $0x118] sm:$0xff] }
 0x911   :  { %2212 = vmatprep.subr.bf16.mxu0 %v2035_v23  ;;  %2298 = vmatprep.subr.bf16.mxu1 %v2037_v24  ;;  %v2056_v47 = vld [vmem:[#allocation9 + $0x128] sm:$0xff]  ;;  %v2062_v49 = vld [vmem:[#allocation9 + $0x158] sm:$0xff]  ;;  %v2059_v50 = vld [vmem:[#allocation9 + $0x140] sm:$0xff] }
 0x912   :  { %v2060_v48 = vld [vmem:[#allocation9 + $0x148] sm:$0xff]  ;;  %v2061_v5 = vld [vmem:[#allocation9 + $0x150] sm:$0xff]  ;;  %v2067_v57 = vld [vmem:[#allocation9 + $0x180] sm:$0xff] }
 0x913   :  { %v2065_v56 = vld [vmem:[#allocation9 + $0x170] sm:$0xff]  ;;  %v2064_v4 = vld [vmem:[#allocation9 + $0x168] sm:$0xff]  ;;  %v2066_v59 = vld [vmem:[#allocation9 + $0x178] sm:$0xff] }
 0x914   :  { %2213 = vmatpush1.bf16.msra.mxu0 %v2034_v25  ;;  %2299 = vmatpush1.bf16.msra.mxu1 %v2036_v26  ;;  %v2070_v60 = vld [vmem:[#allocation9 + $0x198] sm:$0xff]  ;;  %v2072_v61 = vld [vmem:[#allocation9 + $0x1a8] sm:$0xff]  ;;  %v2069_v62 = vld [vmem:[#allocation9 + $0x190] sm:$0xff] }
 0x915   :  { %2214 = vmatprep.subr.bf16.mxu0 %v2040_v27  ;;  %2300 = vmatprep.subr.bf16.mxu1 %v2042_v1  ;;  %v2071_v33 = vld [vmem:[#allocation9 + $0x1a0] sm:$0xff]  ;;  %v2077_v63 = vld [vmem:[#allocation9 + $0x1d0] sm:$0xff]  ;;  %v2074_v6 = vld [vmem:[#allocation9 + $0x1b8] sm:$0xff] }
 0x916   :  { %v2075_v29 = vld [vmem:[#allocation9 + $0x1c0] sm:$0xff]  ;;  %v2076_v7 = vld [vmem:[#allocation9 + $0x1c8] sm:$0xff]  ;;  %v2082_v8 = vld [vmem:[#allocation9 + $0x1f8] sm:$0xff] }
 0x917   :  { %v2080_v31 = vld [vmem:[#allocation9 + $0x1e8] sm:$0xff]  ;;  %v2079_v9 = vld [vmem:[#allocation9 + $0x1e0] sm:$0xff]  ;;  %v2081_v10 = vld [vmem:[#allocation9 + $0x1f0] sm:$0xff] }
 0x918   :  { %2215 = vmatpush1.bf16.msra.mxu0 %v2039_v30  ;;  %2301 = vmatpush1.bf16.msra.mxu1 %v2041_v32  ;;  %v2085_v28 = vld [vmem:[#allocation9 + $0x210] sm:$0xff]  ;;  %v2087_v11 = vld [vmem:[#allocation9 + $0x220] sm:$0xff]  ;;  %v2084_v17 = vld [vmem:[#allocation9 + $0x208] sm:$0xff] }
 0x919   :  { %2216 = vmatprep.subr.bf16.mxu0 %v2045_v34  ;;  %2302 = vmatprep.subr.bf16.mxu1 %v2047_v35  ;;  %v2086_v18 = vld [vmem:[#allocation9 + $0x218] sm:$0xff]  ;;  %v2092_v20 = vld [vmem:[#allocation9 + $0x248] sm:$0xff]  ;;  %v2089_v21 = vld [vmem:[#allocation9 + $0x230] sm:$0xff] }
 0x91a   :  { %v2090_v19 = vld [vmem:[#allocation9 + $0x238] sm:$0xff]  ;;  %v2091_v22 = vld [vmem:[#allocation9 + $0x240] sm:$0xff]  ;;  %v2097_v54 = vld [vmem:[#allocation9 + $0x270] sm:$0xff] }
 0x91b   :  { %v2095_v0 = vld [vmem:[#allocation9 + $0x260] sm:$0xff]  ;;  %v2094_v3 = vld [vmem:[#allocation9 + $0x258] sm:$0xff]  ;;  %v2096_v39 = vld [vmem:[#allocation9 + $0x268] sm:$0xff] }
 0x91c   :  { %2217 = vmatpush1.bf16.msra.mxu0 %v2044_v36  ;;  %2303 = vmatpush1.bf16.msra.mxu1 %v2046_v37  ;;  %v2100_v43 = vld [vmem:[#allocation9 + $0x288] sm:$0xff]  ;;  %v2102_v58 = vld [vmem:[#allocation9 + $0x298] sm:$0xff]  ;;  %v2099_v23 = vld [vmem:[#allocation9 + $0x280] sm:$0xff] }
 0x91d   :  { %2218 = vmatprep.subr.bf16.mxu0 %v2050_v38  ;;  %2304 = vmatprep.subr.bf16.mxu1 %v2052_v40  ;;  %v2101_v24 = vld [vmem:[#allocation9 + $0x290] sm:$0xff]  ;;  %v2107_v26 = vld [vmem:[#allocation9 + $0x2c0] sm:$0xff]  ;;  %v2104_v27 = vld [vmem:[#allocation9 + $0x2a8] sm:$0xff] }
 0x91e   :  { %v2105_v25 = vld [vmem:[#allocation9 + $0x2b0] sm:$0xff]  ;;  %v2106_v1 = vld [vmem:[#allocation9 + $0x2b8] sm:$0xff]  ;;  %v2112_v32 = vld [vmem:[#allocation9 + $0x2e8] sm:$0xff] }
 0x91f   :  { %v2110_v30 = vld [vmem:[#allocation9 + $0x2d8] sm:$0xff]  ;;  %v2109_v34 = vld [vmem:[#allocation9 + $0x2d0] sm:$0xff]  ;;  %v2111_v35 = vld [vmem:[#allocation9 + $0x2e0] sm:$0xff] }
 0x920   :  { %2219 = vmatpush1.bf16.msra.mxu0 %v2049_v41  ;;  %2305 = vmatpush1.bf16.msra.mxu1 %v2051_v42  ;;  %v2115_v36 = vld [vmem:[#allocation9 + $0x300] sm:$0xff]  ;;  %v2117_v37 = vld [vmem:[#allocation9 + $0x310] sm:$0xff]  ;;  %v2114_v38 = vld [vmem:[#allocation9 + $0x2f8] sm:$0xff] }
 0x921   :  { %2220 = vmatprep.subr.bf16.mxu0 %v2055_v44  ;;  %2306 = vmatprep.subr.bf16.mxu1 %v2057_v45  ;;  %v2116_v40 = vld [vmem:[#allocation9 + $0x308] sm:$0xff]  ;;  %v2122_v42 = vld [vmem:[#allocation9 + $0x338] sm:$0xff]  ;;  %v2119_v44 = vld [vmem:[#allocation9 + $0x320] sm:$0xff] }
 0x922   :  { %v2120_v41 = vld [vmem:[#allocation9 + $0x328] sm:$0xff]  ;;  %v2121_v45 = vld [vmem:[#allocation9 + $0x330] sm:$0xff] }
 0x924   :  { %2221 = vmatpush1.bf16.msra.mxu0 %v2054_v46  ;;  %2307 = vmatpush1.bf16.msra.mxu1 %v2056_v47  ;;  %v2125_v46 = vld [vmem:[#allocation9 + $0x350] sm:$0xff]  ;;  %v2127_v47 = vld [vmem:[#allocation9 + $0x360] sm:$0xff] }
 0x925   :  { %2222 = vmatprep.subr.bf16.mxu0 %v2060_v48  ;;  %2308 = vmatprep.subr.bf16.mxu1 %v2062_v49  ;;  %v2124_v48 = vld [vmem:[#allocation9 + $0x348] sm:$0xff]  ;;  %v2126_v49 = vld [vmem:[#allocation9 + $0x358] sm:$0xff] }
 0x928   :  { %2223 = vmatpush1.bf16.msra.mxu0 %v2059_v50  ;;  %2309 = vmatpush1.bf16.msra.mxu1 %v2061_v5  ;;  %v2130_v50 = vld [vmem:[#allocation9 + $0x378] sm:$0xff]  ;;  %v2132_v5 = vld [vmem:[#allocation9 + $0x388] sm:$0xff] }
 0x929   :  { %2224 = vmatprep.subr.bf16.mxu0 %v2065_v56  ;;  %2310 = vmatprep.subr.bf16.mxu1 %v2067_v57  ;;  %v2129_v56 = vld [vmem:[#allocation9 + $0x370] sm:$0xff]  ;;  %v2131_v57 = vld [vmem:[#allocation9 + $0x380] sm:$0xff] }
 0x92c   :  { %2225 = vmatpush1.bf16.msra.mxu0 %v2064_v4  ;;  %2311 = vmatpush1.bf16.msra.mxu1 %v2066_v59  ;;  %v2135_v4 = vld [vmem:[#allocation9 + $0x3a0] sm:$0xff]  ;;  %v2137_v59 = vld [vmem:[#allocation9 + $0x3b0] sm:$0xff] }
 0x92d   :  { %2226 = vmatprep.subr.bf16.mxu0 %v2070_v60  ;;  %2312 = vmatprep.subr.bf16.mxu1 %v2072_v61  ;;  %v2134_v60 = vld [vmem:[#allocation9 + $0x398] sm:$0xff]  ;;  %v2136_v61 = vld [vmem:[#allocation9 + $0x3a8] sm:$0xff] }
 0x930   :  { %2227 = vmatpush1.bf16.msra.mxu0 %v2069_v62  ;;  %2313 = vmatpush1.bf16.msra.mxu1 %v2071_v33  ;;  %v2140_v62 = vld [vmem:[#allocation9 + $0x3c8] sm:$0xff]  ;;  %v2142_v33 = vld [vmem:[#allocation9 + $0x3d8] sm:$0xff] }
 0x931   :  { %2228 = vmatprep.subr.bf16.mxu0 %v2075_v29  ;;  %2314 = vmatprep.subr.bf16.mxu1 %v2077_v63  ;;  %v2139_v29 = vld [vmem:[#allocation9 + $0x3c0] sm:$0xff]  ;;  %v2141_v63 = vld [vmem:[#allocation9 + $0x3d0] sm:$0xff] }
 0x934   :  { %2229 = vmatpush1.bf16.msra.mxu0 %v2074_v6  ;;  %2315 = vmatpush1.bf16.msra.mxu1 %v2076_v7  ;;  %v2145_v6 = vld [vmem:[#allocation9 + $0x3f0] sm:$0xff]  ;;  %v2147_v7 = vld [vmem:[#allocation9 + $0x400] sm:$0xff] }
 0x935   :  { %2230 = vmatprep.subr.bf16.mxu0 %v2080_v31  ;;  %2316 = vmatprep.subr.bf16.mxu1 %v2082_v8  ;;  %v2144_v31 = vld [vmem:[#allocation9 + $0x3e8] sm:$0xff]  ;;  %v2146_v8 = vld [vmem:[#allocation9 + $0x3f8] sm:$0xff] }
 0x938   :  { %2231 = vmatpush1.bf16.msra.mxu0 %v2079_v9  ;;  %2317 = vmatpush1.bf16.msra.mxu1 %v2081_v10  ;;  %v2150_v9 = vld [vmem:[#allocation9 + $0x418] sm:$0xff]  ;;  %v2152_v10 = vld [vmem:[#allocation9 + $0x428] sm:$0xff] }
 0x939   :  { %2232 = vmatprep.subr.bf16.mxu0 %v2085_v28  ;;  %2318 = vmatprep.subr.bf16.mxu1 %v2087_v11  ;;  %v2149_v28 = vld [vmem:[#allocation9 + $0x410] sm:$0xff]  ;;  %v2151_v11 = vld [vmem:[#allocation9 + $0x420] sm:$0xff] }
 0x93c   :  { %2233 = vmatpush1.bf16.msra.mxu0 %v2084_v17  ;;  %2319 = vmatpush1.bf16.msra.mxu1 %v2086_v18  ;;  %v2155_v17 = vld [vmem:[#allocation9 + $0x440] sm:$0xff]  ;;  %v2157_v18 = vld [vmem:[#allocation9 + $0x450] sm:$0xff] }
 0x93d   :  { %2234 = vmatprep.subr.bf16.mxu0 %v2090_v19  ;;  %2320 = vmatprep.subr.bf16.mxu1 %v2092_v20  ;;  %v2154_v19 = vld [vmem:[#allocation9 + $0x438] sm:$0xff]  ;;  %v2156_v20 = vld [vmem:[#allocation9 + $0x448] sm:$0xff] }
 0x940   :  { %2235 = vmatpush1.bf16.msra.mxu0 %v2089_v21  ;;  %2321 = vmatpush1.bf16.msra.mxu1 %v2091_v22  ;;  %v2160_v21 = vld [vmem:[#allocation9 + $0x468] sm:$0xff]  ;;  %v2162_v22 = vld [vmem:[#allocation9 + $0x478] sm:$0xff] }
 0x941   :  { %2236 = vmatprep.subr.bf16.mxu0 %v2095_v0  ;;  %2322 = vmatprep.subr.bf16.mxu1 %v2097_v54  ;;  %v2159_v0 = vld [vmem:[#allocation9 + $0x460] sm:$0xff]  ;;  %v2161_v54 = vld [vmem:[#allocation9 + $0x470] sm:$0xff] }
 0x944   :  { %2237 = vmatpush1.bf16.msra.mxu0 %v2094_v3  ;;  %2323 = vmatpush1.bf16.msra.mxu1 %v2096_v39  ;;  %v2165_v3 = vld [vmem:[#allocation9 + $0x490] sm:$0xff]  ;;  %v2167_v39 = vld [vmem:[#allocation9 + $0x4a0] sm:$0xff] }
 0x945   :  { %2249 = vmatprep.subr.bf16.mxu0 %v2100_v43  ;;  %2335 = vmatprep.subr.bf16.mxu1 %v2102_v58  ;;  %v2164_v43 = vld [vmem:[#allocation9 + $0x488] sm:$0xff]  ;;  %v2166_v58 = vld [vmem:[#allocation9 + $0x498] sm:$0xff] }
 0x947   :  { %2239 = vmatmul.mubr.bf16.vlgmr.msra.gmra.mrb[24].mxu0 %v3325_v12  ;;  %2325 = vmatmul.mubr.bf16.vlgmr.msra.gmra.mrb[28].mxu1 %v3325_v12 }
 0x948   :  { %2250 = vmatpush1.bf16.msra.mxu0 %v2099_v23  ;;  %2336 = vmatpush1.bf16.msra.mxu1 %v2101_v24  ;;  %v2170_v23 = vld [vmem:[#allocation9 + $0x4b8] sm:$0xff]  ;;  %v2172_v24 = vld [vmem:[#allocation9 + $0x4c8] sm:$0xff] }
 0x949   :  { %2251 = vmatprep.subr.bf16.mxu0 %v2105_v25  ;;  %2337 = vmatprep.subr.bf16.mxu1 %v2107_v26  ;;  %v2169_v25 = vld [vmem:[#allocation9 + $0x4b0] sm:$0xff]  ;;  %v2171_v26 = vld [vmem:[#allocation9 + $0x4c0] sm:$0xff] }
 0x94a   :  { %2281 = vmatprep.mubr.bf16.mxu0 %v3331_v16  ;;  %2367 = vmatprep.mubr.bf16.mxu1 %v3331_v16 }
 0x94c   :  { %2252 = vmatpush1.bf16.msra.mxu0 %v2104_v27  ;;  %2338 = vmatpush1.bf16.msra.mxu1 %v2106_v1  ;;  %v2175_v27 = vld [vmem:[#allocation9 + $0x4e0] sm:$0xff]  ;;  %v2177_v1 = vld [vmem:[#allocation9 + $0x4f0] sm:$0xff] }
 0x94d   :  { %2253 = vmatprep.subr.bf16.mxu0 %v2110_v30  ;;  %2339 = vmatprep.subr.bf16.mxu1 %v2112_v32  ;;  %v2174_v30 = vld [vmem:[#allocation9 + $0x4d8] sm:$0xff]  ;;  %v2176_v32 = vld [vmem:[#allocation9 + $0x4e8] sm:$0xff] }
 0x950   :  { %2254 = vmatpush1.bf16.msra.mxu0 %v2109_v34  ;;  %2340 = vmatpush1.bf16.msra.mxu1 %v2111_v35  ;;  %v2063_v34 = vld [vmem:[#allocation9 + $0x160] sm:$0xff] }
 0x951   :  { %2255 = vmatprep.subr.bf16.mxu0 %v2115_v36  ;;  %2341 = vmatprep.subr.bf16.mxu1 %v2117_v37  ;;  %v2143_v35 = vld [vmem:[#allocation9 + $0x3e0] sm:$0xff] }
 0x952   :  { %v2023_v36 = vld [vmem:[#allocation9 + $0x20] sm:$0xff] }
 0x953   :  { %v2103_v37 = vld [vmem:[#allocation9 + $0x2a0] sm:$0xff] }
 0x954   :  { %2256 = vmatpush1.bf16.msra.mxu0 %v2114_v38  ;;  %2342 = vmatpush1.bf16.msra.mxu1 %v2116_v40  ;;  %v2068_v38 = vld [vmem:[#allocation9 + $0x188] sm:$0xff] }
 0x955   :  { %2257 = vmatprep.subr.bf16.mxu0 %v2120_v41  ;;  %2343 = vmatprep.subr.bf16.mxu1 %v2122_v42  ;;  %v2148_v40 = vld [vmem:[#allocation9 + $0x408] sm:$0xff] }
 0x956   :  { %v2028_v41 = vld [vmem:[#allocation9 + $0x48] sm:$0xff] }
 0x957   :  { %v2108_v42 = vld [vmem:[#allocation9 + $0x2c8] sm:$0xff] }
 0x958   :  { %2258 = vmatpush1.bf16.msra.mxu0 %v2119_v44  ;;  %2344 = vmatpush1.bf16.msra.mxu1 %v2121_v45  ;;  %v2073_v44 = vld [vmem:[#allocation9 + $0x1b0] sm:$0xff] }
 0x959   :  { %2259 = vmatprep.subr.bf16.mxu0 %v2125_v46  ;;  %2345 = vmatprep.subr.bf16.mxu1 %v2127_v47  ;;  %v2153_v45 = vld [vmem:[#allocation9 + $0x430] sm:$0xff] }
 0x95a   :  { %v2033_v46 = vld [vmem:[#allocation9 + $0x70] sm:$0xff] }
 0x95b   :  { %v2113_v47 = vld [vmem:[#allocation9 + $0x2f0] sm:$0xff] }
 0x95c   :  { %2260 = vmatpush1.bf16.msra.mxu0 %v2124_v48  ;;  %2346 = vmatpush1.bf16.msra.mxu1 %v2126_v49  ;;  %v2078_v48 = vld [vmem:[#allocation9 + $0x1d8] sm:$0xff] }
 0x95d   :  { %2261 = vmatprep.subr.bf16.mxu0 %v2130_v50  ;;  %2347 = vmatprep.subr.bf16.mxu1 %v2132_v5  ;;  %v2158_v49 = vld [vmem:[#allocation9 + $0x458] sm:$0xff] }
 0x95e   :  { %v2038_v50 = vld [vmem:[#allocation9 + $0x98] sm:$0xff] }
 0x95f   :  { %v2118_v5 = vld [vmem:[#allocation9 + $0x318] sm:$0xff] }
 0x960   :  { %2262 = vmatpush1.bf16.msra.mxu0 %v2129_v56  ;;  %2348 = vmatpush1.bf16.msra.mxu1 %v2131_v57  ;;  %v2083_v56 = vld [vmem:[#allocation9 + $0x200] sm:$0xff] }
 0x961   :  { %2263 = vmatprep.subr.bf16.mxu0 %v2135_v4  ;;  %2349 = vmatprep.subr.bf16.mxu1 %v2137_v59  ;;  %v2163_v57 = vld [vmem:[#allocation9 + $0x480] sm:$0xff]  ;;  %v2088_v4 = vld [vmem:[#allocation9 + $0x228] sm:$0xff] }
 0x962   :  { %v2168_v59 = vld [vmem:[#allocation9 + $0x4a8] sm:$0xff] }
 0x964   :  { %2264 = vmatpush1.bf16.msra.mxu0 %v2134_v60  ;;  %2350 = vmatpush1.bf16.msra.mxu1 %v2136_v61  ;;  %v2048_v60 = vld [vmem:[#allocation9 + $0xe8] sm:$0xff] }
 0x965   :  { %2265 = vmatprep.subr.bf16.mxu0 %v2140_v62  ;;  %2351 = vmatprep.subr.bf16.mxu1 %v2142_v33  ;;  %v2128_v61 = vld [vmem:[#allocation9 + $0x368] sm:$0xff]  ;;  %v2093_v62 = vld [vmem:[#allocation9 + $0x250] sm:$0xff] }
 0x966   :  { %v2173_v33 = vld [vmem:[#allocation9 + $0x4d0] sm:$0xff] }
 0x968   :  { %2266 = vmatpush1.bf16.msra.mxu0 %v2139_v29  ;;  %2352 = vmatpush1.bf16.msra.mxu1 %v2141_v63  ;;  %v2053_v29 = vld [vmem:[#allocation9 + $0x110] sm:$0xff] }
 0x969   :  { %2267 = vmatprep.subr.bf16.mxu0 %v2145_v6  ;;  %2353 = vmatprep.subr.bf16.mxu1 %v2147_v7  ;;  %v2133_v63 = vld [vmem:[#allocation9 + $0x390] sm:$0xff]  ;;  %v2098_v6 = vld [vmem:[#allocation9 + $0x278] sm:$0xff] }
 0x96a   :  { %v2178_v7 = vld [vmem:[#allocation9 + $0x4f8] sm:$0xff] }
 0x96c   :  { %2268 = vmatpush1.bf16.msra.mxu0 %v2144_v31  ;;  %2354 = vmatpush1.bf16.msra.mxu1 %v2146_v8  ;;  %v2058_v31 = vld [vmem:[#allocation9 + $0x138] sm:$0xff] }
 0x96d   :  { %2269 = vmatprep.subr.bf16.mxu0 %v2150_v9  ;;  %2355 = vmatprep.subr.bf16.mxu1 %v2152_v10  ;;  %v2138_v8 = vld [vmem:[#allocation9 + $0x3b8] sm:$0xff] }
 0x970   :  { %2270 = vmatpush1.bf16.msra.mxu0 %v2149_v28  ;;  %2356 = vmatpush1.bf16.msra.mxu1 %v2151_v11 }
 0x971   :  { %2271 = vmatprep.subr.bf16.mxu0 %v2155_v17  ;;  %2357 = vmatprep.subr.bf16.mxu1 %v2157_v18 }
 0x974   :  { %2272 = vmatpush1.bf16.msra.mxu0 %v2154_v19  ;;  %2358 = vmatpush1.bf16.msra.mxu1 %v2156_v20 }
 0x975   :  { %2273 = vmatprep.subr.bf16.mxu0 %v2160_v21  ;;  %2359 = vmatprep.subr.bf16.mxu1 %v2162_v22 }
 0x978   :  { %2274 = vmatpush1.bf16.msra.mxu0 %v2159_v0  ;;  %2360 = vmatpush1.bf16.msra.mxu1 %v2161_v54 }
 0x979   :  { %2275 = vmatprep.subr.bf16.mxu0 %v2165_v3  ;;  %2361 = vmatprep.subr.bf16.mxu1 %v2167_v39 }
 0x97c   :  { %2276 = vmatpush1.bf16.msra.mxu0 %v2164_v43  ;;  %2362 = vmatpush1.bf16.msra.mxu1 %v2166_v58 }
 0x97d   :  { %2277 = vmatprep.subr.bf16.mxu0 %v2170_v23  ;;  %2363 = vmatprep.subr.bf16.mxu1 %v2172_v24 }
 0x980   :  { %2278 = vmatpush1.bf16.msra.mxu0 %v2169_v25  ;;  %2364 = vmatpush1.bf16.msra.mxu1 %v2171_v26 }
 0x981   :  { %2279 = vmatprep.subr.bf16.mxu0 %v2175_v27  ;;  %2365 = vmatprep.subr.bf16.mxu1 %v2177_v1 }
 0x984   :  { %2280 = vmatpush1.bf16.msra.mxu0 %v2174_v30  ;;  %2366 = vmatpush1.bf16.msra.mxu1 %v2176_v32 }
 0x985   :  { %2600 = vmatprep.subr.bf16.mxu0 %v2063_v34  ;;  %2622 = vmatprep.subr.bf16.mxu1 %v2143_v35 }
 0x987   :  { %2282 = vmatmul.mubr.bf16.vlgmr.msra.gmra.mrb[24].mxu0 %v3327_v14  ;;  %2368 = vmatmul.mubr.bf16.vlgmr.msra.gmra.mrb[28].mxu1 %v3327_v14 }
 0x988   :  { %2601 = vmatpush3.bf16.msra.mxu0 %v2023_v36  ;;  %2623 = vmatpush3.bf16.msra.mxu1 %v2103_v37 }
 0x989   :  { %2602 = vmatprep.subr.bf16.mxu0 %v2068_v38  ;;  %2624 = vmatprep.subr.bf16.mxu1 %v2148_v40 }
 0x98a   :  { %2410 = vmatprep.mubr.bf16.mxu0 %v3329_v15  ;;  %2451 = vmatprep.mubr.bf16.mxu1 %v3331_v16  ;;  %v2043_v15 = vld [vmem:[#allocation9 + $0xc0] sm:$0xff] }
 0x98b   :  { %v2123_v16 = vld [vmem:[#allocation9 + $0x340] sm:$0xff] }
 0x98c   :  { %2603 = vmatpush3.bf16.msra.mxu0 %v2028_v41  ;;  %2625 = vmatpush3.bf16.msra.mxu1 %v2108_v42 }
 0x98d   :  { %2604 = vmatprep.subr.bf16.mxu0 %v2073_v44  ;;  %2626 = vmatprep.subr.bf16.mxu1 %v2153_v45 }
 0x990   :  { %2605 = vmatpush3.bf16.msra.mxu0 %v2033_v46  ;;  %2627 = vmatpush3.bf16.msra.mxu1 %v2113_v47 }
 0x991   :  { %2606 = vmatprep.subr.bf16.mxu0 %v2078_v48  ;;  %2628 = vmatprep.subr.bf16.mxu1 %v2158_v49 }
 0x994   :  { %2607 = vmatpush3.bf16.msra.mxu0 %v2038_v50  ;;  %2629 = vmatpush3.bf16.msra.mxu1 %v2118_v5 }
 0x995   :  { %2608 = vmatprep.subr.bf16.mxu0 %v2083_v56  ;;  %2630 = vmatprep.subr.bf16.mxu1 %v2163_v57 }
 0x998   :  { %2609 = vmatpush3.bf16.msra.mxu0 %v2043_v15  ;;  %2631 = vmatpush3.bf16.msra.mxu1 %v2123_v16 }
 0x999   :  { %2610 = vmatprep.subr.bf16.mxu0 %v2088_v4  ;;  %2632 = vmatprep.subr.bf16.mxu1 %v2168_v59 }
 0x99c   :  { %2611 = vmatpush3.bf16.msra.mxu0 %v2048_v60  ;;  %2633 = vmatpush3.bf16.msra.mxu1 %v2128_v61 }
 0x99d   :  { %2612 = vmatprep.subr.bf16.mxu0 %v2093_v62  ;;  %2634 = vmatprep.subr.bf16.mxu1 %v2173_v33 }
 0x9a0   :  { %2613 = vmatpush3.bf16.msra.mxu0 %v2053_v29  ;;  %2635 = vmatpush3.bf16.msra.mxu1 %v2133_v63 }
 0x9a1   :  { %2614 = vmatprep.subr.bf16.mxu0 %v2098_v6  ;;  %2636 = vmatprep.subr.bf16.mxu1 %v2178_v7 }
 0x9a4   :  { %2615 = vmatpush3.bf16.msra.mxu0 %v2058_v31  ;;  %2637 = vmatpush3.bf16.msra.mxu1 %v2138_v8 }
 0x9a7   :  { %2411 = vmatmul.mubr.bf16.vlgmr.msra.gmra.mrb[28].mxu0 %v3325_v12  ;;  %2452 = vmatmul.mubr.bf16.vlgmr.msra.gmra.mrb[32].mxu1 %v3327_v14 }
 0x9a8   :  { %2849 = shalt.err (!%p2846_p0)
}
 0x9a9   :  { %s2850_s25 = scalar_lea.hbm %s3401_s19, 512 }
 0x9aa   :  { %p2851_p1 = scmp.ne.s32.totalorder %s3401_s19, %s2850_s25  ;;  %p2854_p2 = scmp.lt.u32.totalorder %s2850_s25, %s3401_s19 }
 0x9ac   :  { %p2856_p3 = pnand %p2854_p2, %p2851_p1 }
 0x9ae   :  { %2859 = shalt.err (!%p2856_p3)
}
 0x9af   :  { %s2949_s27 = smov 256   ;;  %s2950_s0 = smov 16  }
 0x9b0   :  { %2497 = dma.vmem_to_hbm [thread:$0]  %s2492_s3, 512, %s3401_s19, [#allocation18], %s2949_s27, %s2949_s27, %s2950_s0  }
 0x9b1   :  { %s3415_s9 = sld [smem:[#allocation53_spill]]  ;;  %s2951_s19 = smov [#allocation16]  }
 0x9b2   :  { %s2479_s17 = sshll.u32 %s2951_s19, 4  ;;  %s2480_s17 = int_to_ptr.vmem [resolvable:$true] %s2479_s17 }
 0x9b3   :  { %s2860_s10 = scalar_lea.vmem %s2480_s17, 1280  ;;  %p2865_p5 = scmp.lt.s32.totalorder %s2480_s17, %s2480_s17 }
 0x9b4   :  { %p2861_p4 = scmp.ne.s32.totalorder %s2480_s17, %s2860_s10  ;;  %p2866_p6 = scmp.lt.s32.totalorder %s2860_s10, %s2860_s10 }
 0x9b6   :  { %p2867_p7 = por %p2866_p6, %p2865_p5 }
 0x9b7   :  { %v2179_v12 = vld [vmem:[%s3415_s9] sm:$0x1f] }
 0x9b8   :  { %v2184_v14 = vrot.slane %v2179_v12, %v3206_v52  ;;  %v2192_v9 = vrot.slane %v2179_v12, %v3209_v53  ;;  %v2188_v10 = vrot.slane %v2179_v12, %v3215_v55  ;;  %v2196_v28 = vrot.slane %v2179_v12, %v3218_v2  ;;  %p2868_p8 = pnand %p2867_p7, %p2861_p4 }
 0x9b9   :  { %v2200_v24 = vrot.slane %v2179_v12, %v1781_v13 }
 0xa5a   :  { %v2283_v11 = vpop.f32.mrb[24].mxu0  ;;  %v2369_v17 = vpop.f32.mrb[28].mxu1 }
 0xa5b   :  { %v2680_v18 = vadd.f32 %v2283_v11, %v2184_v14  ;;  %v2684_v19 = vadd.f32 %v2369_v17, %v2192_v9  ;;  %v2285_v20 = vpop.f32.mrb[25].mxu0  ;;  %v2371_v21 = vpop.f32.mrb[29].mxu1 }
 0xa5c   :  { %v2681_v22 = vadd.f32 %v2285_v20, %v2188_v10  ;;  %v2685_v0 = vadd.f32 %v2371_v21, %v2196_v28  ;;  %v2287_v54 = vpop.f32.mrb[26].mxu0  ;;  %v2373_v3 = vpop.f32.mrb[30].mxu1 }
 0xa5d   :  { %2460 = vst [vmem:[#allocation16] sm:$0xff] %v2680_v18  ;;  %2462 = vst [vmem:[#allocation16 + $0x10] sm:$0xff] %v2684_v19  ;;  %v2682_v39 = vadd.f32 %v2287_v54, %v2184_v14  ;;  %v2686_v52 = vadd.f32 %v2373_v3, %v2192_v9  ;;  %v2289_v43 = vpop.f32.mrb[27].mxu0  ;;  %v2375_v53 = vpop.f32.mrb[31].mxu1 }
 0xa5e   :  { %2461 = vst [vmem:[#allocation16 + $0x8] sm:$0xff] %v2681_v22  ;;  %2463 = vst [vmem:[#allocation16 + $0x18] sm:$0xff] %v2685_v0  ;;  %v2683_v55 = vadd.f32 %v2289_v43, %v2188_v10  ;;  %v2687_v2 = vadd.f32 %v2375_v53, %v2196_v28 }
 0xa5f   :  { %2465 = vst [vmem:[#allocation16 + $0x28] sm:$0xff] %v2682_v39  ;;  %2467 = vst [vmem:[#allocation16 + $0x38] sm:$0xff] %v2686_v52 }
 0xa60   :  { %2466 = vst [vmem:[#allocation16 + $0x30] sm:$0xff] %v2683_v55  ;;  %2468 = vst [vmem:[#allocation16 + $0x40] sm:$0xff] %v2687_v2 }
 0xa7a   :  { %v2616_v58 = vpop.f32.mrb[28].mxu0  ;;  %v2638_v23 = vpop.f32.mrb[32].mxu1 }
 0xa7b   :  { %v2617_v25 = vpop.f32.mrb[29].mxu0  ;;  %v2639_v26 = vpop.f32.mrb[33].mxu1 }
 0xa7c   :  { %v2618_v27 = vadd.f32 %v2617_v25, %v2616_v58  ;;  %v2640_v1 = vadd.f32 %v2639_v26, %v2638_v23  ;;  %v2619_v30 = vpop.f32.mrb[30].mxu0  ;;  %v2641_v32 = vpop.f32.mrb[34].mxu1 }
 0xa7d   :  { %v2620_v34 = vpop.f32.mrb[31].mxu0  ;;  %v2642_v35 = vpop.f32.mrb[35].mxu1 }
 0xa7e   :  { %v2413_v36 = vadd.f32 %v2618_v27, %v2200_v24  ;;  %v2621_v37 = vadd.f32 %v2620_v34, %v2619_v30  ;;  %v2643_v38 = vadd.f32 %v2642_v35, %v2641_v32 }
 0xa80   :  { %v2454_v40 = vadd.f32 %v2640_v1, %v2413_v36  ;;  %v2416_v41 = vadd.f32 %v2621_v37, %v2200_v24 }
 0xa82   :  { %2464 = vst [vmem:[#allocation16 + $0x20] sm:$0xff] %v2454_v40  ;;  %v2457_v42 = vadd.f32 %v2643_v38, %v2416_v41 }
 0xa84   :  { %2469 = vst [vmem:[#allocation16 + $0x48] sm:$0xff] %v2457_v42 }
 0xa85   :  { %2871 = shalt.err (!%p2868_p8)
}
 0xa86   :  { %s3416_s22 = sld [smem:[#allocation54_spill]] }
 0xa8c   :  { %s2872_s12 = scalar_lea.hbm %s3416_s22, 1280 }
 0xa8d   :  { %p2873_p9 = scmp.ne.s32.totalorder %s3416_s22, %s2872_s12  ;;  %p2876_p10 = scmp.lt.u32.totalorder %s2872_s12, %s3416_s22 }
 0xa8f   :  { %p2878_p11 = pnand %p2876_p10, %p2873_p9 }
 0xa91   :  { %2881 = shalt.err (!%p2878_p11)
}
 0xa92   :  { %s2952_s29 = smov 640   ;;  %s2953_s15 = smov 40  }
 0xa93   :  { %2485 = dma.vmem_to_hbm [thread:$0]  %s2480_s17, 1280, %s3416_s22, [#allocation13], %s2952_s29, %s2952_s29, %s2953_s15  }
 0xa94   :  { %2902 = dma.done.wait [#allocation13], 1280  }
 0xa95   :  { %2903 = vsyncadd [#allocation13], 4294966016 }
 0xa96   :  { %2904 = dma.done.wait [#allocation18], 512  }
 0xa97   :  { %2905 = vsyncadd [#allocation18], 4294966784 }
 0xa98   :  { %2504 = vsyncpa [#allocation12], 1 }
 0xa99   :  { %2505 = vsyncpa [#allocation15], 1 }
 0xa9a   :  { %2506 = vsyncpa [#allocation13], 1 }
 0xa9b   :  { %2507 = vsyncpa [#allocation18], 1 }
 0xa9c   :  { %2508 = vsyncmov [#allocation10] }
 0xa9f   :  { %s2509_s3 = vpop.sfrf %2508 }
 0xaa0   :  { %p2583_p12 = scmp.ne.s32.totalorder %s2509_s3, 0 }
 0xaa2   :  { %2513 = shalt.err (%p2583_p12)  }
 0xaa3   :  { %2515 = vsyncmov [#allocation10 + $0x1] }
 0xaa6   :  { %s2516_s30 = vpop.sfrf %2515 }
 0xaa7   :  { %p2584_p13 = scmp.ne.s32.totalorder %s2516_s30, 0 }
 0xaa9   :  { %2520 = shalt.err (%p2584_p13)  }
 0xaaa   :  { %2522 = vsyncmov [#allocation10 + $0x2] }
 0xaad   :  { %s2523_s6 = vpop.sfrf %2522 }
 0xaae   :  { %p2585_p0 = scmp.ne.s32.totalorder %s2523_s6, 0 }
 0xab0   :  { %2527 = shalt.err (%p2585_p0)  }
 0xab1   :  { %2529 = vsyncmov [#allocation10 + $0x3] }
 0xab4   :  { %s2530_s7 = vpop.sfrf %2529 }
 0xab5   :  { %p2586_p1 = scmp.ne.s32.totalorder %s2530_s7, 0 }
 0xab7   :  { %2534 = shalt.err (%p2586_p1)  }
 0xab8   :  { %2536 = vsyncmov [#allocation10 + $0x4] }
 0xabb   :  { %s2537_s25 = vpop.sfrf %2536 }
 0xabc   :  { %p2587_p2 = scmp.ne.s32.totalorder %s2537_s25, 0 }
 0xabe   :  { %2541 = shalt.err (%p2587_p2)  }
 0xabf   :  { %2543 = vsyncmov [#allocation10 + $0x5] }
 0xac2   :  { %s2544_s18 = vpop.sfrf %2543 }
 0xac3   :  { %p2588_p3 = scmp.ne.s32.totalorder %s2544_s18, 0 }
 0xac5   :  { %2548 = shalt.err (%p2588_p3)  }
 0xac6   :  { %2550 = vsyncmov [#allocation10 + $0x6] }
 0xac9   :  { %s2551_s1 = vpop.sfrf %2550 }
 0xaca   :  { %p2589_p4 = scmp.ne.s32.totalorder %s2551_s1, 0 }
 0xacc   :  { %2555 = shalt.err (%p2589_p4)  }
 0xacd   :  { %2557 = vsyncmov [#allocation10 + $0x7] }
 0xad0   :  { %s2558_s24 = vpop.sfrf %2557 }
 0xad1   :  { %p2590_p5 = scmp.ne.s32.totalorder %s2558_s24, 0 }
 0xad3   :  { %2562 = shalt.err (%p2590_p5)  }

</bundles_post_ra>
